<compile_context>
chip_gen: v6e
topology: v6e:2x2x1
jax: 0.10.0
libtpu: 0.0.40
codegen_flags: <defaults>
</compile_context>

<pallas_src>
import math

import jax
import jax.numpy as jnp
from jax import lax
from jax.experimental import pallas as pl
from jax.experimental.pallas import tpu as pltpu

# ----------------------------- configuration -------------------------------
NUM_EMBED = 32          # num_embed
NUM_HEADS = 4           # num_heads
NUM_BLOCKS = 2          # num_blocks
SPLIT_SIZE = 2          # split_size
VQ_SIZE = 16            # vq_size (unused when vqvae is None)
NUM_CLASSES = 1         # num_classes
NUM_PRED_TOKENS = 1     # num_pred_tokens
SEQ_LEN = 64            # number of split tokens (octree nodes) per stream
BATCH = 2               # independent token streams -> "parallel" grid axis
HEAD_DIM = NUM_EMBED // NUM_HEADS
LN_EPS = 1e-5


# ------------------------------ fused kernel --------------------------------
def _layernorm(x, gamma, beta):
    mu = jnp.mean(x, axis=-1, keepdims=True)
    var = jnp.mean((x - mu) ** 2, axis=-1, keepdims=True)
    return (x - mu) * lax.rsqrt(var + LN_EPS) * gamma + beta


def gpt_fused_kernel(x_ref, tgt_ref,
                     ln1_g_ref, ln1_b_ref, wqkv_ref, bqkv_ref,
                     wproj_ref, bproj_ref, ln2_g_ref, ln2_b_ref,
                     w1_ref, b1_ref, w2_ref, b2_ref,
                     lnx_g_ref, lnx_b_ref, hw_ref, hb_ref,
                     loss_ref):
    """Whole GPT forward for one token stream: blocks -> LN -> head -> CE loss."""
    x = x_ref[...].astype(jnp.float32)                 # (N, C) residual stream, f32
    N, C = x.shape
    H, Dh = NUM_HEADS, C // NUM_HEADS

    # Causal additive mask, built once (hoisted out of the per-block loop).
    row = lax.broadcasted_iota(jnp.int32, (N, N), 0)
    col = lax.broadcasted_iota(jnp.int32, (N, N), 1)
    # -1e9 rather than -inf: scores stay f32, safe at N=64, keeps softmax NaN-free.
    neg_mask = jnp.where(row >= col, 0.0, -1e9).astype(jnp.float32)

    for blk in range(NUM_BLOCKS):                      # static unroll over blocks
        # --- causal multi-head self-attention ---
        h = _layernorm(x, ln1_g_ref[blk], ln1_b_ref[blk])
        # q columns of wqkv/bqkv are pre-scaled by 1/sqrt(Dh) at prep time.
        qkv = jnp.dot(h.astype(jnp.bfloat16), wqkv_ref[blk],
                      preferred_element_type=jnp.float32) + bqkv_ref[blk]   # (N, 3C)
        heads = []
        for hd in range(H):                            # per-head 2-D slices (views)
            q_h = qkv[:, 0 * C + hd * Dh: 0 * C + (hd + 1) * Dh]    # (N, Dh)
            k_h = qkv[:, 1 * C + hd * Dh: 1 * C + (hd + 1) * Dh]    # (N, Dh)
            v_h = qkv[:, 2 * C + hd * Dh: 2 * C + (hd + 1) * Dh]    # (N, Dh)
            s = lax.dot_general(q_h, k_h, (((1,), (1,)), ((), ())),
                                preferred_element_type=jnp.float32) + neg_mask
            p = jax.nn.softmax(s, axis=-1)
            heads.append(jnp.dot(p, v_h, preferred_element_type=jnp.float32))
        attn = jnp.concatenate(heads, axis=-1)                              # (N, C)
        y = jnp.dot(attn.astype(jnp.bfloat16), wproj_ref[blk],
                    preferred_element_type=jnp.float32) + bproj_ref[blk]
        x = x + y

        # --- MLP ---
        h = _layernorm(x, ln2_g_ref[blk], ln2_b_ref[blk])
        hh = jnp.dot(h.astype(jnp.bfloat16), w1_ref[blk],
                     preferred_element_type=jnp.float32) + b1_ref[blk]
        hh = jax.nn.gelu(hh, approximate=True)   # TODO(synk): PyTorch default is erf
        y = jnp.dot(hh.astype(jnp.bfloat16), w2_ref[blk],
                    preferred_element_type=jnp.float32) + b2_ref[blk]
        x = x + y

    # --- final LayerNorm + split_head + mean cross-entropy ---
    h = _layernorm(x, lnx_g_ref[...], lnx_b_ref[...])
    logits = jnp.dot(h, hw_ref[...], preferred_element_type=jnp.float32) + hb_ref[...]
    onehot = (lax.broadcasted_iota(jnp.int32, (N, SPLIT_SIZE), 1)
              == tgt_ref[...]).astype(jnp.float32)          # in-kernel one-hot
    m = jnp.max(logits, axis=-1, keepdims=True)
    lse = m + jnp.log(jnp.sum(jnp.exp(logits - m), axis=-1, keepdims=True))
    tgt_logit = jnp.sum(onehot * logits, axis=-1, keepdims=True)
    loss = jnp.mean(lse - tgt_logit)
    # Dense (8,128) block -> fully unmasked store; wrapper reads [b, 0, 0].
    loss_ref[...] = jnp.full(loss_ref.shape, loss, dtype=jnp.float32)


# ------------------------------ wrapper --------------------------------------
def gpt_fused_forward(x, targets, kp):
    """x: (B, N, C) bf16 embeddings; targets: (B, N, 1) int32 -> per-sequence CE loss (B,)."""
    B, N, C = x.shape

    def batched(block_shape):
        zeros = (0,) * len(block_shape)
        return pl.BlockSpec((None,) + tuple(block_shape),
                            lambda b, zeros=zeros: (b,) + zeros)

    def shared(arr):
        nd = arr.ndim
        return pl.BlockSpec(arr.shape, lambda b, nd=nd: (0,) * nd)

    weights = [kp['ln1_g'], kp['ln1_b'], kp['wqkv'], kp['bqkv'],
               kp['wproj'], kp['bproj'], kp['ln2_g'], kp['ln2_b'],
               kp['w1'], kp['b1'], kp['w2'], kp['b2'],
               kp['ln_x_g'], kp['ln_x_b'], kp['split_head_w'], kp['split_head_b']]

    in_specs = [batched((N, C)), batched((N, 1))] + [shared(w) for w in weights]
    out_spec = pl.BlockSpec((None, 8, 128), lambda b: (b, 0, 0))

    loss = pl.pallas_call(
        gpt_fused_kernel,
        grid=(B,),
        in_specs=in_specs,
        out_specs=out_spec,
        out_shape=jax.ShapeDtypeStruct((B, 8, 128), jnp.float32),
        compiler_params=pltpu.CompilerParams(dimension_semantics=("parallel",)),
    )(x, targets, *weights)
    return loss[:, 0, 0]


def sin_pos_emb(n, dim):
    # standard sinusoidal embedding over flat token index
    pos = jnp.arange(n, dtype=jnp.float32)[:, None]
    i = jnp.arange(dim // 2, dtype=jnp.float32)[None, :]
    freq = jnp.exp(-math.log(10000.0) * (2.0 * i) / dim)
    ang = pos * freq
    return jnp.concatenate([jnp.sin(ang), jnp.cos(ang)], axis=-1)


# ------------------------------ parameters ----------------------------------
def init_params(key):
    """PyTorch-equivalent parameterization (per-block dicts, f32)."""
    ks = jax.random.split(key, 8 + NUM_BLOCKS * 4)
    std = 0.02
    C = NUM_EMBED
    params = {
        'class_emb': jax.random.normal(ks[0], (NUM_CLASSES, C), jnp.float32) * std,
        'split_emb': jax.random.normal(ks[1], (SPLIT_SIZE, C), jnp.float32) * std,
        'ln_x_g': jnp.ones((1, C), jnp.float32),
        'ln_x_b': jnp.zeros((1, C), jnp.float32),
        'split_head_w': jax.random.normal(ks[2], (C, SPLIT_SIZE), jnp.float32) * std,
        'split_head_b': jnp.zeros((1, SPLIT_SIZE), jnp.float32),
        'vq_head_w': jax.random.normal(ks[3], (C, VQ_SIZE), jnp.float32) * std,
        'vq_head_b': jnp.zeros((1, VQ_SIZE), jnp.float32),
        'blocks': [],
    }
    for b in range(NUM_BLOCKS):
        kq, kp_, k1, k2 = ks[8 + 4 * b: 8 + 4 * b + 4]
        params['blocks'].append({
            'ln1_g': jnp.ones((1, C), jnp.float32),
            'ln1_b': jnp.zeros((1, C), jnp.float32),
            'wqkv': jax.random.normal(kq, (C, 3 * C), jnp.float32) * std,
            'bqkv': jnp.zeros((1, 3 * C), jnp.float32),
            'wproj': jax.random.normal(kp_, (C, C), jnp.float32) * std,
            'bproj': jnp.zeros((1, C), jnp.float32),
            'ln2_g': jnp.ones((1, C), jnp.float32),
            'ln2_b': jnp.zeros((1, C), jnp.float32),
            'w1': jax.random.normal(k1, (C, 4 * C), jnp.float32) * std,
            'b1': jnp.zeros((1, 4 * C), jnp.float32),
            'w2': jax.random.normal(k2, (4 * C, C), jnp.float32) * std,
            'b2': jnp.zeros((1, C), jnp.float32),
        })
    return params


def prepare_kernel_params(params):
    """Stack per-block params, fold 1/sqrt(Dh) into q columns, cast matmul weights to bf16."""
    C = NUM_EMBED
    blocks = params['blocks']

    def stack(name):
        return jnp.stack([b[name] for b in blocks], axis=0)

    scale = 1.0 / math.sqrt(HEAD_DIM)
    qkv_scale = jnp.concatenate([jnp.full((C,), scale, jnp.float32),
                                 jnp.ones((2 * C,), jnp.float32)])
    return {
        'class_emb': params['class_emb'],
        'split_emb': params['split_emb'],
        'ln1_g': stack('ln1_g'), 'ln1_b': stack('ln1_b'),
        'wqkv': (stack('wqkv') * qkv_scale).astype(jnp.bfloat16),
        'bqkv': stack('bqkv') * qkv_scale,
        'wproj': stack('wproj').astype(jnp.bfloat16),
        'bproj': stack('bproj'),
        'ln2_g': stack('ln2_g'), 'ln2_b': stack('ln2_b'),
        'w1': stack('w1').astype(jnp.bfloat16), 'b1': stack('b1'),
        'w2': stack('w2').astype(jnp.bfloat16), 'b2': stack('b2'),
        'ln_x_g': params['ln_x_g'], 'ln_x_b': params['ln_x_b'],
        'split_head_w': params['split_head_w'],
        'split_head_b': params['split_head_b'],
    }


# ------------------------------ forward --------------------------------------
@jax.jit
def gpt_forward(split_tokens, kparams):
    """GPT.forward(split, octree, ...) with vqvae=None, category=None.

    split_tokens: (B, N) int32 -- B independent token streams; B=1 reproduces the
    original single-stream semantics exactly (per-sequence means == token mean).
    """
    B, N = split_tokens.shape
    C = NUM_EMBED
    targets = split_tokens                                        # deepcopy(split)
    cond = kparams['class_emb'][jnp.zeros((1,), jnp.int32)]       # class_emb(0)
    tok = kparams['split_emb'][split_tokens]                      # split_emb(split)
    # cat([cond.repeat(num_pred_tokens,1), tok])[:-num_pred_tokens], per stream
    emb = jnp.concatenate(
        [jnp.broadcast_to(cond[None], (B, NUM_PRED_TOKENS, C)), tok],
        axis=1)[:, :-NUM_PRED_TOKENS]
    pos = sin_pos_emb(N, C)                                       # SinPosEmb surrogate
    x = (emb + pos[None]).astype(jnp.bfloat16)                    # dropout: eval = id
    per_seq_loss = gpt_fused_forward(
        x, targets[..., None].astype(jnp.int32), kparams)
    return {'split_loss': jnp.mean(per_seq_loss), 'vq_loss': jnp.float32(0.0)}


# ------------------------------ main ------------------------------------------
if __name__ == "__main__":
    key = jax.random.PRNGKey(0)
    k_param, k_data = jax.random.split(key)
    params = init_params(k_param)
    kparams = prepare_kernel_params(params)
    # synthetic octree split tokens in {0, ..., split_size-1}
    split = jax.random.randint(k_data, (BATCH, SEQ_LEN), 0, SPLIT_SIZE, dtype=jnp.int32)
    out = gpt_forward(split, kparams)
    jax.block_until_ready(out)
    assert jnp.isfinite(out['split_loss'])
    print("KERNEL_OK")
</pallas_src>

<mosaic_0001>
module attributes {stable_mosaic.version = 11 : i64} {
  func.func @gpt_fused_kernel(%arg0: i32, %arg1: memref<1x64x32xbf16, #tpu.memory_space<vmem>>, %arg2: memref<1x64x1xi32, #tpu.memory_space<vmem>>, %arg3: memref<2x1x32xf32, #tpu.memory_space<vmem>>, %arg4: memref<2x1x32xf32, #tpu.memory_space<vmem>>, %arg5: memref<2x32x96xbf16, #tpu.memory_space<vmem>>, %arg6: memref<2x1x96xf32, #tpu.memory_space<vmem>>, %arg7: memref<2x32x32xbf16, #tpu.memory_space<vmem>>, %arg8: memref<2x1x32xf32, #tpu.memory_space<vmem>>, %arg9: memref<2x1x32xf32, #tpu.memory_space<vmem>>, %arg10: memref<2x1x32xf32, #tpu.memory_space<vmem>>, %arg11: memref<2x32x128xbf16, #tpu.memory_space<vmem>>, %arg12: memref<2x1x128xf32, #tpu.memory_space<vmem>>, %arg13: memref<2x128x32xbf16, #tpu.memory_space<vmem>>, %arg14: memref<2x1x32xf32, #tpu.memory_space<vmem>>, %arg15: memref<1x32xf32, #tpu.memory_space<vmem>>, %arg16: memref<1x32xf32, #tpu.memory_space<vmem>>, %arg17: memref<32x2xf32, #tpu.memory_space<vmem>>, %arg18: memref<1x2xf32, #tpu.memory_space<vmem>>, %arg19: memref<1x8x128xf32, #tpu.memory_space<vmem>>) attributes {dimension_semantics = [#tpu.dimension_semantics<parallel>], iteration_bounds = array<i64: 2>, scalar_prefetch = 0 : i64, scratch_operands = 0 : i64, tpu.core_type = #tpu.core_type<tc>, window_params = [{transform_indices = @transform_0, window_bounds = array<i64: 1, 64, 32>}, {transform_indices = @transform_1, window_bounds = array<i64: 1, 64, 1>}, {pipeline_mode = #tpu.pipeline_mode<synchronous>, transform_indices = @transform_2, window_bounds = array<i64: 2, 1, 32>}, {pipeline_mode = #tpu.pipeline_mode<synchronous>, transform_indices = @transform_3, window_bounds = array<i64: 2, 1, 32>}, {pipeline_mode = #tpu.pipeline_mode<synchronous>, transform_indices = @transform_4, window_bounds = array<i64: 2, 32, 96>}, {pipeline_mode = #tpu.pipeline_mode<synchronous>, transform_indices = @transform_5, window_bounds = array<i64: 2, 1, 96>}, {pipeline_mode = #tpu.pipeline_mode<synchronous>, transform_indices = @transform_6, window_bounds = array<i64: 2, 32, 32>}, {pipeline_mode = #tpu.pipeline_mode<synchronous>, transform_indices = @transform_7, window_bounds = array<i64: 2, 1, 32>}, {pipeline_mode = #tpu.pipeline_mode<synchronous>, transform_indices = @transform_8, window_bounds = array<i64: 2, 1, 32>}, {pipeline_mode = #tpu.pipeline_mode<synchronous>, transform_indices = @transform_9, window_bounds = array<i64: 2, 1, 32>}, {pipeline_mode = #tpu.pipeline_mode<synchronous>, transform_indices = @transform_10, window_bounds = array<i64: 2, 32, 128>}, {pipeline_mode = #tpu.pipeline_mode<synchronous>, transform_indices = @transform_11, window_bounds = array<i64: 2, 1, 128>}, {pipeline_mode = #tpu.pipeline_mode<synchronous>, transform_indices = @transform_12, window_bounds = array<i64: 2, 128, 32>}, {pipeline_mode = #tpu.pipeline_mode<synchronous>, transform_indices = @transform_13, window_bounds = array<i64: 2, 1, 32>}, {pipeline_mode = #tpu.pipeline_mode<synchronous>, transform_indices = @transform_14, window_bounds = array<i64: 1, 32>}, {pipeline_mode = #tpu.pipeline_mode<synchronous>, transform_indices = @transform_15, window_bounds = array<i64: 1, 32>}, {pipeline_mode = #tpu.pipeline_mode<synchronous>, transform_indices = @transform_16, window_bounds = array<i64: 32, 2>}, {pipeline_mode = #tpu.pipeline_mode<synchronous>, transform_indices = @transform_17, window_bounds = array<i64: 1, 2>}, {transform_indices = @transform_18, window_bounds = array<i64: 1, 8, 128>}]} {
    %c0 = arith.constant 0 : index
    %c0_0 = arith.constant 0 : index
    %c0_1 = arith.constant 0 : index
    %0 = vector.load %arg1[%c0, %c0_0, %c0_1] : memref<1x64x32xbf16, #tpu.memory_space<vmem>>, vector<1x64x32xbf16>
    %1 = vector.shape_cast %0 : vector<1x64x32xbf16> to vector<64x32xbf16>
    %2 = arith.extf %1 : vector<64x32xbf16> to vector<64x32xf32>
    %3 = tpu.iota {dimensions = array<i32: 0>} : vector<64x64xi32>
    %4 = tpu.iota {dimensions = array<i32: 1>} : vector<64x64xi32>
    %5 = arith.cmpi sge, %3, %4 : vector<64x64xi32>
    %cst = arith.constant 0.000000e+00 : f32
    %cst_2 = arith.constant -1.000000e+09 : f32
    %6 = vector.broadcast %cst : f32 to vector<64x64xf32>
    %7 = vector.broadcast %cst_2 : f32 to vector<64x64xf32>
    %8 = arith.select %5, %6, %7 : vector<64x64xi1>, vector<64x64xf32>
    %c0_3 = arith.constant 0 : index
    %c0_4 = arith.constant 0 : index
    %c0_5 = arith.constant 0 : index
    %9 = vector.load %arg3[%c0_3, %c0_4, %c0_5] : memref<2x1x32xf32, #tpu.memory_space<vmem>>, vector<1x1x32xf32>
    %10 = vector.shape_cast %9 : vector<1x1x32xf32> to vector<1x32xf32>
    %c0_6 = arith.constant 0 : index
    %c0_7 = arith.constant 0 : index
    %c0_8 = arith.constant 0 : index
    %11 = vector.load %arg4[%c0_6, %c0_7, %c0_8] : memref<2x1x32xf32, #tpu.memory_space<vmem>>, vector<1x1x32xf32>
    %12 = vector.shape_cast %11 : vector<1x1x32xf32> to vector<1x32xf32>
    %cst_9 = arith.constant dense<0.000000e+00> : vector<64xf32>
    %13 = vector.multi_reduction <add>, %2, %cst_9 [1] : vector<64x32xf32> to vector<64xf32>
    %14 = vector.shape_cast %13 : vector<64xf32> to vector<64x1xf32>
    %cst_10 = arith.constant 3.200000e+01 : f32
    %15 = vector.broadcast %cst_10 : f32 to vector<64x1xf32>
    %16 = arith.divf %14, %15 : vector<64x1xf32>
    %17 = vector.broadcast %16 : vector<64x1xf32> to vector<64x32xf32>
    %18 = arith.subf %2, %17 : vector<64x32xf32>
    %19 = arith.mulf %18, %18 : vector<64x32xf32>
    %cst_11 = arith.constant dense<0.000000e+00> : vector<64xf32>
    %20 = vector.multi_reduction <add>, %19, %cst_11 [1] : vector<64x32xf32> to vector<64xf32>
    %21 = vector.shape_cast %20 : vector<64xf32> to vector<64x1xf32>
    %cst_12 = arith.constant 3.200000e+01 : f32
    %22 = vector.broadcast %cst_12 : f32 to vector<64x1xf32>
    %23 = arith.divf %21, %22 : vector<64x1xf32>
    %24 = vector.broadcast %16 : vector<64x1xf32> to vector<64x32xf32>
    %25 = arith.subf %2, %24 : vector<64x32xf32>
    %cst_13 = arith.constant 9.99999974E-6 : f32
    %26 = vector.broadcast %cst_13 : f32 to vector<64x1xf32>
    %27 = arith.addf %23, %26 : vector<64x1xf32>
    %28 = math.rsqrt %27 : vector<64x1xf32>
    %29 = vector.broadcast %28 : vector<64x1xf32> to vector<64x32xf32>
    %30 = arith.mulf %25, %29 : vector<64x32xf32>
    %31 = vector.broadcast %10 : vector<1x32xf32> to vector<64x32xf32>
    %32 = arith.mulf %30, %31 : vector<64x32xf32>
    %33 = vector.broadcast %12 : vector<1x32xf32> to vector<64x32xf32>
    %34 = arith.addf %32, %33 : vector<64x32xf32>
    %35 = arith.truncf %34 : vector<64x32xf32> to vector<64x32xbf16>
    %c0_14 = arith.constant 0 : index
    %c0_15 = arith.constant 0 : index
    %c0_16 = arith.constant 0 : index
    %36 = vector.load %arg5[%c0_14, %c0_15, %c0_16] : memref<2x32x96xbf16, #tpu.memory_space<vmem>>, vector<1x32x96xbf16>
    %37 = vector.shape_cast %36 : vector<1x32x96xbf16> to vector<32x96xbf16>
    %cst_17 = arith.constant dense<0.000000e+00> : vector<64x96xf32>
    %38 = tpu.matmul %35, %37, %cst_17 {dimension_numbers = #tpu.dot_dimension_numbers<[1], [0], [0], [1], [0, 0, 1, 1], [], []>} : vector<64x32xbf16>, vector<32x96xbf16>, vector<64x96xf32> -> vector<64x96xf32>
    %c0_18 = arith.constant 0 : index
    %c0_19 = arith.constant 0 : index
    %c0_20 = arith.constant 0 : index
    %39 = vector.load %arg6[%c0_18, %c0_19, %c0_20] : memref<2x1x96xf32, #tpu.memory_space<vmem>>, vector<1x1x96xf32>
    %40 = vector.shape_cast %39 : vector<1x1x96xf32> to vector<1x96xf32>
    %41 = vector.broadcast %40 : vector<1x96xf32> to vector<64x96xf32>
    %42 = arith.addf %38, %41 : vector<64x96xf32>
    %43 = vector.extract_strided_slice %42 {offsets = [0, 0], sizes = [64, 8], strides = [1, 1]} : vector<64x96xf32> to vector<64x8xf32>
    %44 = vector.extract_strided_slice %42 {offsets = [0, 32], sizes = [64, 8], strides = [1, 1]} : vector<64x96xf32> to vector<64x8xf32>
    %45 = vector.extract_strided_slice %42 {offsets = [0, 64], sizes = [64, 8], strides = [1, 1]} : vector<64x96xf32> to vector<64x8xf32>
    %cst_21 = arith.constant dense<0.000000e+00> : vector<64x64xf32>
    %46 = tpu.matmul %43, %44, %cst_21 {dimension_numbers = #tpu.dot_dimension_numbers<[1], [1], [0], [0], [0, 0, 1, 0], [], []>} : vector<64x8xf32>, vector<64x8xf32>, vector<64x64xf32> -> vector<64x64xf32>
    %47 = arith.addf %46, %8 : vector<64x64xf32>
    %cst_22 = arith.constant dense<0xFF800000> : vector<64xf32>
    %48 = vector.multi_reduction <maximumf>, %47, %cst_22 [1] : vector<64x64xf32> to vector<64xf32>
    %cst_23 = arith.constant 0xFF800000 : f32
    %49 = vector.broadcast %cst_23 : f32 to vector<64xf32>
    %50 = arith.maximumf %49, %48 : vector<64xf32>
    %51 = vector.shape_cast %50 : vector<64xf32> to vector<64x1xf32>
    %52 = vector.broadcast %51 : vector<64x1xf32> to vector<64x64xf32>
    %53 = arith.subf %47, %52 : vector<64x64xf32>
    %54 = math.exp %53 : vector<64x64xf32>
    %cst_24 = arith.constant dense<0.000000e+00> : vector<64xf32>
    %55 = vector.multi_reduction <add>, %54, %cst_24 [1] : vector<64x64xf32> to vector<64xf32>
    %56 = vector.shape_cast %55 : vector<64xf32> to vector<64x1xf32>
    %57 = vector.broadcast %56 : vector<64x1xf32> to vector<64x64xf32>
    %58 = arith.divf %54, %57 : vector<64x64xf32>
    %cst_25 = arith.constant dense<0.000000e+00> : vector<64x8xf32>
    %59 = tpu.matmul %58, %45, %cst_25 {dimension_numbers = #tpu.dot_dimension_numbers<[1], [0], [0], [1], [0, 0, 1, 1], [], []>} : vector<64x64xf32>, vector<64x8xf32>, vector<64x8xf32> -> vector<64x8xf32>
    %60 = vector.extract_strided_slice %42 {offsets = [0, 8], sizes = [64, 8], strides = [1, 1]} : vector<64x96xf32> to vector<64x8xf32>
    %61 = vector.extract_strided_slice %42 {offsets = [0, 40], sizes = [64, 8], strides = [1, 1]} : vector<64x96xf32> to vector<64x8xf32>
    %62 = vector.extract_strided_slice %42 {offsets = [0, 72], sizes = [64, 8], strides = [1, 1]} : vector<64x96xf32> to vector<64x8xf32>
    %cst_26 = arith.constant dense<0.000000e+00> : vector<64x64xf32>
    %63 = tpu.matmul %60, %61, %cst_26 {dimension_numbers = #tpu.dot_dimension_numbers<[1], [1], [0], [0], [0, 0, 1, 0], [], []>} : vector<64x8xf32>, vector<64x8xf32>, vector<64x64xf32> -> vector<64x64xf32>
    %64 = arith.addf %63, %8 : vector<64x64xf32>
    %cst_27 = arith.constant dense<0xFF800000> : vector<64xf32>
    %65 = vector.multi_reduction <maximumf>, %64, %cst_27 [1] : vector<64x64xf32> to vector<64xf32>
    %cst_28 = arith.constant 0xFF800000 : f32
    %66 = vector.broadcast %cst_28 : f32 to vector<64xf32>
    %67 = arith.maximumf %66, %65 : vector<64xf32>
    %68 = vector.shape_cast %67 : vector<64xf32> to vector<64x1xf32>
    %69 = vector.broadcast %68 : vector<64x1xf32> to vector<64x64xf32>
    %70 = arith.subf %64, %69 : vector<64x64xf32>
    %71 = math.exp %70 : vector<64x64xf32>
    %cst_29 = arith.constant dense<0.000000e+00> : vector<64xf32>
    %72 = vector.multi_reduction <add>, %71, %cst_29 [1] : vector<64x64xf32> to vector<64xf32>
    %73 = vector.shape_cast %72 : vector<64xf32> to vector<64x1xf32>
    %74 = vector.broadcast %73 : vector<64x1xf32> to vector<64x64xf32>
    %75 = arith.divf %71, %74 : vector<64x64xf32>
    %cst_30 = arith.constant dense<0.000000e+00> : vector<64x8xf32>
    %76 = tpu.matmul %75, %62, %cst_30 {dimension_numbers = #tpu.dot_dimension_numbers<[1], [0], [0], [1], [0, 0, 1, 1], [], []>} : vector<64x64xf32>, vector<64x8xf32>, vector<64x8xf32> -> vector<64x8xf32>
    %77 = vector.extract_strided_slice %42 {offsets = [0, 16], sizes = [64, 8], strides = [1, 1]} : vector<64x96xf32> to vector<64x8xf32>
    %78 = vector.extract_strided_slice %42 {offsets = [0, 48], sizes = [64, 8], strides = [1, 1]} : vector<64x96xf32> to vector<64x8xf32>
    %79 = vector.extract_strided_slice %42 {offsets = [0, 80], sizes = [64, 8], strides = [1, 1]} : vector<64x96xf32> to vector<64x8xf32>
    %cst_31 = arith.constant dense<0.000000e+00> : vector<64x64xf32>
    %80 = tpu.matmul %77, %78, %cst_31 {dimension_numbers = #tpu.dot_dimension_numbers<[1], [1], [0], [0], [0, 0, 1, 0], [], []>} : vector<64x8xf32>, vector<64x8xf32>, vector<64x64xf32> -> vector<64x64xf32>
    %81 = arith.addf %80, %8 : vector<64x64xf32>
    %cst_32 = arith.constant dense<0xFF800000> : vector<64xf32>
    %82 = vector.multi_reduction <maximumf>, %81, %cst_32 [1] : vector<64x64xf32> to vector<64xf32>
    %cst_33 = arith.constant 0xFF800000 : f32
    %83 = vector.broadcast %cst_33 : f32 to vector<64xf32>
    %84 = arith.maximumf %83, %82 : vector<64xf32>
    %85 = vector.shape_cast %84 : vector<64xf32> to vector<64x1xf32>
    %86 = vector.broadcast %85 : vector<64x1xf32> to vector<64x64xf32>
    %87 = arith.subf %81, %86 : vector<64x64xf32>
    %88 = math.exp %87 : vector<64x64xf32>
    %cst_34 = arith.constant dense<0.000000e+00> : vector<64xf32>
    %89 = vector.multi_reduction <add>, %88, %cst_34 [1] : vector<64x64xf32> to vector<64xf32>
    %90 = vector.shape_cast %89 : vector<64xf32> to vector<64x1xf32>
    %91 = vector.broadcast %90 : vector<64x1xf32> to vector<64x64xf32>
    %92 = arith.divf %88, %91 : vector<64x64xf32>
    %cst_35 = arith.constant dense<0.000000e+00> : vector<64x8xf32>
    %93 = tpu.matmul %92, %79, %cst_35 {dimension_numbers = #tpu.dot_dimension_numbers<[1], [0], [0], [1], [0, 0, 1, 1], [], []>} : vector<64x64xf32>, vector<64x8xf32>, vector<64x8xf32> -> vector<64x8xf32>
    %94 = vector.extract_strided_slice %42 {offsets = [0, 24], sizes = [64, 8], strides = [1, 1]} : vector<64x96xf32> to vector<64x8xf32>
    %95 = vector.extract_strided_slice %42 {offsets = [0, 56], sizes = [64, 8], strides = [1, 1]} : vector<64x96xf32> to vector<64x8xf32>
    %96 = vector.extract_strided_slice %42 {offsets = [0, 88], sizes = [64, 8], strides = [1, 1]} : vector<64x96xf32> to vector<64x8xf32>
    %cst_36 = arith.constant dense<0.000000e+00> : vector<64x64xf32>
    %97 = tpu.matmul %94, %95, %cst_36 {dimension_numbers = #tpu.dot_dimension_numbers<[1], [1], [0], [0], [0, 0, 1, 0], [], []>} : vector<64x8xf32>, vector<64x8xf32>, vector<64x64xf32> -> vector<64x64xf32>
    %98 = arith.addf %97, %8 : vector<64x64xf32>
    %cst_37 = arith.constant dense<0xFF800000> : vector<64xf32>
    %99 = vector.multi_reduction <maximumf>, %98, %cst_37 [1] : vector<64x64xf32> to vector<64xf32>
    %cst_38 = arith.constant 0xFF800000 : f32
    %100 = vector.broadcast %cst_38 : f32 to vector<64xf32>
    %101 = arith.maximumf %100, %99 : vector<64xf32>
    %102 = vector.shape_cast %101 : vector<64xf32> to vector<64x1xf32>
    %103 = vector.broadcast %102 : vector<64x1xf32> to vector<64x64xf32>
    %104 = arith.subf %98, %103 : vector<64x64xf32>
    %105 = math.exp %104 : vector<64x64xf32>
    %cst_39 = arith.constant dense<0.000000e+00> : vector<64xf32>
    %106 = vector.multi_reduction <add>, %105, %cst_39 [1] : vector<64x64xf32> to vector<64xf32>
    %107 = vector.shape_cast %106 : vector<64xf32> to vector<64x1xf32>
    %108 = vector.broadcast %107 : vector<64x1xf32> to vector<64x64xf32>
    %109 = arith.divf %105, %108 : vector<64x64xf32>
    %cst_40 = arith.constant dense<0.000000e+00> : vector<64x8xf32>
    %110 = tpu.matmul %109, %96, %cst_40 {dimension_numbers = #tpu.dot_dimension_numbers<[1], [0], [0], [1], [0, 0, 1, 1], [], []>} : vector<64x64xf32>, vector<64x8xf32>, vector<64x8xf32> -> vector<64x8xf32>
    %111 = tpu.concatenate %59, %76, %93, %110 in 1 : vector<64x8xf32>, vector<64x8xf32>, vector<64x8xf32>, vector<64x8xf32> -> vector<64x32xf32>
    %112 = arith.truncf %111 : vector<64x32xf32> to vector<64x32xbf16>
    %c0_41 = arith.constant 0 : index
    %c0_42 = arith.constant 0 : index
    %c0_43 = arith.constant 0 : index
    %113 = vector.load %arg7[%c0_41, %c0_42, %c0_43] : memref<2x32x32xbf16, #tpu.memory_space<vmem>>, vector<1x32x32xbf16>
    %114 = vector.shape_cast %113 : vector<1x32x32xbf16> to vector<32x32xbf16>
    %cst_44 = arith.constant dense<0.000000e+00> : vector<64x32xf32>
    %115 = tpu.matmul %112, %114, %cst_44 {dimension_numbers = #tpu.dot_dimension_numbers<[1], [0], [0], [1], [0, 0, 1, 1], [], []>} : vector<64x32xbf16>, vector<32x32xbf16>, vector<64x32xf32> -> vector<64x32xf32>
    %c0_45 = arith.constant 0 : index
    %c0_46 = arith.constant 0 : index
    %c0_47 = arith.constant 0 : index
    %116 = vector.load %arg8[%c0_45, %c0_46, %c0_47] : memref<2x1x32xf32, #tpu.memory_space<vmem>>, vector<1x1x32xf32>
    %117 = vector.shape_cast %116 : vector<1x1x32xf32> to vector<1x32xf32>
    %118 = vector.broadcast %117 : vector<1x32xf32> to vector<64x32xf32>
    %119 = arith.addf %115, %118 : vector<64x32xf32>
    %120 = arith.addf %2, %119 : vector<64x32xf32>
    %c0_48 = arith.constant 0 : index
    %c0_49 = arith.constant 0 : index
    %c0_50 = arith.constant 0 : index
    %121 = vector.load %arg9[%c0_48, %c0_49, %c0_50] : memref<2x1x32xf32, #tpu.memory_space<vmem>>, vector<1x1x32xf32>
    %122 = vector.shape_cast %121 : vector<1x1x32xf32> to vector<1x32xf32>
    %c0_51 = arith.constant 0 : index
    %c0_52 = arith.constant 0 : index
    %c0_53 = arith.constant 0 : index
    %123 = vector.load %arg10[%c0_51, %c0_52, %c0_53] : memref<2x1x32xf32, #tpu.memory_space<vmem>>, vector<1x1x32xf32>
    %124 = vector.shape_cast %123 : vector<1x1x32xf32> to vector<1x32xf32>
    %cst_54 = arith.constant dense<0.000000e+00> : vector<64xf32>
    %125 = vector.multi_reduction <add>, %120, %cst_54 [1] : vector<64x32xf32> to vector<64xf32>
    %126 = vector.shape_cast %125 : vector<64xf32> to vector<64x1xf32>
    %cst_55 = arith.constant 3.200000e+01 : f32
    %127 = vector.broadcast %cst_55 : f32 to vector<64x1xf32>
    %128 = arith.divf %126, %127 : vector<64x1xf32>
    %129 = vector.broadcast %128 : vector<64x1xf32> to vector<64x32xf32>
    %130 = arith.subf %120, %129 : vector<64x32xf32>
    %131 = arith.mulf %130, %130 : vector<64x32xf32>
    %cst_56 = arith.constant dense<0.000000e+00> : vector<64xf32>
    %132 = vector.multi_reduction <add>, %131, %cst_56 [1] : vector<64x32xf32> to vector<64xf32>
    %133 = vector.shape_cast %132 : vector<64xf32> to vector<64x1xf32>
    %cst_57 = arith.constant 3.200000e+01 : f32
    %134 = vector.broadcast %cst_57 : f32 to vector<64x1xf32>
    %135 = arith.divf %133, %134 : vector<64x1xf32>
    %136 = vector.broadcast %128 : vector<64x1xf32> to vector<64x32xf32>
    %137 = arith.subf %120, %136 : vector<64x32xf32>
    %cst_58 = arith.constant 9.99999974E-6 : f32
    %138 = vector.broadcast %cst_58 : f32 to vector<64x1xf32>
    %139 = arith.addf %135, %138 : vector<64x1xf32>
    %140 = math.rsqrt %139 : vector<64x1xf32>
    %141 = vector.broadcast %140 : vector<64x1xf32> to vector<64x32xf32>
    %142 = arith.mulf %137, %141 : vector<64x32xf32>
    %143 = vector.broadcast %122 : vector<1x32xf32> to vector<64x32xf32>
    %144 = arith.mulf %142, %143 : vector<64x32xf32>
    %145 = vector.broadcast %124 : vector<1x32xf32> to vector<64x32xf32>
    %146 = arith.addf %144, %145 : vector<64x32xf32>
    %147 = arith.truncf %146 : vector<64x32xf32> to vector<64x32xbf16>
    %c0_59 = arith.constant 0 : index
    %c0_60 = arith.constant 0 : index
    %c0_61 = arith.constant 0 : index
    %148 = vector.load %arg11[%c0_59, %c0_60, %c0_61] : memref<2x32x128xbf16, #tpu.memory_space<vmem>>, vector<1x32x128xbf16>
    %149 = vector.shape_cast %148 : vector<1x32x128xbf16> to vector<32x128xbf16>
    %cst_62 = arith.constant dense<0.000000e+00> : vector<64x128xf32>
    %150 = tpu.matmul %147, %149, %cst_62 {dimension_numbers = #tpu.dot_dimension_numbers<[1], [0], [0], [1], [0, 0, 1, 1], [], []>} : vector<64x32xbf16>, vector<32x128xbf16>, vector<64x128xf32> -> vector<64x128xf32>
    %c0_63 = arith.constant 0 : index
    %c0_64 = arith.constant 0 : index
    %c0_65 = arith.constant 0 : index
    %151 = vector.load %arg12[%c0_63, %c0_64, %c0_65] : memref<2x1x128xf32, #tpu.memory_space<vmem>>, vector<1x1x128xf32>
    %152 = vector.shape_cast %151 : vector<1x1x128xf32> to vector<1x128xf32>
    %153 = vector.broadcast %152 : vector<1x128xf32> to vector<64x128xf32>
    %154 = arith.addf %150, %153 : vector<64x128xf32>
    %155 = arith.mulf %154, %154 : vector<64x128xf32>
    %156 = arith.mulf %154, %155 : vector<64x128xf32>
    %cst_66 = arith.constant 4.471500e-02 : f32
    %157 = vector.broadcast %cst_66 : f32 to vector<64x128xf32>
    %158 = arith.mulf %157, %156 : vector<64x128xf32>
    %159 = arith.addf %154, %158 : vector<64x128xf32>
    %cst_67 = arith.constant 0.797884583 : f32
    %160 = vector.broadcast %cst_67 : f32 to vector<64x128xf32>
    %161 = arith.mulf %160, %159 : vector<64x128xf32>
    %162 = math.tanh %161 : vector<64x128xf32>
    %cst_68 = arith.constant 1.000000e+00 : f32
    %163 = vector.broadcast %cst_68 : f32 to vector<64x128xf32>
    %164 = arith.addf %163, %162 : vector<64x128xf32>
    %cst_69 = arith.constant 5.000000e-01 : f32
    %165 = vector.broadcast %cst_69 : f32 to vector<64x128xf32>
    %166 = arith.mulf %165, %164 : vector<64x128xf32>
    %167 = arith.mulf %154, %166 : vector<64x128xf32>
    %168 = arith.truncf %167 : vector<64x128xf32> to vector<64x128xbf16>
    %c0_70 = arith.constant 0 : index
    %c0_71 = arith.constant 0 : index
    %c0_72 = arith.constant 0 : index
    %169 = vector.load %arg13[%c0_70, %c0_71, %c0_72] : memref<2x128x32xbf16, #tpu.memory_space<vmem>>, vector<1x128x32xbf16>
    %170 = vector.shape_cast %169 : vector<1x128x32xbf16> to vector<128x32xbf16>
    %cst_73 = arith.constant dense<0.000000e+00> : vector<64x32xf32>
    %171 = tpu.matmul %168, %170, %cst_73 {dimension_numbers = #tpu.dot_dimension_numbers<[1], [0], [0], [1], [0, 0, 1, 1], [], []>} : vector<64x128xbf16>, vector<128x32xbf16>, vector<64x32xf32> -> vector<64x32xf32>
    %c0_74 = arith.constant 0 : index
    %c0_75 = arith.constant 0 : index
    %c0_76 = arith.constant 0 : index
    %172 = vector.load %arg14[%c0_74, %c0_75, %c0_76] : memref<2x1x32xf32, #tpu.memory_space<vmem>>, vector<1x1x32xf32>
    %173 = vector.shape_cast %172 : vector<1x1x32xf32> to vector<1x32xf32>
    %174 = vector.broadcast %173 : vector<1x32xf32> to vector<64x32xf32>
    %175 = arith.addf %171, %174 : vector<64x32xf32>
    %176 = arith.addf %120, %175 : vector<64x32xf32>
    %c1 = arith.constant 1 : index
    %c0_77 = arith.constant 0 : index
    %c0_78 = arith.constant 0 : index
    %177 = vector.load %arg3[%c1, %c0_77, %c0_78] : memref<2x1x32xf32, #tpu.memory_space<vmem>>, vector<1x1x32xf32>
    %178 = vector.shape_cast %177 : vector<1x1x32xf32> to vector<1x32xf32>
    %c1_79 = arith.constant 1 : index
    %c0_80 = arith.constant 0 : index
    %c0_81 = arith.constant 0 : index
    %179 = vector.load %arg4[%c1_79, %c0_80, %c0_81] : memref<2x1x32xf32, #tpu.memory_space<vmem>>, vector<1x1x32xf32>
    %180 = vector.shape_cast %179 : vector<1x1x32xf32> to vector<1x32xf32>
    %cst_82 = arith.constant dense<0.000000e+00> : vector<64xf32>
    %181 = vector.multi_reduction <add>, %176, %cst_82 [1] : vector<64x32xf32> to vector<64xf32>
    %182 = vector.shape_cast %181 : vector<64xf32> to vector<64x1xf32>
    %cst_83 = arith.constant 3.200000e+01 : f32
    %183 = vector.broadcast %cst_83 : f32 to vector<64x1xf32>
    %184 = arith.divf %182, %183 : vector<64x1xf32>
    %185 = vector.broadcast %184 : vector<64x1xf32> to vector<64x32xf32>
    %186 = arith.subf %176, %185 : vector<64x32xf32>
    %187 = arith.mulf %186, %186 : vector<64x32xf32>
    %cst_84 = arith.constant dense<0.000000e+00> : vector<64xf32>
    %188 = vector.multi_reduction <add>, %187, %cst_84 [1] : vector<64x32xf32> to vector<64xf32>
    %189 = vector.shape_cast %188 : vector<64xf32> to vector<64x1xf32>
    %cst_85 = arith.constant 3.200000e+01 : f32
    %190 = vector.broadcast %cst_85 : f32 to vector<64x1xf32>
    %191 = arith.divf %189, %190 : vector<64x1xf32>
    %192 = vector.broadcast %184 : vector<64x1xf32> to vector<64x32xf32>
    %193 = arith.subf %176, %192 : vector<64x32xf32>
    %cst_86 = arith.constant 9.99999974E-6 : f32
    %194 = vector.broadcast %cst_86 : f32 to vector<64x1xf32>
    %195 = arith.addf %191, %194 : vector<64x1xf32>
    %196 = math.rsqrt %195 : vector<64x1xf32>
    %197 = vector.broadcast %196 : vector<64x1xf32> to vector<64x32xf32>
    %198 = arith.mulf %193, %197 : vector<64x32xf32>
    %199 = vector.broadcast %178 : vector<1x32xf32> to vector<64x32xf32>
    %200 = arith.mulf %198, %199 : vector<64x32xf32>
    %201 = vector.broadcast %180 : vector<1x32xf32> to vector<64x32xf32>
    %202 = arith.addf %200, %201 : vector<64x32xf32>
    %203 = arith.truncf %202 : vector<64x32xf32> to vector<64x32xbf16>
    %c1_87 = arith.constant 1 : index
    %c0_88 = arith.constant 0 : index
    %c0_89 = arith.constant 0 : index
    %204 = vector.load %arg5[%c1_87, %c0_88, %c0_89] : memref<2x32x96xbf16, #tpu.memory_space<vmem>>, vector<1x32x96xbf16>
    %205 = vector.shape_cast %204 : vector<1x32x96xbf16> to vector<32x96xbf16>
    %cst_90 = arith.constant dense<0.000000e+00> : vector<64x96xf32>
    %206 = tpu.matmul %203, %205, %cst_90 {dimension_numbers = #tpu.dot_dimension_numbers<[1], [0], [0], [1], [0, 0, 1, 1], [], []>} : vector<64x32xbf16>, vector<32x96xbf16>, vector<64x96xf32> -> vector<64x96xf32>
    %c1_91 = arith.constant 1 : index
    %c0_92 = arith.constant 0 : index
    %c0_93 = arith.constant 0 : index
    %207 = vector.load %arg6[%c1_91, %c0_92, %c0_93] : memref<2x1x96xf32, #tpu.memory_space<vmem>>, vector<1x1x96xf32>
    %208 = vector.shape_cast %207 : vector<1x1x96xf32> to vector<1x96xf32>
    %209 = vector.broadcast %208 : vector<1x96xf32> to vector<64x96xf32>
    %210 = arith.addf %206, %209 : vector<64x96xf32>
    %211 = vector.extract_strided_slice %210 {offsets = [0, 0], sizes = [64, 8], strides = [1, 1]} : vector<64x96xf32> to vector<64x8xf32>
    %212 = vector.extract_strided_slice %210 {offsets = [0, 32], sizes = [64, 8], strides = [1, 1]} : vector<64x96xf32> to vector<64x8xf32>
    %213 = vector.extract_strided_slice %210 {offsets = [0, 64], sizes = [64, 8], strides = [1, 1]} : vector<64x96xf32> to vector<64x8xf32>
    %cst_94 = arith.constant dense<0.000000e+00> : vector<64x64xf32>
    %214 = tpu.matmul %211, %212, %cst_94 {dimension_numbers = #tpu.dot_dimension_numbers<[1], [1], [0], [0], [0, 0, 1, 0], [], []>} : vector<64x8xf32>, vector<64x8xf32>, vector<64x64xf32> -> vector<64x64xf32>
    %215 = arith.addf %214, %8 : vector<64x64xf32>
    %cst_95 = arith.constant dense<0xFF800000> : vector<64xf32>
    %216 = vector.multi_reduction <maximumf>, %215, %cst_95 [1] : vector<64x64xf32> to vector<64xf32>
    %cst_96 = arith.constant 0xFF800000 : f32
    %217 = vector.broadcast %cst_96 : f32 to vector<64xf32>
    %218 = arith.maximumf %217, %216 : vector<64xf32>
    %219 = vector.shape_cast %218 : vector<64xf32> to vector<64x1xf32>
    %220 = vector.broadcast %219 : vector<64x1xf32> to vector<64x64xf32>
    %221 = arith.subf %215, %220 : vector<64x64xf32>
    %222 = math.exp %221 : vector<64x64xf32>
    %cst_97 = arith.constant dense<0.000000e+00> : vector<64xf32>
    %223 = vector.multi_reduction <add>, %222, %cst_97 [1] : vector<64x64xf32> to vector<64xf32>
    %224 = vector.shape_cast %223 : vector<64xf32> to vector<64x1xf32>
    %225 = vector.broadcast %224 : vector<64x1xf32> to vector<64x64xf32>
    %226 = arith.divf %222, %225 : vector<64x64xf32>
    %cst_98 = arith.constant dense<0.000000e+00> : vector<64x8xf32>
    %227 = tpu.matmul %226, %213, %cst_98 {dimension_numbers = #tpu.dot_dimension_numbers<[1], [0], [0], [1], [0, 0, 1, 1], [], []>} : vector<64x64xf32>, vector<64x8xf32>, vector<64x8xf32> -> vector<64x8xf32>
    %228 = vector.extract_strided_slice %210 {offsets = [0, 8], sizes = [64, 8], strides = [1, 1]} : vector<64x96xf32> to vector<64x8xf32>
    %229 = vector.extract_strided_slice %210 {offsets = [0, 40], sizes = [64, 8], strides = [1, 1]} : vector<64x96xf32> to vector<64x8xf32>
    %230 = vector.extract_strided_slice %210 {offsets = [0, 72], sizes = [64, 8], strides = [1, 1]} : vector<64x96xf32> to vector<64x8xf32>
    %cst_99 = arith.constant dense<0.000000e+00> : vector<64x64xf32>
    %231 = tpu.matmul %228, %229, %cst_99 {dimension_numbers = #tpu.dot_dimension_numbers<[1], [1], [0], [0], [0, 0, 1, 0], [], []>} : vector<64x8xf32>, vector<64x8xf32>, vector<64x64xf32> -> vector<64x64xf32>
    %232 = arith.addf %231, %8 : vector<64x64xf32>
    %cst_100 = arith.constant dense<0xFF800000> : vector<64xf32>
    %233 = vector.multi_reduction <maximumf>, %232, %cst_100 [1] : vector<64x64xf32> to vector<64xf32>
    %cst_101 = arith.constant 0xFF800000 : f32
    %234 = vector.broadcast %cst_101 : f32 to vector<64xf32>
    %235 = arith.maximumf %234, %233 : vector<64xf32>
    %236 = vector.shape_cast %235 : vector<64xf32> to vector<64x1xf32>
    %237 = vector.broadcast %236 : vector<64x1xf32> to vector<64x64xf32>
    %238 = arith.subf %232, %237 : vector<64x64xf32>
    %239 = math.exp %238 : vector<64x64xf32>
    %cst_102 = arith.constant dense<0.000000e+00> : vector<64xf32>
    %240 = vector.multi_reduction <add>, %239, %cst_102 [1] : vector<64x64xf32> to vector<64xf32>
    %241 = vector.shape_cast %240 : vector<64xf32> to vector<64x1xf32>
    %242 = vector.broadcast %241 : vector<64x1xf32> to vector<64x64xf32>
    %243 = arith.divf %239, %242 : vector<64x64xf32>
    %cst_103 = arith.constant dense<0.000000e+00> : vector<64x8xf32>
    %244 = tpu.matmul %243, %230, %cst_103 {dimension_numbers = #tpu.dot_dimension_numbers<[1], [0], [0], [1], [0, 0, 1, 1], [], []>} : vector<64x64xf32>, vector<64x8xf32>, vector<64x8xf32> -> vector<64x8xf32>
    %245 = vector.extract_strided_slice %210 {offsets = [0, 16], sizes = [64, 8], strides = [1, 1]} : vector<64x96xf32> to vector<64x8xf32>
    %246 = vector.extract_strided_slice %210 {offsets = [0, 48], sizes = [64, 8], strides = [1, 1]} : vector<64x96xf32> to vector<64x8xf32>
    %247 = vector.extract_strided_slice %210 {offsets = [0, 80], sizes = [64, 8], strides = [1, 1]} : vector<64x96xf32> to vector<64x8xf32>
    %cst_104 = arith.constant dense<0.000000e+00> : vector<64x64xf32>
    %248 = tpu.matmul %245, %246, %cst_104 {dimension_numbers = #tpu.dot_dimension_numbers<[1], [1], [0], [0], [0, 0, 1, 0], [], []>} : vector<64x8xf32>, vector<64x8xf32>, vector<64x64xf32> -> vector<64x64xf32>
    %249 = arith.addf %248, %8 : vector<64x64xf32>
    %cst_105 = arith.constant dense<0xFF800000> : vector<64xf32>
    %250 = vector.multi_reduction <maximumf>, %249, %cst_105 [1] : vector<64x64xf32> to vector<64xf32>
    %cst_106 = arith.constant 0xFF800000 : f32
    %251 = vector.broadcast %cst_106 : f32 to vector<64xf32>
    %252 = arith.maximumf %251, %250 : vector<64xf32>
    %253 = vector.shape_cast %252 : vector<64xf32> to vector<64x1xf32>
    %254 = vector.broadcast %253 : vector<64x1xf32> to vector<64x64xf32>
    %255 = arith.subf %249, %254 : vector<64x64xf32>
    %256 = math.exp %255 : vector<64x64xf32>
    %cst_107 = arith.constant dense<0.000000e+00> : vector<64xf32>
    %257 = vector.multi_reduction <add>, %256, %cst_107 [1] : vector<64x64xf32> to vector<64xf32>
    %258 = vector.shape_cast %257 : vector<64xf32> to vector<64x1xf32>
    %259 = vector.broadcast %258 : vector<64x1xf32> to vector<64x64xf32>
    %260 = arith.divf %256, %259 : vector<64x64xf32>
    %cst_108 = arith.constant dense<0.000000e+00> : vector<64x8xf32>
    %261 = tpu.matmul %260, %247, %cst_108 {dimension_numbers = #tpu.dot_dimension_numbers<[1], [0], [0], [1], [0, 0, 1, 1], [], []>} : vector<64x64xf32>, vector<64x8xf32>, vector<64x8xf32> -> vector<64x8xf32>
    %262 = vector.extract_strided_slice %210 {offsets = [0, 24], sizes = [64, 8], strides = [1, 1]} : vector<64x96xf32> to vector<64x8xf32>
    %263 = vector.extract_strided_slice %210 {offsets = [0, 56], sizes = [64, 8], strides = [1, 1]} : vector<64x96xf32> to vector<64x8xf32>
    %264 = vector.extract_strided_slice %210 {offsets = [0, 88], sizes = [64, 8], strides = [1, 1]} : vector<64x96xf32> to vector<64x8xf32>
    %cst_109 = arith.constant dense<0.000000e+00> : vector<64x64xf32>
    %265 = tpu.matmul %262, %263, %cst_109 {dimension_numbers = #tpu.dot_dimension_numbers<[1], [1], [0], [0], [0, 0, 1, 0], [], []>} : vector<64x8xf32>, vector<64x8xf32>, vector<64x64xf32> -> vector<64x64xf32>
    %266 = arith.addf %265, %8 : vector<64x64xf32>
    %cst_110 = arith.constant dense<0xFF800000> : vector<64xf32>
    %267 = vector.multi_reduction <maximumf>, %266, %cst_110 [1] : vector<64x64xf32> to vector<64xf32>
    %cst_111 = arith.constant 0xFF800000 : f32
    %268 = vector.broadcast %cst_111 : f32 to vector<64xf32>
    %269 = arith.maximumf %268, %267 : vector<64xf32>
    %270 = vector.shape_cast %269 : vector<64xf32> to vector<64x1xf32>
    %271 = vector.broadcast %270 : vector<64x1xf32> to vector<64x64xf32>
    %272 = arith.subf %266, %271 : vector<64x64xf32>
    %273 = math.exp %272 : vector<64x64xf32>
    %cst_112 = arith.constant dense<0.000000e+00> : vector<64xf32>
    %274 = vector.multi_reduction <add>, %273, %cst_112 [1] : vector<64x64xf32> to vector<64xf32>
    %275 = vector.shape_cast %274 : vector<64xf32> to vector<64x1xf32>
    %276 = vector.broadcast %275 : vector<64x1xf32> to vector<64x64xf32>
    %277 = arith.divf %273, %276 : vector<64x64xf32>
    %cst_113 = arith.constant dense<0.000000e+00> : vector<64x8xf32>
    %278 = tpu.matmul %277, %264, %cst_113 {dimension_numbers = #tpu.dot_dimension_numbers<[1], [0], [0], [1], [0, 0, 1, 1], [], []>} : vector<64x64xf32>, vector<64x8xf32>, vector<64x8xf32> -> vector<64x8xf32>
    %279 = tpu.concatenate %227, %244, %261, %278 in 1 : vector<64x8xf32>, vector<64x8xf32>, vector<64x8xf32>, vector<64x8xf32> -> vector<64x32xf32>
    %280 = arith.truncf %279 : vector<64x32xf32> to vector<64x32xbf16>
    %c1_114 = arith.constant 1 : index
    %c0_115 = arith.constant 0 : index
    %c0_116 = arith.constant 0 : index
    %281 = vector.load %arg7[%c1_114, %c0_115, %c0_116] : memref<2x32x32xbf16, #tpu.memory_space<vmem>>, vector<1x32x32xbf16>
    %282 = vector.shape_cast %281 : vector<1x32x32xbf16> to vector<32x32xbf16>
    %cst_117 = arith.constant dense<0.000000e+00> : vector<64x32xf32>
    %283 = tpu.matmul %280, %282, %cst_117 {dimension_numbers = #tpu.dot_dimension_numbers<[1], [0], [0], [1], [0, 0, 1, 1], [], []>} : vector<64x32xbf16>, vector<32x32xbf16>, vector<64x32xf32> -> vector<64x32xf32>
    %c1_118 = arith.constant 1 : index
    %c0_119 = arith.constant 0 : index
    %c0_120 = arith.constant 0 : index
    %284 = vector.load %arg8[%c1_118, %c0_119, %c0_120] : memref<2x1x32xf32, #tpu.memory_space<vmem>>, vector<1x1x32xf32>
    %285 = vector.shape_cast %284 : vector<1x1x32xf32> to vector<1x32xf32>
    %286 = vector.broadcast %285 : vector<1x32xf32> to vector<64x32xf32>
    %287 = arith.addf %283, %286 : vector<64x32xf32>
    %288 = arith.addf %176, %287 : vector<64x32xf32>
    %c1_121 = arith.constant 1 : index
    %c0_122 = arith.constant 0 : index
    %c0_123 = arith.constant 0 : index
    %289 = vector.load %arg9[%c1_121, %c0_122, %c0_123] : memref<2x1x32xf32, #tpu.memory_space<vmem>>, vector<1x1x32xf32>
    %290 = vector.shape_cast %289 : vector<1x1x32xf32> to vector<1x32xf32>
    %c1_124 = arith.constant 1 : index
    %c0_125 = arith.constant 0 : index
    %c0_126 = arith.constant 0 : index
    %291 = vector.load %arg10[%c1_124, %c0_125, %c0_126] : memref<2x1x32xf32, #tpu.memory_space<vmem>>, vector<1x1x32xf32>
    %292 = vector.shape_cast %291 : vector<1x1x32xf32> to vector<1x32xf32>
    %cst_127 = arith.constant dense<0.000000e+00> : vector<64xf32>
    %293 = vector.multi_reduction <add>, %288, %cst_127 [1] : vector<64x32xf32> to vector<64xf32>
    %294 = vector.shape_cast %293 : vector<64xf32> to vector<64x1xf32>
    %cst_128 = arith.constant 3.200000e+01 : f32
    %295 = vector.broadcast %cst_128 : f32 to vector<64x1xf32>
    %296 = arith.divf %294, %295 : vector<64x1xf32>
    %297 = vector.broadcast %296 : vector<64x1xf32> to vector<64x32xf32>
    %298 = arith.subf %288, %297 : vector<64x32xf32>
    %299 = arith.mulf %298, %298 : vector<64x32xf32>
    %cst_129 = arith.constant dense<0.000000e+00> : vector<64xf32>
    %300 = vector.multi_reduction <add>, %299, %cst_129 [1] : vector<64x32xf32> to vector<64xf32>
    %301 = vector.shape_cast %300 : vector<64xf32> to vector<64x1xf32>
    %cst_130 = arith.constant 3.200000e+01 : f32
    %302 = vector.broadcast %cst_130 : f32 to vector<64x1xf32>
    %303 = arith.divf %301, %302 : vector<64x1xf32>
    %304 = vector.broadcast %296 : vector<64x1xf32> to vector<64x32xf32>
    %305 = arith.subf %288, %304 : vector<64x32xf32>
    %cst_131 = arith.constant 9.99999974E-6 : f32
    %306 = vector.broadcast %cst_131 : f32 to vector<64x1xf32>
    %307 = arith.addf %303, %306 : vector<64x1xf32>
    %308 = math.rsqrt %307 : vector<64x1xf32>
    %309 = vector.broadcast %308 : vector<64x1xf32> to vector<64x32xf32>
    %310 = arith.mulf %305, %309 : vector<64x32xf32>
    %311 = vector.broadcast %290 : vector<1x32xf32> to vector<64x32xf32>
    %312 = arith.mulf %310, %311 : vector<64x32xf32>
    %313 = vector.broadcast %292 : vector<1x32xf32> to vector<64x32xf32>
    %314 = arith.addf %312, %313 : vector<64x32xf32>
    %315 = arith.truncf %314 : vector<64x32xf32> to vector<64x32xbf16>
    %c1_132 = arith.constant 1 : index
    %c0_133 = arith.constant 0 : index
    %c0_134 = arith.constant 0 : index
    %316 = vector.load %arg11[%c1_132, %c0_133, %c0_134] : memref<2x32x128xbf16, #tpu.memory_space<vmem>>, vector<1x32x128xbf16>
    %317 = vector.shape_cast %316 : vector<1x32x128xbf16> to vector<32x128xbf16>
    %cst_135 = arith.constant dense<0.000000e+00> : vector<64x128xf32>
    %318 = tpu.matmul %315, %317, %cst_135 {dimension_numbers = #tpu.dot_dimension_numbers<[1], [0], [0], [1], [0, 0, 1, 1], [], []>} : vector<64x32xbf16>, vector<32x128xbf16>, vector<64x128xf32> -> vector<64x128xf32>
    %c1_136 = arith.constant 1 : index
    %c0_137 = arith.constant 0 : index
    %c0_138 = arith.constant 0 : index
    %319 = vector.load %arg12[%c1_136, %c0_137, %c0_138] : memref<2x1x128xf32, #tpu.memory_space<vmem>>, vector<1x1x128xf32>
    %320 = vector.shape_cast %319 : vector<1x1x128xf32> to vector<1x128xf32>
    %321 = vector.broadcast %320 : vector<1x128xf32> to vector<64x128xf32>
    %322 = arith.addf %318, %321 : vector<64x128xf32>
    %323 = arith.mulf %322, %322 : vector<64x128xf32>
    %324 = arith.mulf %322, %323 : vector<64x128xf32>
    %cst_139 = arith.constant 4.471500e-02 : f32
    %325 = vector.broadcast %cst_139 : f32 to vector<64x128xf32>
    %326 = arith.mulf %325, %324 : vector<64x128xf32>
    %327 = arith.addf %322, %326 : vector<64x128xf32>
    %cst_140 = arith.constant 0.797884583 : f32
    %328 = vector.broadcast %cst_140 : f32 to vector<64x128xf32>
    %329 = arith.mulf %328, %327 : vector<64x128xf32>
    %330 = math.tanh %329 : vector<64x128xf32>
    %cst_141 = arith.constant 1.000000e+00 : f32
    %331 = vector.broadcast %cst_141 : f32 to vector<64x128xf32>
    %332 = arith.addf %331, %330 : vector<64x128xf32>
    %cst_142 = arith.constant 5.000000e-01 : f32
    %333 = vector.broadcast %cst_142 : f32 to vector<64x128xf32>
    %334 = arith.mulf %333, %332 : vector<64x128xf32>
    %335 = arith.mulf %322, %334 : vector<64x128xf32>
    %336 = arith.truncf %335 : vector<64x128xf32> to vector<64x128xbf16>
    %c1_143 = arith.constant 1 : index
    %c0_144 = arith.constant 0 : index
    %c0_145 = arith.constant 0 : index
    %337 = vector.load %arg13[%c1_143, %c0_144, %c0_145] : memref<2x128x32xbf16, #tpu.memory_space<vmem>>, vector<1x128x32xbf16>
    %338 = vector.shape_cast %337 : vector<1x128x32xbf16> to vector<128x32xbf16>
    %cst_146 = arith.constant dense<0.000000e+00> : vector<64x32xf32>
    %339 = tpu.matmul %336, %338, %cst_146 {dimension_numbers = #tpu.dot_dimension_numbers<[1], [0], [0], [1], [0, 0, 1, 1], [], []>} : vector<64x128xbf16>, vector<128x32xbf16>, vector<64x32xf32> -> vector<64x32xf32>
    %c1_147 = arith.constant 1 : index
    %c0_148 = arith.constant 0 : index
    %c0_149 = arith.constant 0 : index
    %340 = vector.load %arg14[%c1_147, %c0_148, %c0_149] : memref<2x1x32xf32, #tpu.memory_space<vmem>>, vector<1x1x32xf32>
    %341 = vector.shape_cast %340 : vector<1x1x32xf32> to vector<1x32xf32>
    %342 = vector.broadcast %341 : vector<1x32xf32> to vector<64x32xf32>
    %343 = arith.addf %339, %342 : vector<64x32xf32>
    %344 = arith.addf %288, %343 : vector<64x32xf32>
    %c0_150 = arith.constant 0 : index
    %c0_151 = arith.constant 0 : index
    %345 = vector.load %arg15[%c0_150, %c0_151] : memref<1x32xf32, #tpu.memory_space<vmem>>, vector<1x32xf32>
    %c0_152 = arith.constant 0 : index
    %c0_153 = arith.constant 0 : index
    %346 = vector.load %arg16[%c0_152, %c0_153] : memref<1x32xf32, #tpu.memory_space<vmem>>, vector<1x32xf32>
    %cst_154 = arith.constant dense<0.000000e+00> : vector<64xf32>
    %347 = vector.multi_reduction <add>, %344, %cst_154 [1] : vector<64x32xf32> to vector<64xf32>
    %348 = vector.shape_cast %347 : vector<64xf32> to vector<64x1xf32>
    %cst_155 = arith.constant 3.200000e+01 : f32
    %349 = vector.broadcast %cst_155 : f32 to vector<64x1xf32>
    %350 = arith.divf %348, %349 : vector<64x1xf32>
    %351 = vector.broadcast %350 : vector<64x1xf32> to vector<64x32xf32>
    %352 = arith.subf %344, %351 : vector<64x32xf32>
    %353 = arith.mulf %352, %352 : vector<64x32xf32>
    %cst_156 = arith.constant dense<0.000000e+00> : vector<64xf32>
    %354 = vector.multi_reduction <add>, %353, %cst_156 [1] : vector<64x32xf32> to vector<64xf32>
    %355 = vector.shape_cast %354 : vector<64xf32> to vector<64x1xf32>
    %cst_157 = arith.constant 3.200000e+01 : f32
    %356 = vector.broadcast %cst_157 : f32 to vector<64x1xf32>
    %357 = arith.divf %355, %356 : vector<64x1xf32>
    %358 = vector.broadcast %350 : vector<64x1xf32> to vector<64x32xf32>
    %359 = arith.subf %344, %358 : vector<64x32xf32>
    %cst_158 = arith.constant 9.99999974E-6 : f32
    %360 = vector.broadcast %cst_158 : f32 to vector<64x1xf32>
    %361 = arith.addf %357, %360 : vector<64x1xf32>
    %362 = math.rsqrt %361 : vector<64x1xf32>
    %363 = vector.broadcast %362 : vector<64x1xf32> to vector<64x32xf32>
    %364 = arith.mulf %359, %363 : vector<64x32xf32>
    %365 = vector.broadcast %345 : vector<1x32xf32> to vector<64x32xf32>
    %366 = arith.mulf %364, %365 : vector<64x32xf32>
    %367 = vector.broadcast %346 : vector<1x32xf32> to vector<64x32xf32>
    %368 = arith.addf %366, %367 : vector<64x32xf32>
    %c0_159 = arith.constant 0 : index
    %c0_160 = arith.constant 0 : index
    %369 = vector.load %arg17[%c0_159, %c0_160] : memref<32x2xf32, #tpu.memory_space<vmem>>, vector<32x2xf32>
    %cst_161 = arith.constant dense<0.000000e+00> : vector<64x2xf32>
    %370 = tpu.matmul %368, %369, %cst_161 {dimension_numbers = #tpu.dot_dimension_numbers<[1], [0], [0], [1], [0, 0, 1, 1], [], []>} : vector<64x32xf32>, vector<32x2xf32>, vector<64x2xf32> -> vector<64x2xf32>
    %c0_162 = arith.constant 0 : index
    %c0_163 = arith.constant 0 : index
    %371 = vector.load %arg18[%c0_162, %c0_163] : memref<1x2xf32, #tpu.memory_space<vmem>>, vector<1x2xf32>
    %372 = vector.broadcast %371 : vector<1x2xf32> to vector<64x2xf32>
    %373 = arith.addf %370, %372 : vector<64x2xf32>
    %374 = tpu.iota {dimensions = array<i32: 1>} : vector<64x2xi32>
    %c0_164 = arith.constant 0 : index
    %c0_165 = arith.constant 0 : index
    %c0_166 = arith.constant 0 : index
    %375 = vector.load %arg2[%c0_164, %c0_165, %c0_166] : memref<1x64x1xi32, #tpu.memory_space<vmem>>, vector<1x64x1xi32>
    %376 = vector.shape_cast %375 : vector<1x64x1xi32> to vector<64x1xi32>
    %377 = vector.broadcast %376 : vector<64x1xi32> to vector<64x2xi32>
    %378 = arith.cmpi eq, %374, %377 : vector<64x2xi32>
    %379 = arith.extui %378 : vector<64x2xi1> to vector<64x2xi32>
    %380 = arith.sitofp %379 : vector<64x2xi32> to vector<64x2xf32>
    %cst_167 = arith.constant dense<0xFF800000> : vector<64xf32>
    %381 = vector.multi_reduction <maximumf>, %373, %cst_167 [1] : vector<64x2xf32> to vector<64xf32>
    %382 = vector.shape_cast %381 : vector<64xf32> to vector<64x1xf32>
    %383 = vector.broadcast %382 : vector<64x1xf32> to vector<64x2xf32>
    %384 = arith.subf %373, %383 : vector<64x2xf32>
    %385 = math.exp %384 : vector<64x2xf32>
    %cst_168 = arith.constant dense<0.000000e+00> : vector<64xf32>
    %386 = vector.multi_reduction <add>, %385, %cst_168 [1] : vector<64x2xf32> to vector<64xf32>
    %387 = vector.shape_cast %386 : vector<64xf32> to vector<64x1xf32>
    %388 = math.log %387 : vector<64x1xf32>
    %389 = arith.addf %382, %388 : vector<64x1xf32>
    %390 = arith.mulf %380, %373 : vector<64x2xf32>
    %cst_169 = arith.constant dense<0.000000e+00> : vector<64xf32>
    %391 = vector.multi_reduction <add>, %390, %cst_169 [1] : vector<64x2xf32> to vector<64xf32>
    %392 = vector.shape_cast %391 : vector<64xf32> to vector<64x1xf32>
    %393 = arith.subf %389, %392 : vector<64x1xf32>
    %394 = vector.shape_cast %393 : vector<64x1xf32> to vector<1x64x1xf32>
    %cst_170 = arith.constant dense<0.000000e+00> : vector<1xf32>
    %395 = vector.multi_reduction <add>, %394, %cst_170 [1, 2] : vector<1x64x1xf32> to vector<1xf32>
    %396 = vector.shape_cast %395 : vector<1xf32> to vector<1x1x1xf32>
    %397 = vector.extract %396[0, 0, 0] : f32 from vector<1x1x1xf32>
    %cst_171 = arith.constant 6.400000e+01 : f32
    %398 = arith.divf %397, %cst_171 : f32
    %399 = vector.broadcast %398 : f32 to vector<8x128xf32>
    %c0_172 = arith.constant 0 : index
    %c0_173 = arith.constant 0 : index
    %c0_174 = arith.constant 0 : index
    %400 = vector.load %arg19[%c0_172, %c0_173, %c0_174] : memref<1x8x128xf32, #tpu.memory_space<vmem>>, vector<1x8x128xf32>
    %401 = vector.shape_cast %400 : vector<1x8x128xf32> to vector<8x128xf32>
    %402 = vector.shape_cast %399 : vector<8x128xf32> to vector<1x8x128xf32>
    tpu.vector_store %arg19[%c0_172, %c0_173, %c0_174], %402 {strides = array<i32>} : memref<1x8x128xf32, #tpu.memory_space<vmem>>, vector<1x8x128xf32>,
    return
  }
  func.func @transform_0(%arg0: i32) -> (i32, i32, i32) {
    %c0_i32 = arith.constant 0 : i32
    %c0_i32_0 = arith.constant 0 : i32
    %c0_i32_1 = arith.constant 0 : i32
    return %arg0, %c0_i32, %c0_i32_0 : i32, i32, i32
  }
  func.func @transform_1(%arg0: i32) -> (i32, i32, i32) {
    %c0_i32 = arith.constant 0 : i32
    %c0_i32_0 = arith.constant 0 : i32
    %c0_i32_1 = arith.constant 0 : i32
    return %arg0, %c0_i32, %c0_i32_0 : i32, i32, i32
  }
  func.func @transform_2(%arg0: i32) -> (i32, i32, i32) {
    %c0_i32 = arith.constant 0 : i32
    %c0_i32_0 = arith.constant 0 : i32
    %c0_i32_1 = arith.constant 0 : i32
    %c0_i32_2 = arith.constant 0 : i32
    return %c0_i32, %c0_i32_0, %c0_i32_1 : i32, i32, i32
  }
  func.func @transform_3(%arg0: i32) -> (i32, i32, i32) {
    %c0_i32 = arith.constant 0 : i32
    %c0_i32_0 = arith.constant 0 : i32
    %c0_i32_1 = arith.constant 0 : i32
    %c0_i32_2 = arith.constant 0 : i32
    return %c0_i32, %c0_i32_0, %c0_i32_1 : i32, i32, i32
  }
  func.func @transform_4(%arg0: i32) -> (i32, i32, i32) {
    %c0_i32 = arith.constant 0 : i32
    %c0_i32_0 = arith.constant 0 : i32
    %c0_i32_1 = arith.constant 0 : i32
    %c0_i32_2 = arith.constant 0 : i32
    return %c0_i32, %c0_i32_0, %c0_i32_1 : i32, i32, i32
  }
  func.func @transform_5(%arg0: i32) -> (i32, i32, i32) {
    %c0_i32 = arith.constant 0 : i32
    %c0_i32_0 = arith.constant 0 : i32
    %c0_i32_1 = arith.constant 0 : i32
    %c0_i32_2 = arith.constant 0 : i32
    return %c0_i32, %c0_i32_0, %c0_i32_1 : i32, i32, i32
  }
  func.func @transform_6(%arg0: i32) -> (i32, i32, i32) {
    %c0_i32 = arith.constant 0 : i32
    %c0_i32_0 = arith.constant 0 : i32
    %c0_i32_1 = arith.constant 0 : i32
    %c0_i32_2 = arith.constant 0 : i32
    return %c0_i32, %c0_i32_0, %c0_i32_1 : i32, i32, i32
  }
  func.func @transform_7(%arg0: i32) -> (i32, i32, i32) {
    %c0_i32 = arith.constant 0 : i32
    %c0_i32_0 = arith.constant 0 : i32
    %c0_i32_1 = arith.constant 0 : i32
    %c0_i32_2 = arith.constant 0 : i32
    return %c0_i32, %c0_i32_0, %c0_i32_1 : i32, i32, i32
  }
  func.func @transform_8(%arg0: i32) -> (i32, i32, i32) {
    %c0_i32 = arith.constant 0 : i32
    %c0_i32_0 = arith.constant 0 : i32
    %c0_i32_1 = arith.constant 0 : i32
    %c0_i32_2 = arith.constant 0 : i32
    return %c0_i32, %c0_i32_0, %c0_i32_1 : i32, i32, i32
  }
  func.func @transform_9(%arg0: i32) -> (i32, i32, i32) {
    %c0_i32 = arith.constant 0 : i32
    %c0_i32_0 = arith.constant 0 : i32
    %c0_i32_1 = arith.constant 0 : i32
    %c0_i32_2 = arith.constant 0 : i32
    return %c0_i32, %c0_i32_0, %c0_i32_1 : i32, i32, i32
  }
  func.func @transform_10(%arg0: i32) -> (i32, i32, i32) {
    %c0_i32 = arith.constant 0 : i32
    %c0_i32_0 = arith.constant 0 : i32
    %c0_i32_1 = arith.constant 0 : i32
    %c0_i32_2 = arith.constant 0 : i32
    return %c0_i32, %c0_i32_0, %c0_i32_1 : i32, i32, i32
  }
  func.func @transform_11(%arg0: i32) -> (i32, i32, i32) {
    %c0_i32 = arith.constant 0 : i32
    %c0_i32_0 = arith.constant 0 : i32
    %c0_i32_1 = arith.constant 0 : i32
    %c0_i32_2 = arith.constant 0 : i32
    return %c0_i32, %c0_i32_0, %c0_i32_1 : i32, i32, i32
  }
  func.func @transform_12(%arg0: i32) -> (i32, i32, i32) {
    %c0_i32 = arith.constant 0 : i32
    %c0_i32_0 = arith.constant 0 : i32
    %c0_i32_1 = arith.constant 0 : i32
    %c0_i32_2 = arith.constant 0 : i32
    return %c0_i32, %c0_i32_0, %c0_i32_1 : i32, i32, i32
  }
  func.func @transform_13(%arg0: i32) -> (i32, i32, i32) {
    %c0_i32 = arith.constant 0 : i32
    %c0_i32_0 = arith.constant 0 : i32
    %c0_i32_1 = arith.constant 0 : i32
    %c0_i32_2 = arith.constant 0 : i32
    return %c0_i32, %c0_i32_0, %c0_i32_1 : i32, i32, i32
  }
  func.func @transform_14(%arg0: i32) -> (i32, i32) {
    %c0_i32 = arith.constant 0 : i32
    %c0_i32_0 = arith.constant 0 : i32
    %c0_i32_1 = arith.constant 0 : i32
    return %c0_i32, %c0_i32_0 : i32, i32
  }
  func.func @transform_15(%arg0: i32) -> (i32, i32) {
    %c0_i32 = arith.constant 0 : i32
    %c0_i32_0 = arith.constant 0 : i32
    %c0_i32_1 = arith.constant 0 : i32
    return %c0_i32, %c0_i32_0 : i32, i32
  }
  func.func @transform_16(%arg0: i32) -> (i32, i32) {
    %c0_i32 = arith.constant 0 : i32
    %c0_i32_0 = arith.constant 0 : i32
    %c0_i32_1 = arith.constant 0 : i32
    return %c0_i32, %c0_i32_0 : i32, i32
  }
  func.func @transform_17(%arg0: i32) -> (i32, i32) {
    %c0_i32 = arith.constant 0 : i32
    %c0_i32_0 = arith.constant 0 : i32
    %c0_i32_1 = arith.constant 0 : i32
    return %c0_i32, %c0_i32_0 : i32, i32
  }
  func.func @transform_18(%arg0: i32) -> (i32, i32, i32) {
    %c0_i32 = arith.constant 0 : i32
    %c0_i32_0 = arith.constant 0 : i32
    %c0_i32_1 = arith.constant 0 : i32
    return %arg0, %c0_i32, %c0_i32_0 : i32, i32, i32
  }
}

</mosaic_0001>

<bundles_post_ra>
// kernel: gpt_forward.1
= control target key start
LH: loop header
LB: loop body
LE: loop exit
PB: predicated region body
PF: predicated region fallthrough
CT: control target
= control target key end

     0   :  { %s8299_s27 = smov 0   ;;  %s10559_s0 = inlined_call_operand.vmem [shape: bf16[2,64,32], index: 0, kind: input, shape index: {}]   ;;  %s10560_s1 = inlined_call_operand.vmem [shape: s32[2,64,1], index: 1, kind: input, shape index: {}]   ;;  %s10561_s2 = inlined_call_operand.vmem [shape: f32[2,1,32], index: 2, kind: input, shape index: {}]   ;;  %s10562_s3 = inlined_call_operand.vmem [shape: f32[2,1,32], index: 3, kind: input, shape index: {}]   ;;  %s10563_s4 = inlined_call_operand.vmem [shape: bf16[2,32,96], index: 4, kind: input, shape index: {}]   ;;  %s10564_s5 = inlined_call_operand.vmem [shape: f32[2,1,96], index: 5, kind: input, shape index: {}]   ;;  %s10565_s6 = inlined_call_operand.vmem [shape: bf16[2,32,32], index: 6, kind: input, shape index: {}]   ;;  %s10566_s7 = inlined_call_operand.vmem [shape: f32[2,1,32], index: 7, kind: input, shape index: {}]   ;;  %s10567_s8 = inlined_call_operand.vmem [shape: f32[2,1,32], index: 8, kind: input, shape index: {}]   ;;  %s10568_s9 = inlined_call_operand.vmem [shape: f32[2,1,32], index: 9, kind: input, shape index: {}]   ;;  %s10569_s10 = inlined_call_operand.vmem [shape: bf16[2,32,128], index: 10, kind: input, shape index: {}]   ;;  %s10570_s11 = inlined_call_operand.vmem [shape: f32[2,1,128], index: 11, kind: input, shape index: {}]   ;;  %s10571_s12 = inlined_call_operand.vmem [shape: bf16[2,128,32], index: 12, kind: input, shape index: {}]   ;;  %s10572_s13 = inlined_call_operand.vmem [shape: f32[2,1,32], index: 13, kind: input, shape index: {}]   ;;  %s10573_s14 = inlined_call_operand.vmem [shape: f32[1,32], index: 14, kind: input, shape index: {}]   ;;  %s10574_s15 = inlined_call_operand.vmem [shape: f32[1,32], index: 15, kind: input, shape index: {}]   ;;  %s10575_s16 = inlined_call_operand.vmem [shape: f32[32,2], index: 16, kind: input, shape index: {}]   ;;  %s10576_s17 = inlined_call_operand.vmem [shape: f32[1,2], index: 17, kind: input, shape index: {}]   ;;  %s10577_s18 = inlined_call_operand.vmem [shape: f32[2,8,128], index: 18, kind: output, shape index: {}]  }
   0x1   :  { %10609 = sst [smem:[#allocation7_spill]] %s10559_s0 }
   0x2   :  { %10610 = sst [smem:[#allocation8_spill]] %s10560_s1 }
   0x3   :  { %10611 = sst [smem:[#allocation9_spill]] %s10561_s2 }
   0x4 LB: > { %s6338_s28 = sadd.s32 4294967295, %s8185_s27   ;;  %p6342_p0 = scmp.ge.s32.totalorder %s8185_s27, 1  ;;  %s8185_s27 = sphi %s8299_s27, %s28_s27  }
   0x5   : > { %p522_p1 = scmp.lt.s32.totalorder %s8185_s27, 3 }
   0x7   : > { %p523_p2 = pnand %p6342_p0, %p522_p1 }
   0x9   : > { %526 = sbr.rel (%p523_p2) target bundleno = 9442 (0x24e2), region = 92 }
   0xe   : > { %p580_p3 = scmp.lt.s32.totalorder %s6338_s28, 1  ;;  %s10612_s19 = sld [smem:[#allocation7_spill]]  ;;  %vm640_vm0 = vcmask 261120   ;;  %v7751_v60 = vld [vmem:[%s10563_s4 + $0x8] sm:$0xff]   ;;  %v7752_v61 = vld [vmem:[%s10563_s4] sm:$0xff]   ;;  %vm902_vm1 = vcmask 64512  }
   0xf   : > { %7014 = vmatprep.subr.bf16.mxu0 %v7751_v60  ;;  %s10617_s25 = sld [smem:[#allocation9_spill]]  ;;  %s8189_s20 = smov 88   ;;  %vm1040_vm5 = vcmask 523264   ;;  %vm2616_vm11 = vcmask 130048   ;;  %vm2625_vm12 = vcmask 195584   ;;  %vm6106_vm13 = vcmask 15360  }
  0x10   : > { %s10655_s28 = smov (!%p580_p3, %s6338_s28), 1  ;;  %7015 = vmatpush3.bf16.msra.mxu0 %v7751_v60  ;;  %s8191_s21 = smov 120  }
  0x11   : > { %s6665_s29 = sshll.u32 %s10655_s28, 5  ;;  %7016 = vmatprep.subr.bf16.mxu0 %v7752_v61  ;;  %s10603_s22 = smov 56  }
  0x12   : > { %s10601_s2 = smov 80   ;;  %s10595_s23 = smov 112  }
  0x13   : > { %s10593_s24 = smov 48   ;;  %s10591_s26 = smov 72  }
  0x14   : > { %s584_s1 = scalar_lea.vmem %s10612_s19, %s6665_s29  ;;  %7017 = vmatpush3.bf16.msra.mxu0 %v7752_v61  ;;  %s8187_s19 = smov 96  }
  0x15   : > { %v6668_v0 = vld [vmem:[%s584_s1] sm:$0xff]   ;;  %v6683_v1 = vld [vmem:[%s584_s1 + $0x8] sm:$0xff]   ;;  %v6684_v2 = vld [vmem:[%s584_s1 + $0x10] sm:$0xff]   ;;  %s10585_s29 = smov 104   ;;  %s10589_s30 = smov 40  }
  0x16   : > { %v8313_v3 = vunpack.c.l.bf16 %v6668_v0  ;;  %v8315_v4 = vunpack.c.l.bf16 %v6683_v1  ;;  %v8317_v5 = vunpack.c.h.bf16 %v6668_v0  ;;  %v8319_v6 = vunpack.c.h.bf16 %v6683_v1  ;;  %v6685_v7 = vld [vmem:[%s584_s1 + $0x18] sm:$0xff]   ;;  %s8188_s1 = smov 64   ;;  %s10587_s0 = smov 8  }
  0x17   : > { %v8321_v8 = vunpack.c.l.bf16 %v6684_v2  ;;  %v8323_v9 = vunpack.c.h.bf16 %v6684_v2  ;;  %v8325_v10 = vunpack.c.l.bf16 %v6685_v7  ;;  %v8327_v11 = vunpack.c.h.bf16 %v6685_v7 }
  0x18   : > { %v641_v12 = vsel %vm640_vm0, %v8313_v3, 0.0  ;;  %v647_v13 = vsel %vm640_vm0, %v8315_v4, 0.0  ;;  %v644_v14 = vsel %vm640_vm0, %v8317_v5, 0.0  ;;  %v650_v15 = vsel %vm640_vm0, %v8319_v6, 0.0 }
  0x19   : > { %10613 = vst [vmem:[#allocation2_spill] sm:$0xff] %v8321_v8  ;;  %10614 = vst [vmem:[#allocation3_spill] sm:$0xff] %v8323_v9  ;;  %642 = vadd.xlane.f32.xlu0 %v641_v12  ;;  %648 = vadd.xlane.f32.xlu1 %v647_v13  ;;  %v653_v16 = vsel %vm640_vm0, %v8321_v8, 0.0  ;;  %v656_v17 = vsel %vm640_vm0, %v8323_v9, 0.0  ;;  %v659_v18 = vsel %vm640_vm0, %v8325_v10, 0.0  ;;  %v662_v19 = vsel %vm640_vm0, %v8327_v11, 0.0 }
  0x1a   : > { %10615 = vst [vmem:[#allocation4_spill] sm:$0xff] %v8325_v10  ;;  %10616 = vst [vmem:[#allocation5_spill] sm:$0xff] %v8327_v11 }
  0x1d   : > { %645 = vadd.xlane.f32.xlu0 %v644_v14  ;;  %651 = vadd.xlane.f32.xlu1 %v650_v15 }
  0x21   : > { %654 = vadd.xlane.f32.xlu0 %v653_v16  ;;  %657 = vadd.xlane.f32.xlu1 %v656_v17 }
  0x25   : > { %660 = vadd.xlane.f32.xlu0 %v659_v18  ;;  %663 = vadd.xlane.f32.xlu1 %v662_v19 }
  0xa2   : > { %v643_v20 = vpop.xlane.xlu0 %642  ;;  %v649_v21 = vpop.xlane.xlu1 %648 }
  0xa3   : > { %v666_v22 = vmul.f32 0.03125, %v643_v20  ;;  %v668_v23 = vmul.f32 0.03125, %v649_v21 }
  0xa5   : > { %v8346_v24 = vsub.f32 %v8313_v3, %v666_v22  ;;  %v8349_v25 = vsub.f32 %v8315_v4, %v668_v23 }
  0xa6   : > { %v646_v26 = vpop.xlane.xlu0 %645  ;;  %v652_v27 = vpop.xlane.xlu1 %651 }
  0xa7   : > { %v667_v28 = vmul.f32 0.03125, %v646_v26  ;;  %v669_v29 = vmul.f32 0.03125, %v652_v27  ;;  %v682_v30 = vmul.f32 %v8346_v24, %v8346_v24  ;;  %v684_v31 = vmul.f32 %v8349_v25, %v8349_v25 }
  0xa9   : > { %v8356_v32 = vsub.f32 %v8317_v5, %v667_v28  ;;  %v8359_v33 = vsub.f32 %v8319_v6, %v669_v29  ;;  %v690_v34 = vsel %vm640_vm0, %v682_v30, 0.0  ;;  %v696_v37 = vsel %vm640_vm0, %v684_v31, 0.0 }
  0xaa   : > { %691 = vadd.xlane.f32.xlu0 %v690_v34  ;;  %v655_v35 = vpop.xlane.xlu0 %654  ;;  %v658_v36 = vpop.xlane.xlu1 %657 }
  0xab   : > { %v670_v38 = vmul.f32 0.03125, %v655_v35  ;;  %v671_v39 = vmul.f32 0.03125, %v658_v36  ;;  %v683_v40 = vmul.f32 %v8356_v32, %v8356_v32  ;;  %v685_v41 = vmul.f32 %v8359_v33, %v8359_v33  ;;  %v6348_v36 = vld [vmem:[%s10617_s25] ss:$0 sm:$0xff] }
  0xad   : > { %v8368_v42 = vsub.f32 %v8321_v8, %v670_v38  ;;  %v8371_v43 = vsub.f32 %v8323_v9, %v671_v39  ;;  %v693_v44 = vsel %vm640_vm0, %v683_v40, 0.0  ;;  %v699_v47 = vsel %vm640_vm0, %v685_v41, 0.0  ;;  %v6349_v41 = vld [vmem:[%s10562_s3] ss:$0 sm:$0xff] }
  0xae   : > { %697 = vadd.xlane.f32.xlu0 %v696_v37  ;;  %694 = vadd.xlane.f32.xlu1 %v693_v44  ;;  %v661_v45 = vpop.xlane.xlu0 %660  ;;  %v664_v46 = vpop.xlane.xlu1 %663 }
  0xaf   : > { %v672_v48 = vmul.f32 0.03125, %v661_v45  ;;  %v673_v49 = vmul.f32 0.03125, %v664_v46  ;;  %v686_v50 = vmul.f32 %v8368_v42, %v8368_v42  ;;  %v687_v51 = vmul.f32 %v8371_v43, %v8371_v43 }
  0xb1   : > { %v8380_v52 = vsub.f32 %v8325_v10, %v672_v48  ;;  %v8383_v53 = vsub.f32 %v8327_v11, %v673_v49  ;;  %v702_v54 = vsel %vm640_vm0, %v686_v50, 0.0  ;;  %v705_v55 = vsel %vm640_vm0, %v687_v51, 0.0 }
  0xb2   : > { %700 = vadd.xlane.f32.xlu1 %v699_v47  ;;  %703 = vadd.xlane.f32.xlu0 %v702_v54 }
  0xb3   : > { %v688_v56 = vmul.f32 %v8380_v52, %v8380_v52  ;;  %v689_v57 = vmul.f32 %v8383_v53, %v8383_v53 }
  0xb5   : > { %v708_v58 = vsel %vm640_vm0, %v688_v56, 0.0  ;;  %v711_v59 = vsel %vm640_vm0, %v689_v57, 0.0 }
  0xb6   : > { %706 = vadd.xlane.f32.xlu1 %v705_v55  ;;  %709 = vadd.xlane.f32.xlu0 %v708_v58 }
  0xba   : > { %712 = vadd.xlane.f32.xlu1 %v711_v59 }
 0x133   : > { %v692_v62 = vpop.xlane.xlu0 %691 }
 0x134   : > { %v714_v63 = vmul.f32 0.03125, %v692_v62 }
 0x136   : > { %v722_v0 = vadd.f32 1e-05, %v714_v63 }
 0x137   : > { %v695_v1 = vpop.xlane.xlu1 %694  ;;  %v698_v2 = vpop.xlane.xlu0 %697 }
 0x138   : > { %7779 = vrsqrt.f32 %v722_v0  ;;  %v715_v7 = vmul.f32 0.03125, %v695_v1  ;;  %v716_v12 = vmul.f32 0.03125, %v698_v2 }
 0x13a   : > { %v723_v13 = vadd.f32 1e-05, %v715_v7  ;;  %v724_v14 = vadd.f32 1e-05, %v716_v12 }
 0x13b   : > { %v701_v15 = vpop.xlane.xlu1 %700  ;;  %v704_v16 = vpop.xlane.xlu0 %703 }
 0x13c   : > { %7781 = vrsqrt.f32 %v723_v13  ;;  %v717_v17 = vmul.f32 0.03125, %v701_v15  ;;  %v718_v18 = vmul.f32 0.03125, %v704_v16 }
 0x13d   : > { %7783 = vrsqrt.f32 %v724_v14  ;;  %v6350_v14 = vld [vmem:[%s10564_s5] ss:$0 sm:$0xff] }
 0x13e   : > { %v725_v19 = vadd.f32 1e-05, %v717_v17  ;;  %v726_v20 = vadd.f32 1e-05, %v718_v18 }
 0x13f   : > { %v707_v21 = vpop.xlane.xlu1 %706  ;;  %v710_v22 = vpop.xlane.xlu0 %709 }
 0x140   : > { %7785 = vrsqrt.f32 %v725_v19  ;;  %v719_v23 = vmul.f32 0.03125, %v707_v21  ;;  %v720_v26 = vmul.f32 0.03125, %v710_v22 }
 0x141   : > { %7787 = vrsqrt.f32 %v726_v20 }
 0x142   : > { %v727_v27 = vadd.f32 1e-05, %v719_v23  ;;  %v728_v28 = vadd.f32 1e-05, %v720_v26 }
 0x143   : > { %v713_v29 = vpop.xlane.xlu1 %712 }
 0x144   : > { %7789 = vrsqrt.f32 %v727_v27  ;;  %v721_v30 = vmul.f32 0.03125, %v713_v29 }
 0x145   : > { %v7780_v31 = vpop.eup %7779  ;;  %7791 = vrsqrt.f32 %v728_v28 }
 0x146   : > { %v729_v34 = vadd.f32 1e-05, %v721_v30  ;;  %v738_v35 = vmul.f32 %v7780_v31, %v8346_v24 }
 0x148   : > { %7793 = vrsqrt.f32 %v729_v34  ;;  %v752_v40 = vmul.f32 %v6348_v36, %v738_v35 }
 0x149   : > { %v7782_v37 = vpop.eup %7781 }
 0x14a   : > { %v7784_v38 = vpop.eup %7783  ;;  %v739_v39 = vmul.f32 %v7782_v37, %v8356_v32  ;;  %v766_v24 = vadd.f32 %v6349_v41, %v752_v40 }
 0x14b   : > { %v740_v44 = vmul.f32 %v7784_v38, %v8349_v25 }
 0x14c   : > { %v753_v45 = vmul.f32 %v6348_v36, %v739_v39 }
 0x14d   : > { %v7786_v46 = vpop.eup %7785  ;;  %v754_v50 = vmul.f32 %v6348_v36, %v740_v44 }
 0x14e   : > { %v7788_v47 = vpop.eup %7787  ;;  %v767_v48 = vadd.f32 %v6349_v41, %v753_v45  ;;  %v741_v49 = vmul.f32 %v7786_v46, %v8359_v33 }
 0x14f   : > { %v742_v51 = vmul.f32 %v7788_v47, %v8368_v42  ;;  %v768_v57 = vadd.f32 %v6349_v41, %v754_v50 }
 0x150   : > { %v774_v54 = vpack.c.bf16 %v767_v48, %v766_v24  ;;  %v755_v55 = vmul.f32 %v6348_v36, %v741_v49 }
 0x151   : > { %v7790_v32 = vpop.eup %7789  ;;  %v756_v59 = vmul.f32 %v6348_v36, %v742_v51 }
 0x152   : > { %v7792_v56 = vpop.eup %7791  ;;  %7018 = vmatprep.mubr.msk.bf16.mxu0 %vm640_vm0, %v774_v54  ;;  %v769_v58 = vadd.f32 %v6349_v41, %v755_v55  ;;  %v743_v25 = vmul.f32 %v7790_v32, %v8371_v43  ;;  %v611_v54 = vlaneseq }
 0x153   : > { %v744_v60 = vmul.f32 %v7792_v56, %v8380_v52  ;;  %v770_v33 = vadd.f32 %v6349_v41, %v756_v59 }
 0x154   : > { %v775_v61 = vpack.c.bf16 %v769_v58, %v768_v57  ;;  %v757_v62 = vmul.f32 %v6348_v36, %v743_v25  ;;  %v612_v55 = vshrl.u32 %v611_v54, 7  ;;  %v8510_v56 = vand.u32 127, %v611_v54 }
 0x155   : > { %v7794_v63 = vpop.eup %7793  ;;  %v758_v1 = vmul.f32 %v6348_v36, %v744_v60  ;;  %v8190_v58 = vmov -1e+09  }
 0x156   : > { %7019 = vmatmul.mubr.msk.bf16.vlgmr.msra.gmra.mxu0 %vm640_vm0, %v775_v61  ;;  %v771_v42 = vadd.f32 %v6349_v41, %v757_v62  ;;  %v745_v0 = vmul.f32 %v7794_v63, %v8383_v53  ;;  %v613_v32 = vadd.s32 8, %v612_v55  ;;  %10618 = vst [vmem:[#allocation6_spill] sm:$0xff] %v8510_v56  ;;  %v615_v57 = vadd.s32 24, %v612_v55 }
 0x157   : > { %v772_v12 = vadd.f32 %v6349_v41, %v758_v1  ;;  %vm622_vm3 = vcmp.ge.s32.totalorder %v612_v55, %v8510_v56  ;;  %v614_v59 = vadd.s32 16, %v612_v55  ;;  %v617_v60 = vadd.s32 40, %v612_v55 }
 0x158   : > { %v776_v2 = vpack.c.bf16 %v771_v42, %v770_v33  ;;  %v759_v7 = vmul.f32 %v6348_v36, %v745_v0  ;;  %vm623_vm2 = vcmp.ge.s32.totalorder %v613_v32, %v8510_v56  ;;  %vm625_vm4 = vcmp.ge.s32.totalorder %v615_v57, %v8510_v56 }
 0x159   : > { %v8514_v25 = vsel %vm623_vm2, 0.0, %v8190_v58  ;;  %v8517_v62 = vsel %vm622_vm3, 0.0, %v8190_v58  ;;  %v8520_v42 = vsel %vm625_vm4, 0.0, %v8190_v58  ;;  %vm624_vm6 = vcmp.ge.s32.totalorder %v614_v59, %v8510_v56 }
 0x15a   : > { %7022 = vmatprep.mubr.msk.bf16.mxu0 %vm640_vm0, %v776_v2  ;;  %v773_v13 = vadd.f32 %v6349_v41, %v759_v7  ;;  %vm627_vm7 = vcmp.ge.s32.totalorder %v617_v60, %v8510_v56  ;;  %v616_v2 = vadd.s32 32, %v612_v55  ;;  %v619_v7 = vadd.s32 56, %v612_v55 }
 0x15c   : > { %v777_v43 = vpack.c.bf16 %v773_v13, %v772_v12  ;;  %vm626_vm8 = vcmp.ge.s32.totalorder %v616_v2, %v8510_v56  ;;  %vm629_vm9 = vcmp.ge.s32.totalorder %v619_v7, %v8510_v56 }
 0x15e   : > { %7023 = vmatmul.mubr.msk.bf16.gmra.mxu0 %vm640_vm0, %v777_v43 }
 0x216   : > { %v7020_v52 = vpop.f32.mrf.mxu0 }
 0x217   : > { %v8446_v30 = vadd.f32 %v7020_v52, %v6350_v14  ;;  %v8528_v52 = vsel %vm624_vm6, 0.0, %v8190_v58  ;;  %vm6243_vm6 = vcmask 7168  }
 0x218   : > { %v847_v15 = vpop.f32.mrf.mxu0 }
 0x219   : > { %v8420_v16 = vadd.f32 %v6350_v14, %v847_v15  ;;  %v8530_v15 = vsel %vm627_vm7, 0.0, %v8190_v58 }
 0x21a   : > { %v7021_v53 = vpop.f32.mrf.mxu0 }
 0x21b   : > { %7042 = vmatprep.mubr.msk.f32.mxu1 %vm902_vm1, %v8420_v16  ;;  %v8434_v27 = vadd.f32 %v7021_v53, %v6350_v14  ;;  %v618_v53 = vadd.s32 48, %v612_v55 }
 0x21c   : > { %v850_v17 = vpop.f32.mrf.mxu0 }
 0x21d   : > { %v8442_v29 = vadd.f32 %v6350_v14, %v850_v17  ;;  %vm628_vm10 = vcmp.ge.s32.totalorder %v618_v53, %v8510_v56 }
 0x21e   : > { %v7024_v18 = vpop.f32.mrf.mxu0 }
 0x21f   : > { %v8424_v19 = vadd.f32 %v7024_v18, %v6350_v14 }
 0x220   : > { %v863_v20 = vpop.f32.mrf.mxu0 }
 0x221   : > { %898 = vrot.lane.b32.xlu1 %v8424_v19, %s8187_s19  ;;  %v8438_v28 = vadd.f32 %v6350_v14, %v863_v20 }
 0x222   : > { %v7025_v21 = vpop.f32.mrf.mxu0 }
 0x223   : > { %v8428_v22 = vadd.f32 %v7025_v21, %v6350_v14 }
 0x224   : > { %v866_v23 = vpop.f32.mrf.mxu0 }
 0x225   : > { %v8430_v26 = vadd.f32 %v6350_v14, %v866_v23  ;;  %900 = vrot.lane.b32.xlu0 %v8428_v22, %s8187_s19  ;;  %v8537_v23 = vsel %vm626_vm8, 0.0, %v8190_v58 }
 0x227   : > { %896 = vrot.lane.b32.xlu1 %v8430_v26, %s8187_s19 }
 0x229   : > { %892 = vrot.lane.b32.xlu0 %v8434_v27, %s8187_s19 }
 0x22b   : > { %894 = vrot.lane.b32.xlu1 %v8438_v28, %s8187_s19 }
 0x22d   : > { %888 = vrot.lane.b32.xlu0 %v8442_v29, %s8187_s19 }
 0x22f   : > { %890 = vrot.lane.b32.xlu1 %v8446_v30, %s8187_s19 }
 0x231   : > { %1143 = vrot.lane.b32.xlu0 %v8428_v22, %s8188_s1 }
 0x233   : > { %886 = vrot.lane.b32.xlu1 %v8420_v16, %s8187_s19 }
 0x235   : > { %1135 = vrot.lane.b32.xlu0 %v8434_v27, %s8188_s1 }
 0x237   : > { %1141 = vrot.lane.b32.xlu1 %v8424_v19, %s8188_s1 }
 0x239   : > { %1131 = vrot.lane.b32.xlu0 %v8442_v29, %s8188_s1 }
 0x23b   : > { %1137 = vrot.lane.b32.xlu1 %v8438_v28, %s8188_s1 }
 0x23d   : > { %1312 = vrot.lane.b32.xlu0 %v8428_v22, %s8189_s20 }
 0x23f   : > { %1133 = vrot.lane.b32.xlu1 %v8446_v30, %s8188_s1 }
 0x243   : > { %1129 = vrot.lane.b32.xlu1 %v8420_v16, %s8188_s1 }
 0x247   : > { %1310 = vrot.lane.b32.xlu1 %v8424_v19, %s8189_s20 }
 0x24b   : > { %1139 = vrot.lane.b32.xlu1 %v8430_v26, %s8188_s1 }
 0x293   : > { %v899_v31 = vpop.permute.xlu1 %898 }
 0x297   : > { %v901_v34 = vpop.permute.xlu0 %900 }
 0x298   : > { %7026 = vmatprep.subr.msk.mxu1 %vm902_vm1, %v901_v34 }
 0x299   : > { %7027 = vmatpush3.xpose.msk.msra.mxu1 %vm902_vm1, %v901_v34  ;;  %v897_v35 = vpop.permute.xlu1 %896  ;;  %v8539_v34 = vsel %vm629_vm9, 0.0, %v8190_v58 }
 0x29a   : > { %7028 = vmatprep.subr.msk.mxu1 %vm902_vm1, %v899_v31 }
 0x29b   : > { %v893_v36 = vpop.permute.xlu0 %892 }
 0x29d   : > { %7029 = vmatpush3.xpose.msk.msra.mxu1 %vm902_vm1, %v899_v31  ;;  %v895_v37 = vpop.permute.xlu1 %894 }
 0x29e   : > { %7030 = vmatprep.subr.msk.mxu1 %vm902_vm1, %v897_v35 }
 0x29f   : > { %v889_v38 = vpop.permute.xlu0 %888 }
 0x2a1   : > { %7031 = vmatpush3.xpose.msk.msra.mxu1 %vm902_vm1, %v897_v35  ;;  %v891_v39 = vpop.permute.xlu1 %890 }
 0x2a2   : > { %7032 = vmatprep.subr.msk.mxu1 %vm902_vm1, %v895_v37 }
 0x2a3   : > { %v1144_v40 = vpop.permute.xlu0 %1143 }
 0x2a4   : > { %7054 = vmatprep.subr.mxu0 %v1144_v40 }
 0x2a5   : > { %7033 = vmatpush3.xpose.msk.msra.mxu1 %vm902_vm1, %v895_v37  ;;  %7055 = vmatpush3.msra.mxu0 %v1144_v40  ;;  %v887_v41 = vpop.permute.xlu1 %886  ;;  %v8546_v40 = vsel %vm628_vm10, 0.0, %v8190_v58 }
 0x2a6   : > { %7034 = vmatprep.subr.msk.mxu1 %vm902_vm1, %v893_v36 }
 0x2a7   : > { %v1136_v48 = vpop.permute.xlu0 %1135 }
 0x2a9   : > { %7035 = vmatpush3.xpose.msk.msra.mxu1 %vm902_vm1, %v893_v36  ;;  %v1142_v44 = vpop.permute.xlu1 %1141 }
 0x2aa   : > { %7036 = vmatprep.subr.msk.mxu1 %vm902_vm1, %v891_v39  ;;  %7056 = vmatprep.subr.mxu0 %v1142_v44 }
 0x2ab   : > { %7057 = vmatpush3.msra.mxu0 %v1142_v44  ;;  %v1132_v50 = vpop.permute.xlu0 %1131 }
 0x2ad   : > { %7037 = vmatpush3.xpose.msk.msra.mxu1 %vm902_vm1, %v891_v39  ;;  %v1138_v45 = vpop.permute.xlu1 %1137 }
 0x2ae   : > { %7038 = vmatprep.subr.msk.mxu1 %vm902_vm1, %v889_v38 }
 0x2af   : > { %v8506_v51 = vpop.permute.xlu0 %1312 }
 0x2b1   : > { %7039 = vmatpush3.xpose.msk.msra.mxu1 %vm902_vm1, %v889_v38  ;;  %v1134_v46 = vpop.permute.xlu1 %1133 }
 0x2b2   : > { %7040 = vmatprep.subr.msk.mxu1 %vm902_vm1, %v887_v41 }
 0x2b5   : > { %7041 = vmatpush3.xpose.msk.msra.mxu1 %vm902_vm1, %v887_v41  ;;  %v1130_v47 = vpop.permute.xlu1 %1129 }
 0x2b8   : > { %7043 = vmatmul.mubr.msk.f32.vlgmr.msra.gmra.mxu1 %vm902_vm1, %v8442_v29 }
 0x2b9   : > { %7045 = vmatprep.mubr.msk.f32.mxu1 %vm902_vm1, %v8446_v30  ;;  %v8494_v24 = vpop.permute.xlu1 %1310 }
 0x2bc   : > { %7046 = vmatmul.mubr.msk.f32.gmra.mxu1 %vm902_vm1, %v8434_v27 }
 0x2bd   : > { %7048 = vmatprep.mubr.msk.f32.mxu1 %vm902_vm1, %v8438_v28  ;;  %v1140_v49 = vpop.permute.xlu1 %1139 }
 0x2be   : > { %7058 = vmatprep.subr.mxu0 %v1140_v49 }
 0x2bf   : > { %7059 = vmatpush3.msra.mxu0 %v1140_v49 }
 0x2c0   : > { %7049 = vmatmul.mubr.msk.f32.gmra.mxu1 %vm902_vm1, %v8430_v26  ;;  %7060 = vmatprep.subr.mxu0 %v1138_v45 }
 0x2c1   : > { %7051 = vmatprep.mubr.msk.f32.mxu1 %vm902_vm1, %v8424_v19  ;;  %7061 = vmatpush3.msra.mxu0 %v1138_v45 }
 0x2c2   : > { %7062 = vmatprep.subr.mxu0 %v1136_v48 }
 0x2c3   : > { %7063 = vmatpush3.msra.mxu0 %v1136_v48 }
 0x2c4   : > { %7052 = vmatmul.mubr.msk.f32.gmra.mxu1 %vm902_vm1, %v8428_v22  ;;  %7064 = vmatprep.subr.mxu0 %v1134_v46 }
 0x2c5   : > { %7065 = vmatpush3.msra.mxu0 %v1134_v46 }
 0x2c6   : > { %7066 = vmatprep.subr.mxu0 %v1132_v50 }
 0x2c7   : > { %7067 = vmatpush3.msra.mxu0 %v1132_v50 }
 0x2c8   : > { %7068 = vmatprep.subr.mxu0 %v1130_v47 }
 0x2c9   : > { %7069 = vmatpush3.msra.mxu0 %v1130_v47 }
 0x2ca   : > { %7082 = vmatprep.subr.msk.mxu0 %vm902_vm1, %v8506_v51 }
 0x378   : > { %v7044_v61 = vpop.f32.mrf.mxu1 }
 0x379   : > { %v1007_v63 = vadd.f32 %v7044_v61, %v8514_v25 }
 0x37a   : > { %v1001_v33 = vpop.f32.mrf.mxu1 }
 0x37b   : > { %v1002_v0 = vadd.f32 %v1001_v33, %v8517_v62  ;;  %v1044_v1 = vsel %vm1040_vm5, %v1007_v63, -inf }
 0x37c   : > { %1045 = vmax.xlane.f32.xlu1 %v1044_v1  ;;  %v7047_v12 = vpop.f32.mrf.mxu1 }
 0x37d   : > { %v1017_v13 = vadd.f32 %v7047_v12, %v8520_v42  ;;  %v1041_v43 = vsel %vm1040_vm5, %v1002_v0, -inf }
 0x37e   : > { %v1011_v14 = vpop.f32.mrf.mxu1  ;;  %1042 = vmax.xlane.f32.xlu0 %v1041_v43 }
 0x37f   : > { %v1012_v18 = vadd.f32 %v1011_v14, %v8528_v52  ;;  %v1050_v21 = vsel %vm1040_vm5, %v1017_v13, -inf }
 0x380   : > { %v7050_v17 = vpop.f32.mrf.mxu1 }
 0x381   : > { %v1027_v20 = vadd.f32 %v7050_v17, %v8530_v15  ;;  %v1047_v39 = vsel %vm1040_vm5, %v1012_v18, -inf }
 0x382   : > { %v1021_v31 = vpop.f32.mrf.mxu1  ;;  %1051 = vmax.xlane.f32.xlu0 %v1050_v21 }
 0x383   : > { %v1056_v35 = vsel %vm1040_vm5, %v1027_v20, -inf  ;;  %v1022_v37 = vadd.f32 %v1021_v31, %v8537_v23 }
 0x384   : > { %1057 = vmax.xlane.f32.xlu1 %v1056_v35  ;;  %v7053_v36 = vpop.f32.mrf.mxu1 }
 0x385   : > { %v1037_v38 = vadd.f32 %v7053_v36, %v8539_v34  ;;  %v1053_v46 = vsel %vm1040_vm5, %v1022_v37, -inf }
 0x386   : > { %v1031_v41 = vpop.f32.mrf.mxu1  ;;  %1048 = vmax.xlane.f32.xlu0 %v1047_v39 }
 0x387   : > { %v1062_v44 = vsel %vm1040_vm5, %v1037_v38, -inf  ;;  %v1032_v45 = vadd.f32 %v1031_v41, %v8546_v40 }
 0x388   : > { %1063 = vmax.xlane.f32.xlu1 %v1062_v44 }
 0x389   : > { %v1059_v47 = vsel %vm1040_vm5, %v1032_v45, -inf }
 0x38a   : > { %1054 = vmax.xlane.f32.xlu0 %v1053_v46 }
 0x38e   : > { %1060 = vmax.xlane.f32.xlu0 %v1059_v47 }
 0x399   : > { %1306 = vrot.lane.b32.xlu1 %v8438_v28, %s8189_s20 }
 0x3a4   : > { %1308 = vrot.lane.b32.xlu0 %v8430_v26, %s8189_s20 }
 0x405   : > { %v1046_v48 = vpop.xlane.xlu1 %1045 }
 0x406   : > { %v1066_v49 = vsub.f32 %v1007_v63, %v1046_v48 }
 0x407   : > { %v1043_v50 = vpop.xlane.xlu0 %1042 }
 0x408   : > { %v1075_v54 = vmul.f32 1.442695, %v1066_v49  ;;  %v1065_v55 = vsub.f32 %v1002_v0, %v1043_v50 }
 0x40a   : > { %7795 = vpow2.f32 %v1075_v54  ;;  %v1073_v32 = vmul.f32 1.442695, %v1065_v55 }
 0x40b   : > { %v1052_v61 = vpop.xlane.xlu0 %1051 }
 0x40c   : > { %7797 = vpow2.f32 %v1073_v32  ;;  %v1068_v0 = vsub.f32 %v1017_v13, %v1052_v61 }
 0x40d   : > { %v1058_v33 = vpop.xlane.xlu1 %1057 }
 0x40e   : > { %v1079_v7 = vmul.f32 1.442695, %v1068_v0  ;;  %v1070_v12 = vsub.f32 %v1027_v20, %v1058_v33 }
 0x40f   : > { %v1049_v63 = vpop.xlane.xlu0 %1048 }
 0x410   : > { %v1067_v2 = vsub.f32 %v1012_v18, %v1049_v63  ;;  %7799 = vpow2.f32 %v1079_v7  ;;  %v1083_v21 = vmul.f32 1.442695, %v1070_v12 }
 0x411   : > { %v1064_v43 = vpop.xlane.xlu1 %1063 }
 0x412   : > { %v1077_v14 = vmul.f32 1.442695, %v1067_v2  ;;  %v1072_v31 = vsub.f32 %v1037_v38, %v1064_v43 }
 0x413   : > { %v1055_v1 = vpop.xlane.xlu0 %1054 }
 0x414   : > { %v1069_v53 = vsub.f32 %v1022_v37, %v1055_v1  ;;  %7801 = vpow2.f32 %v1077_v14  ;;  %v1087_v39 = vmul.f32 1.442695, %v1072_v31 }
 0x415   : > { %7803 = vpow2.f32 %v1083_v21  ;;  %v1307_v54 = vpop.permute.xlu1 %1306 }
 0x416   : > { %v1081_v35 = vmul.f32 1.442695, %v1069_v53 }
 0x417   : > { %v8556_v57 = vpop.eup %7795  ;;  %v1061_v17 = vpop.xlane.xlu0 %1060 }
 0x418   : > { %v1092_v58 = vsel %vm1040_vm5, %v8556_v57, 0.0  ;;  %v1071_v36 = vsub.f32 %v1032_v45, %v1061_v17  ;;  %7805 = vpow2.f32 %v1081_v35 }
 0x419   : > { %v8560_v59 = vpop.eup %7797  ;;  %1093 = vadd.xlane.f32.xlu1 %v1092_v58  ;;  %7807 = vpow2.f32 %v1087_v39 }
 0x41a   : > { %v1089_v60 = vsel %vm1040_vm5, %v8560_v59, 0.0  ;;  %v1085_v41 = vmul.f32 1.442695, %v1071_v36 }
 0x41b   : > { %1090 = vadd.xlane.f32.xlu0 %v1089_v60  ;;  %v1309_v55 = vpop.permute.xlu0 %1308 }
 0x41c   : > { %7809 = vpow2.f32 %v1085_v41 }
 0x41d   : > { %v8568_v13 = vpop.eup %7799 }
 0x41e   : > { %v1098_v20 = vsel %vm1040_vm5, %v8568_v13, 0.0 }
 0x421   : > { %v8570_v18 = vpop.eup %7801 }
 0x422   : > { %v8574_v37 = vpop.eup %7803  ;;  %v1095_v38 = vsel %vm1040_vm5, %v8570_v18, 0.0 }
 0x423   : > { %v1104_v45 = vsel %vm1040_vm5, %v8574_v37, 0.0 }
 0x425   : > { %v8578_v44 = vpop.eup %7805 }
 0x426   : > { %v8582_v46 = vpop.eup %7807  ;;  %v1101_v47 = vsel %vm1040_vm5, %v8578_v44, 0.0 }
 0x427   : > { %v1110_v49 = vsel %vm1040_vm5, %v8582_v46, 0.0 }
 0x429   : > { %v8586_v48 = vpop.eup %7809 }
 0x42a   : > { %1302 = vrot.lane.b32.xlu1 %v8446_v30, %s8189_s20  ;;  %v1107_v50 = vsel %vm1040_vm5, %v8586_v48, 0.0 }
 0x431   : > { %1304 = vrot.lane.b32.xlu0 %v8434_v27, %s8189_s20 }
 0x44e   : > { %1099 = vadd.xlane.f32.xlu1 %v1098_v20 }
 0x450   : > { %1096 = vadd.xlane.f32.xlu0 %v1095_v38 }
 0x452   : > { %1105 = vadd.xlane.f32.xlu1 %v1104_v45 }
 0x454   : > { %1102 = vadd.xlane.f32.xlu0 %v1101_v47 }
 0x456   : > { %1111 = vadd.xlane.f32.xlu1 %v1110_v49 }
 0x458   : > { %1108 = vadd.xlane.f32.xlu0 %v1107_v50 }
 0x467   : > { %1298 = vrot.lane.b32.xlu1 %v8420_v16, %s8189_s20 }
 0x46b   : > { %1284 = vrot.lane.b32.xlu1 %v8442_v29, %s8191_s21 }
 0x46e   : > { %1300 = vrot.lane.b32.xlu0 %v8442_v29, %s8189_s20 }
 0x46f   : > { %1288 = vrot.lane.b32.xlu1 %v8434_v27, %s8191_s21 }
 0x472   : > { %1282 = vrot.lane.b32.xlu0 %v8420_v16, %s8191_s21 }
 0x473   : > { %1292 = vrot.lane.b32.xlu1 %v8430_v26, %s8191_s21 }
 0x476   : > { %1286 = vrot.lane.b32.xlu0 %v8446_v30, %s8191_s21 }
 0x477   : > { %1296 = vrot.lane.b32.xlu1 %v8428_v22, %s8191_s21 }
 0x47a   : > { %1290 = vrot.lane.b32.xlu0 %v8438_v28, %s8191_s21 }
 0x47b   : > { %1551 = vrot.lane.b32.xlu1 %v8424_v19, %s10603_s22 }
 0x47e   : > { %1294 = vrot.lane.b32.xlu0 %v8424_v19, %s8191_s21 }
 0x47f   : > { %1549 = vrot.lane.b32.xlu1 %v8430_v26, %s10603_s22 }
 0x482   : > { %1553 = vrot.lane.b32.xlu0 %v8428_v22, %s10603_s22 }
 0x483   : > { %1547 = vrot.lane.b32.xlu1 %v8438_v28, %s10603_s22 }
 0x486   : > { %1545 = vrot.lane.b32.xlu0 %v8434_v27, %s10603_s22 }
 0x487   : > { %1543 = vrot.lane.b32.xlu1 %v8446_v30, %s10603_s22 }
 0x48a   : > { %1541 = vrot.lane.b32.xlu0 %v8442_v29, %s10603_s22 }
 0x48b   : > { %1539 = vrot.lane.b32.xlu1 %v8420_v16, %s10603_s22  ;;  %s10638_s22 = smov 72  }
 0x48e   : > { %1722 = vrot.lane.b32.xlu0 %v8428_v22, %s10601_s2 }
 0x48f   : > { %1720 = vrot.lane.b32.xlu1 %v8424_v19, %s10601_s2 }
 0x4a2   : > { %v1094_v32 = vpop.xlane.xlu1 %1093 }
 0x4a3   : > { %7811 = vrcp.f32 %v1094_v32 }
 0x4a4   : > { %v1091_v58 = vpop.xlane.xlu0 %1090 }
 0x4a5   : > { %7813 = vrcp.f32 %v1091_v58 }
 0x4b0   : > { %v7812_v60 = vpop.eup %7811 }
 0x4b1   : > { %v1116_v33 = vmul.f32 %v7812_v60, %v8556_v57  ;;  %v1305_v57 = vpop.permute.xlu0 %1304 }
 0x4b2   : > { %v7814_v61 = vpop.eup %7813 }
 0x4b3   : > { %v1114_v63 = vmul.f32 %v7814_v61, %v8560_v59  ;;  %v1303_v59 = vpop.permute.xlu1 %1302 }
 0x4b5   : > { %7070 = vmatprep.mubr.msk.f32.mxu0 %vm1040_vm5, %v1114_v63 }
 0x4b6   : > { %7071 = vmatmul.mubr.msk.f32.vlgmr.msra.gmra.mxu0 %vm1040_vm5, %v1116_v33 }
 0x4b7   : > { %7083 = vmatpush3.xpose.msk.msra.mxu0 %vm902_vm1, %v8506_v51 }
 0x4b8   : > { %7084 = vmatprep.subr.msk.mxu0 %vm902_vm1, %v8494_v24 }
 0x4bb   : > { %7085 = vmatpush3.xpose.msk.msra.mxu0 %vm902_vm1, %v8494_v24 }
 0x4bc   : > { %7086 = vmatprep.subr.msk.mxu0 %vm902_vm1, %v1309_v55 }
 0x4bf   : > { %7087 = vmatpush3.xpose.msk.msra.mxu0 %vm902_vm1, %v1309_v55 }
 0x4c0   : > { %7088 = vmatprep.subr.msk.mxu0 %vm902_vm1, %v1307_v54 }
 0x4c3   : > { %7089 = vmatpush3.xpose.msk.msra.mxu0 %vm902_vm1, %v1307_v54 }
 0x4c4   : > { %7090 = vmatprep.subr.msk.mxu0 %vm902_vm1, %v1305_v57 }
 0x4c7   : > { %7091 = vmatpush3.xpose.msk.msra.mxu0 %vm902_vm1, %v1305_v57 }
 0x4c8   : > { %7092 = vmatprep.subr.msk.mxu0 %vm902_vm1, %v1303_v59 }
 0x4cb   : > { %7093 = vmatpush3.xpose.msk.msra.mxu0 %vm902_vm1, %v1303_v59 }
 0x4d7   : > { %v1100_v51 = vpop.xlane.xlu1 %1099 }
 0x4d8   : > { %7815 = vrcp.f32 %v1100_v51 }
 0x4d9   : > { %v1097_v24 = vpop.xlane.xlu0 %1096 }
 0x4da   : > { %7817 = vrcp.f32 %v1097_v24 }
 0x4db   : > { %v1106_v0 = vpop.xlane.xlu1 %1105 }
 0x4dc   : > { %7819 = vrcp.f32 %v1106_v0 }
 0x4dd   : > { %v1103_v1 = vpop.xlane.xlu0 %1102 }
 0x4de   : > { %7821 = vrcp.f32 %v1103_v1 }
 0x4df   : > { %v1112_v2 = vpop.xlane.xlu1 %1111 }
 0x4e0   : > { %7823 = vrcp.f32 %v1112_v2 }
 0x4e1   : > { %v1109_v7 = vpop.xlane.xlu0 %1108 }
 0x4e2   : > { %7825 = vrcp.f32 %v1109_v7 }
 0x4e3   : > { %v1299_v12 = vpop.permute.xlu1 %1298 }
 0x4e5   : > { %v1301_v43 = vpop.permute.xlu0 %1300  ;;  %v7816_v14 = vpop.eup %7815 }
 0x4e6   : > { %7094 = vmatprep.subr.msk.mxu0 %vm902_vm1, %v1301_v43  ;;  %v1120_v35 = vmul.f32 %v7816_v14, %v8568_v13 }
 0x4e7   : > { %v7818_v53 = vpop.eup %7817  ;;  %7095 = vmatpush3.xpose.msk.msra.mxu0 %vm902_vm1, %v1301_v43  ;;  %v1285_v17 = vpop.permute.xlu1 %1284 }
 0x4e8   : > { %7096 = vmatprep.subr.msk.mxu0 %vm902_vm1, %v1299_v12  ;;  %v1118_v21 = vmul.f32 %v7818_v53, %v8570_v18 }
 0x4e9   : > { %v1283_v31 = vpop.permute.xlu0 %1282  ;;  %v7820_v36 = vpop.eup %7819 }
 0x4ea   : > { %7073 = vmatprep.mubr.msk.f32.mxu0 %vm1040_vm5, %v1118_v21  ;;  %v1124_v45 = vmul.f32 %v7820_v36, %v8574_v37 }
 0x4eb   : > { %v7822_v39 = vpop.eup %7821  ;;  %7074 = vmatmul.mubr.msk.f32.gmra.mxu0 %vm1040_vm5, %v1120_v35  ;;  %v1289_v41 = vpop.permute.xlu1 %1288 }
 0x4ec   : > { %7097 = vmatpush3.xpose.msk.msra.mxu0 %vm902_vm1, %v1299_v12  ;;  %v1122_v20 = vmul.f32 %v7822_v39, %v8578_v44 }
 0x4ed   : > { %v1287_v38 = vpop.permute.xlu0 %1286  ;;  %v7824_v47 = vpop.eup %7823 }
 0x4ee   : > { %7076 = vmatprep.mubr.msk.f32.mxu0 %vm1040_vm5, %v1122_v20  ;;  %v1128_v54 = vmul.f32 %v7824_v47, %v8582_v46 }
 0x4ef   : > { %v7826_v18 = vpop.eup %7825  ;;  %7077 = vmatmul.mubr.msk.f32.gmra.mxu0 %vm1040_vm5, %v1124_v45  ;;  %v1293_v13 = vpop.permute.xlu1 %1292 }
 0x4f0   : > { %v1126_v49 = vmul.f32 %v7826_v18, %v8586_v48 }
 0x4f1   : > { %v1291_v50 = vpop.permute.xlu0 %1290 }
 0x4f2   : > { %7079 = vmatprep.mubr.msk.f32.mxu0 %vm1040_vm5, %v1126_v49 }
 0x4f3   : > { %7080 = vmatmul.mubr.msk.f32.gmra.mxu0 %vm1040_vm5, %v1128_v54  ;;  %v1297_v44 = vpop.permute.xlu1 %1296 }
 0x4f4   : > { %7098 = vmatprep.mubr.msk.f32.mxu0 %vm902_vm1, %v1283_v31 }
 0x4f5   : > { %v1295_v37 = vpop.permute.xlu0 %1294 }
 0x4f7   : > { %7099 = vmatmul.mubr.msk.f32.vlgmr.msra.gmra.mxu0 %vm902_vm1, %v1285_v17  ;;  %v1552_v55 = vpop.permute.xlu1 %1551 }
 0x4f8   : > { %7101 = vmatprep.mubr.msk.f32.mxu0 %vm902_vm1, %v1287_v38 }
 0x4f9   : > { %v1554_v32 = vpop.permute.xlu0 %1553 }
 0x4fa   : > { %7110 = vmatprep.subr.mxu1 %v1554_v32 }
 0x4fb   : > { %7102 = vmatmul.mubr.msk.f32.gmra.mxu0 %vm902_vm1, %v1289_v41  ;;  %7111 = vmatpush3.msra.mxu1 %v1554_v32  ;;  %v1550_v48 = vpop.permute.xlu1 %1549 }
 0x4fc   : > { %7104 = vmatprep.mubr.msk.f32.mxu0 %vm902_vm1, %v1291_v50  ;;  %7112 = vmatprep.subr.mxu1 %v1552_v55 }
 0x4fd   : > { %v1546_v46 = vpop.permute.xlu0 %1545  ;;  %7113 = vmatpush3.msra.mxu1 %v1552_v55 }
 0x4fe   : > { %7114 = vmatprep.subr.mxu1 %v1550_v48 }
 0x4ff   : > { %7105 = vmatmul.mubr.msk.f32.gmra.mxu0 %vm902_vm1, %v1293_v13  ;;  %7115 = vmatpush3.msra.mxu1 %v1550_v48  ;;  %v1548_v58 = vpop.permute.xlu1 %1547 }
 0x500   : > { %7107 = vmatprep.mubr.msk.f32.mxu0 %vm902_vm1, %v1295_v37  ;;  %7116 = vmatprep.subr.mxu1 %v1548_v58 }
 0x501   : > { %7117 = vmatpush3.msra.mxu1 %v1548_v58  ;;  %v1542_v60 = vpop.permute.xlu0 %1541 }
 0x502   : > { %7118 = vmatprep.subr.mxu1 %v1546_v46 }
 0x503   : > { %7108 = vmatmul.mubr.msk.f32.gmra.mxu0 %vm902_vm1, %v1297_v44  ;;  %7119 = vmatpush3.msra.mxu1 %v1546_v46  ;;  %v1544_v61 = vpop.permute.xlu1 %1543 }
 0x504   : > { %7120 = vmatprep.subr.mxu1 %v1544_v61 }
 0x505   : > { %7121 = vmatpush3.msra.mxu1 %v1544_v61  ;;  %v8674_v33 = vpop.permute.xlu0 %1722 }
 0x506   : > { %7122 = vmatprep.subr.mxu1 %v1542_v60 }
 0x507   : > { %7123 = vmatpush3.msra.mxu1 %v1542_v60  ;;  %v1540_v63 = vpop.permute.xlu1 %1539 }
 0x508   : > { %7124 = vmatprep.subr.mxu1 %v1540_v63 }
 0x509   : > { %7125 = vmatpush3.msra.mxu1 %v1540_v63 }
 0x50a   : > { %7138 = vmatprep.subr.msk.mxu1 %vm902_vm1, %v8674_v33 }
 0x50b   : > { %v8714_v48 = vpop.permute.xlu1 %1720 }
 0x576   : > { %v8678_v57 = vpop.f32.mrf.mxu0 }
 0x578   : > { %v8680_v59 = vpop.f32.mrf.mxu0 }
 0x5ab   : > { %v8682_v51 = vpop.f32.mrf.mxu0 }
 0x5ad   : > { %v8684_v24 = vpop.f32.mrf.mxu0 }
 0x5af   : > { %v8686_v0 = vpop.f32.mrf.mxu0 }
 0x5b1   : > { %v8688_v1 = vpop.f32.mrf.mxu0 }
 0x5b3   : > { %v8690_v2 = vpop.f32.mrf.mxu0 }
 0x5b5   : > { %v8692_v7 = vpop.f32.mrf.mxu0 }
 0x5b7   : > { %v7100_v12 = vpop.f32.mrf.mxu0 }
 0x5b8   : > { %v1418_v43 = vadd.f32 %v7100_v12, %v8514_v25 }
 0x5b9   : > { %v1412_v14 = vpop.f32.mrf.mxu0 }
 0x5ba   : > { %v1413_v53 = vadd.f32 %v1412_v14, %v8517_v62  ;;  %v1454_v17 = vsel %vm1040_vm5, %v1418_v43, -inf }
 0x5bb   : > { %1455 = vmax.xlane.f32.xlu1 %v1454_v17  ;;  %v7103_v21 = vpop.f32.mrf.mxu0 }
 0x5bc   : > { %v1428_v31 = vadd.f32 %v7103_v21, %v8520_v42  ;;  %v1451_v35 = vsel %vm1040_vm5, %v1413_v53, -inf }
 0x5bd   : > { %1452 = vmax.xlane.f32.xlu0 %v1451_v35  ;;  %v1422_v36 = vpop.f32.mrf.mxu0 }
 0x5be   : > { %v1423_v41 = vadd.f32 %v1422_v36, %v8528_v52  ;;  %v1460_v38 = vsel %vm1040_vm5, %v1428_v31, -inf }
 0x5bf   : > { %v7106_v39 = vpop.f32.mrf.mxu0 }
 0x5c0   : > { %v1438_v20 = vadd.f32 %v7106_v39, %v8530_v15  ;;  %v1457_v50 = vsel %vm1040_vm5, %v1423_v41, -inf }
 0x5c1   : > { %1461 = vmax.xlane.f32.xlu0 %v1460_v38  ;;  %v1432_v45 = vpop.f32.mrf.mxu0 }
 0x5c2   : > { %v1466_v47 = vsel %vm1040_vm5, %v1438_v20, -inf  ;;  %v1433_v13 = vadd.f32 %v1432_v45, %v8537_v23 }
 0x5c3   : > { %1467 = vmax.xlane.f32.xlu1 %v1466_v47  ;;  %v7109_v18 = vpop.f32.mrf.mxu0 }
 0x5c4   : > { %v1448_v49 = vadd.f32 %v7109_v18, %v8539_v34  ;;  %v1463_v55 = vsel %vm1040_vm5, %v1433_v13, -inf }
 0x5c5   : > { %1458 = vmax.xlane.f32.xlu0 %v1457_v50  ;;  %v1442_v54 = vpop.f32.mrf.mxu0 }
 0x5c6   : > { %v1472_v44 = vsel %vm1040_vm5, %v1448_v49, -inf  ;;  %v1443_v37 = vadd.f32 %v1442_v54, %v8546_v40 }
 0x5c7   : > { %1473 = vmax.xlane.f32.xlu1 %v1472_v44 }
 0x5c8   : > { %v1469_v32 = vsel %vm1040_vm5, %v1443_v37, -inf }
 0x5c9   : > { %1464 = vmax.xlane.f32.xlu0 %v1463_v55 }
 0x5cd   : > { %1470 = vmax.xlane.f32.xlu0 %v1469_v32 }
 0x5d8   : > { %1716 = vrot.lane.b32.xlu1 %v8438_v28, %s10601_s2 }
 0x5e3   : > { %1718 = vrot.lane.b32.xlu0 %v8430_v26, %s10601_s2 }
 0x644   : > { %v1456_v46 = vpop.xlane.xlu1 %1455 }
 0x645   : > { %v1476_v58 = vsub.f32 %v1418_v43, %v1456_v46 }
 0x646   : > { %v1453_v60 = vpop.xlane.xlu0 %1452 }
 0x647   : > { %v1485_v61 = vmul.f32 1.442695, %v1476_v58  ;;  %v1475_v63 = vsub.f32 %v1413_v53, %v1453_v60 }
 0x649   : > { %7827 = vpow2.f32 %v1485_v61  ;;  %v1483_v12 = vmul.f32 1.442695, %v1475_v63 }
 0x64a   : > { %v1462_v36 = vpop.xlane.xlu0 %1461 }
 0x64b   : > { %7829 = vpow2.f32 %v1483_v12  ;;  %v1478_v39 = vsub.f32 %v1428_v31, %v1462_v36 }
 0x64c   : > { %v1468_v53 = vpop.xlane.xlu1 %1467 }
 0x64d   : > { %v1489_v47 = vmul.f32 1.442695, %v1478_v39  ;;  %v1480_v18 = vsub.f32 %v1438_v20, %v1468_v53 }
 0x64e   : > { %v1459_v43 = vpop.xlane.xlu0 %1458 }
 0x64f   : > { %v1477_v45 = vsub.f32 %v1423_v41, %v1459_v43  ;;  %7831 = vpow2.f32 %v1489_v47  ;;  %v1493_v32 = vmul.f32 1.442695, %v1480_v18 }
 0x650   : > { %v1474_v50 = vpop.xlane.xlu1 %1473 }
 0x651   : > { %v1487_v54 = vmul.f32 1.442695, %v1477_v45  ;;  %v1482_v46 = vsub.f32 %v1448_v49, %v1474_v50 }
 0x652   : > { %v1465_v38 = vpop.xlane.xlu0 %1464 }
 0x653   : > { %v1479_v44 = vsub.f32 %v1433_v13, %v1465_v38  ;;  %7833 = vpow2.f32 %v1487_v54  ;;  %v1497_v61 = vmul.f32 1.442695, %v1482_v46 }
 0x654   : > { %7835 = vpow2.f32 %v1493_v32  ;;  %v1717_v39 = vpop.permute.xlu1 %1716 }
 0x655   : > { %v1491_v58 = vmul.f32 1.442695, %v1479_v44 }
 0x656   : > { %v8716_v14 = vpop.eup %7827  ;;  %v1471_v55 = vpop.xlane.xlu0 %1470 }
 0x657   : > { %v1502_v17 = vsel %vm1040_vm5, %v8716_v14, 0.0  ;;  %v1481_v60 = vsub.f32 %v1443_v37, %v1471_v55  ;;  %7837 = vpow2.f32 %v1491_v58 }
 0x658   : > { %v8720_v21 = vpop.eup %7829  ;;  %1503 = vadd.xlane.f32.xlu1 %v1502_v17  ;;  %7839 = vpow2.f32 %v1497_v61 }
 0x659   : > { %v1499_v35 = vsel %vm1040_vm5, %v8720_v21, 0.0  ;;  %v1495_v63 = vmul.f32 1.442695, %v1481_v60 }
 0x65a   : > { %1500 = vadd.xlane.f32.xlu0 %v1499_v35  ;;  %v1719_v38 = vpop.permute.xlu0 %1718 }
 0x65b   : > { %7841 = vpow2.f32 %v1495_v63 }
 0x65c   : > { %v8728_v31 = vpop.eup %7831 }
 0x65d   : > { %v1508_v20 = vsel %vm1040_vm5, %v8728_v31, 0.0 }
 0x660   : > { %v8730_v41 = vpop.eup %7833 }
 0x661   : > { %v8734_v13 = vpop.eup %7835  ;;  %v1505_v49 = vsel %vm1040_vm5, %v8730_v41, 0.0 }
 0x662   : > { %v1514_v12 = vsel %vm1040_vm5, %v8734_v13, 0.0 }
 0x664   : > { %v8738_v37 = vpop.eup %7837 }
 0x665   : > { %v8742_v17 = vpop.eup %7839  ;;  %v1511_v35 = vsel %vm1040_vm5, %v8738_v37, 0.0 }
 0x666   : > { %v1520_v43 = vsel %vm1040_vm5, %v8742_v17, 0.0 }
 0x668   : > { %v8746_v36 = vpop.eup %7841 }
 0x669   : > { %1712 = vrot.lane.b32.xlu1 %v8446_v30, %s10601_s2  ;;  %v1517_v53 = vsel %vm1040_vm5, %v8746_v36, 0.0 }
 0x670   : > { %1714 = vrot.lane.b32.xlu0 %v8434_v27, %s10601_s2 }
 0x68d   : > { %1509 = vadd.xlane.f32.xlu1 %v1508_v20 }
 0x68f   : > { %1506 = vadd.xlane.f32.xlu0 %v1505_v49 }
 0x691   : > { %1515 = vadd.xlane.f32.xlu1 %v1514_v12 }
 0x693   : > { %1512 = vadd.xlane.f32.xlu0 %v1511_v35 }
 0x695   : > { %1521 = vadd.xlane.f32.xlu1 %v1520_v43 }
 0x697   : > { %1518 = vadd.xlane.f32.xlu0 %v1517_v53 }
 0x6a6   : > { %1708 = vrot.lane.b32.xlu1 %v8420_v16, %s10601_s2 }
 0x6aa   : > { %1694 = vrot.lane.b32.xlu1 %v8442_v29, %s10595_s23 }
 0x6ad   : > { %1710 = vrot.lane.b32.xlu0 %v8442_v29, %s10601_s2  ;;  %s10639_s2 = smov 104  }
 0x6ae   : > { %1698 = vrot.lane.b32.xlu1 %v8434_v27, %s10595_s23 }
 0x6b1   : > { %1692 = vrot.lane.b32.xlu0 %v8420_v16, %s10595_s23 }
 0x6b2   : > { %1702 = vrot.lane.b32.xlu1 %v8430_v26, %s10595_s23 }
 0x6b5   : > { %1696 = vrot.lane.b32.xlu0 %v8446_v30, %s10595_s23 }
 0x6b6   : > { %1706 = vrot.lane.b32.xlu1 %v8428_v22, %s10595_s23 }
 0x6b9   : > { %1700 = vrot.lane.b32.xlu0 %v8438_v28, %s10595_s23 }
 0x6ba   : > { %1961 = vrot.lane.b32.xlu1 %v8424_v19, %s10593_s24 }
 0x6bd   : > { %1704 = vrot.lane.b32.xlu0 %v8424_v19, %s10595_s23  ;;  %s10597_s23 = smov 24  }
 0x6be   : > { %1959 = vrot.lane.b32.xlu1 %v8430_v26, %s10593_s24 }
 0x6c1   : > { %1963 = vrot.lane.b32.xlu0 %v8428_v22, %s10593_s24 }
 0x6c2   : > { %1957 = vrot.lane.b32.xlu1 %v8438_v28, %s10593_s24 }
 0x6c5   : > { %1955 = vrot.lane.b32.xlu0 %v8434_v27, %s10593_s24 }
 0x6c6   : > { %1953 = vrot.lane.b32.xlu1 %v8446_v30, %s10593_s24 }
 0x6c9   : > { %1951 = vrot.lane.b32.xlu0 %v8442_v29, %s10593_s24 }
 0x6ca   : > { %1949 = vrot.lane.b32.xlu1 %v8420_v16, %s10593_s24  ;;  %s10643_s24 = smov 16  }
 0x6cd   : > { %2132 = vrot.lane.b32.xlu0 %v8428_v22, %s10591_s26 }
 0x6ce   : > { %2130 = vrot.lane.b32.xlu1 %v8424_v19, %s10591_s26 }
 0x6e1   : > { %v1504_v45 = vpop.xlane.xlu1 %1503 }
 0x6e2   : > { %7843 = vrcp.f32 %v1504_v45 }
 0x6e3   : > { %v1501_v47 = vpop.xlane.xlu0 %1500 }
 0x6e4   : > { %7845 = vrcp.f32 %v1501_v47 }
 0x6ef   : > { %v7844_v18 = vpop.eup %7843 }
 0x6f0   : > { %v1526_v44 = vmul.f32 %v7844_v18, %v8716_v14  ;;  %v1715_v14 = vpop.permute.xlu0 %1714 }
 0x6f1   : > { %v7846_v50 = vpop.eup %7845 }
 0x6f2   : > { %v1524_v54 = vmul.f32 %v7846_v50, %v8720_v21  ;;  %v1713_v21 = vpop.permute.xlu1 %1712 }
 0x6f4   : > { %7126 = vmatprep.mubr.msk.f32.mxu1 %vm1040_vm5, %v1524_v54 }
 0x6f5   : > { %7127 = vmatmul.mubr.msk.f32.vlgmr.msra.gmra.mxu1 %vm1040_vm5, %v1526_v44 }
 0x6f6   : > { %7139 = vmatpush3.xpose.msk.msra.mxu1 %vm902_vm1, %v8674_v33 }
 0x6f7   : > { %7140 = vmatprep.subr.msk.mxu1 %vm902_vm1, %v8714_v48 }
 0x6fa   : > { %7141 = vmatpush3.xpose.msk.msra.mxu1 %vm902_vm1, %v8714_v48 }
 0x6fb   : > { %7142 = vmatprep.subr.msk.mxu1 %vm902_vm1, %v1719_v38 }
 0x6fe   : > { %7143 = vmatpush3.xpose.msk.msra.mxu1 %vm902_vm1, %v1719_v38 }
 0x6ff   : > { %7144 = vmatprep.subr.msk.mxu1 %vm902_vm1, %v1717_v39 }
 0x702   : > { %7145 = vmatpush3.xpose.msk.msra.mxu1 %vm902_vm1, %v1717_v39 }
 0x703   : > { %7146 = vmatprep.subr.msk.mxu1 %vm902_vm1, %v1715_v14 }
 0x706   : > { %7147 = vmatpush3.xpose.msk.msra.mxu1 %vm902_vm1, %v1715_v14 }
 0x707   : > { %7148 = vmatprep.subr.msk.mxu1 %vm902_vm1, %v1713_v21 }
 0x70a   : > { %7149 = vmatpush3.xpose.msk.msra.mxu1 %vm902_vm1, %v1713_v21 }
 0x716   : > { %v1510_v33 = vpop.xlane.xlu1 %1509 }
 0x717   : > { %7847 = vrcp.f32 %v1510_v33 }
 0x718   : > { %v1507_v48 = vpop.xlane.xlu0 %1506 }
 0x719   : > { %7849 = vrcp.f32 %v1507_v48 }
 0x71a   : > { %v1516_v55 = vpop.xlane.xlu1 %1515 }
 0x71b   : > { %7851 = vrcp.f32 %v1516_v55 }
 0x71c   : > { %v1513_v32 = vpop.xlane.xlu0 %1512 }
 0x71d   : > { %7853 = vrcp.f32 %v1513_v32 }
 0x71e   : > { %v1522_v46 = vpop.xlane.xlu1 %1521 }
 0x71f   : > { %7855 = vrcp.f32 %v1522_v46 }
 0x720   : > { %v1519_v58 = vpop.xlane.xlu0 %1518 }
 0x721   : > { %7857 = vrcp.f32 %v1519_v58 }
 0x722   : > { %v1709_v60 = vpop.permute.xlu1 %1708 }
 0x724   : > { %v1711_v61 = vpop.permute.xlu0 %1710  ;;  %v7848_v63 = vpop.eup %7847 }
 0x725   : > { %7150 = vmatprep.subr.msk.mxu1 %vm902_vm1, %v1711_v61  ;;  %v1530_v43 = vmul.f32 %v7848_v63, %v8728_v31 }
 0x726   : > { %v7850_v20 = vpop.eup %7849  ;;  %7151 = vmatpush3.xpose.msk.msra.mxu1 %vm902_vm1, %v1711_v61  ;;  %v1695_v49 = vpop.permute.xlu1 %1694 }
 0x727   : > { %7152 = vmatprep.subr.msk.mxu1 %vm902_vm1, %v1709_v60  ;;  %v1528_v12 = vmul.f32 %v7850_v20, %v8730_v41 }
 0x728   : > { %v1693_v35 = vpop.permute.xlu0 %1692  ;;  %v7852_v53 = vpop.eup %7851 }
 0x729   : > { %7129 = vmatprep.mubr.msk.f32.mxu1 %vm1040_vm5, %v1528_v12  ;;  %v1534_v18 = vmul.f32 %v7852_v53, %v8734_v13 }
 0x72a   : > { %v7854_v39 = vpop.eup %7853  ;;  %7130 = vmatmul.mubr.msk.f32.gmra.mxu1 %vm1040_vm5, %v1530_v43  ;;  %v1699_v38 = vpop.permute.xlu1 %1698 }
 0x72b   : > { %7153 = vmatpush3.xpose.msk.msra.mxu1 %vm902_vm1, %v1709_v60  ;;  %v1532_v45 = vmul.f32 %v7854_v39, %v8738_v37 }
 0x72c   : > { %v1697_v47 = vpop.permute.xlu0 %1696  ;;  %v7856_v50 = vpop.eup %7855 }
 0x72d   : > { %7132 = vmatprep.mubr.msk.f32.mxu1 %vm1040_vm5, %v1532_v45  ;;  %v1538_v14 = vmul.f32 %v7856_v50, %v8742_v17 }
 0x72e   : > { %v7858_v41 = vpop.eup %7857  ;;  %7133 = vmatmul.mubr.msk.f32.gmra.mxu1 %vm1040_vm5, %v1534_v18  ;;  %v1703_v31 = vpop.permute.xlu1 %1702 }
 0x72f   : > { %v1536_v54 = vmul.f32 %v7858_v41, %v8746_v36 }
 0x730   : > { %v1701_v44 = vpop.permute.xlu0 %1700 }
 0x731   : > { %7135 = vmatprep.mubr.msk.f32.mxu1 %vm1040_vm5, %v1536_v54 }
 0x732   : > { %7136 = vmatmul.mubr.msk.f32.gmra.mxu1 %vm1040_vm5, %v1538_v14  ;;  %v1707_v37 = vpop.permute.xlu1 %1706 }
 0x733   : > { %7154 = vmatprep.mubr.msk.f32.mxu1 %vm902_vm1, %v1693_v35 }
 0x734   : > { %v1705_v13 = vpop.permute.xlu0 %1704 }
 0x736   : > { %7155 = vmatmul.mubr.msk.f32.vlgmr.msra.gmra.mxu1 %vm902_vm1, %v1695_v49  ;;  %v1962_v21 = vpop.permute.xlu1 %1961 }
 0x737   : > { %7157 = vmatprep.mubr.msk.f32.mxu1 %vm902_vm1, %v1697_v47 }
 0x738   : > { %v1964_v33 = vpop.permute.xlu0 %1963 }
 0x739   : > { %7166 = vmatprep.subr.mxu0 %v1964_v33 }
 0x73a   : > { %7158 = vmatmul.mubr.msk.f32.gmra.mxu1 %vm902_vm1, %v1699_v38  ;;  %7167 = vmatpush3.msra.mxu0 %v1964_v33  ;;  %v1960_v36 = vpop.permute.xlu1 %1959 }
 0x73b   : > { %7160 = vmatprep.mubr.msk.f32.mxu1 %vm902_vm1, %v1701_v44  ;;  %7168 = vmatprep.subr.mxu0 %v1962_v21 }
 0x73c   : > { %v1956_v17 = vpop.permute.xlu0 %1955  ;;  %7169 = vmatpush3.msra.mxu0 %v1962_v21 }
 0x73d   : > { %7170 = vmatprep.subr.mxu0 %v1960_v36 }
 0x73e   : > { %7161 = vmatmul.mubr.msk.f32.gmra.mxu1 %vm902_vm1, %v1703_v31  ;;  %7171 = vmatpush3.msra.mxu0 %v1960_v36  ;;  %v1958_v48 = vpop.permute.xlu1 %1957 }
 0x73f   : > { %7163 = vmatprep.mubr.msk.f32.mxu1 %vm902_vm1, %v1705_v13  ;;  %7172 = vmatprep.subr.mxu0 %v1958_v48 }
 0x740   : > { %7173 = vmatpush3.msra.mxu0 %v1958_v48  ;;  %v1952_v55 = vpop.permute.xlu0 %1951 }
 0x741   : > { %7174 = vmatprep.subr.mxu0 %v1956_v17 }
 0x742   : > { %7164 = vmatmul.mubr.msk.f32.gmra.mxu1 %vm902_vm1, %v1707_v37  ;;  %7175 = vmatpush3.msra.mxu0 %v1956_v17  ;;  %v1954_v32 = vpop.permute.xlu1 %1953 }
 0x743   : > { %7176 = vmatprep.subr.mxu0 %v1954_v32 }
 0x744   : > { %7177 = vmatpush3.msra.mxu0 %v1954_v32  ;;  %v8834_v58 = vpop.permute.xlu0 %2132 }
 0x745   : > { %7178 = vmatprep.subr.mxu0 %v1952_v55 }
 0x746   : > { %7179 = vmatpush3.msra.mxu0 %v1952_v55  ;;  %v1950_v46 = vpop.permute.xlu1 %1949 }
 0x747   : > { %7180 = vmatprep.subr.mxu0 %v1950_v46 }
 0x748   : > { %7181 = vmatpush3.msra.mxu0 %v1950_v46 }
 0x749   : > { %7194 = vmatprep.subr.msk.mxu0 %vm902_vm1, %v8834_v58 }
 0x7b5   : > { %v8838_v60 = vpop.f32.mrf.mxu1 }
 0x7b7   : > { %v8840_v61 = vpop.f32.mrf.mxu1 }
 0x7ea   : > { %v8844_v20 = vpop.f32.mrf.mxu1 }
 0x7ec   : > { %v8846_v49 = vpop.f32.mrf.mxu1 }
 0x7ee   : > { %v8850_v35 = vpop.f32.mrf.mxu1 }
 0x7f0   : > { %v8852_v43 = vpop.f32.mrf.mxu1 }
 0x7f2   : > { %v8856_v39 = vpop.f32.mrf.mxu1 }
 0x7f4   : > { %v8858_v38 = vpop.f32.mrf.mxu1 }
 0x7f6   : > { %v7156_v47 = vpop.f32.mrf.mxu1 }
 0x7f7   : > { %v1828_v18 = vadd.f32 %v7156_v47, %v8514_v25 }
 0x7f8   : > { %v1822_v50 = vpop.f32.mrf.mxu1 }
 0x7f9   : > { %v1823_v41 = vadd.f32 %v1822_v50, %v8517_v62  ;;  %v1864_v31 = vsel %vm1040_vm5, %v1828_v18, -inf }
 0x7fa   : > { %1865 = vmax.xlane.f32.xlu1 %v1864_v31  ;;  %v7159_v54 = vpop.f32.mrf.mxu1 }
 0x7fb   : > { %v1838_v44 = vadd.f32 %v7159_v54, %v8520_v42  ;;  %v1861_v14 = vsel %vm1040_vm5, %v1823_v41, -inf }
 0x7fc   : > { %1862 = vmax.xlane.f32.xlu0 %v1861_v14  ;;  %v1832_v37 = vpop.f32.mrf.mxu1 }
 0x7fd   : > { %v1833_v21 = vadd.f32 %v1832_v37, %v8528_v52  ;;  %v1870_v36 = vsel %vm1040_vm5, %v1838_v44, -inf }
 0x7fe   : > { %v7162_v13 = vpop.f32.mrf.mxu1 }
 0x7ff   : > { %v1848_v33 = vadd.f32 %v7162_v13, %v8530_v15  ;;  %v1867_v47 = vsel %vm1040_vm5, %v1833_v21, -inf  ;;  %v8882_v13 = vpop.permute.xlu1 %2130 }
 0x800   : > { %1871 = vmax.xlane.f32.xlu0 %v1870_v36  ;;  %v1842_v17 = vpop.f32.mrf.mxu1 }
 0x801   : > { %v1876_v48 = vsel %vm1040_vm5, %v1848_v33, -inf  ;;  %v1843_v32 = vadd.f32 %v1842_v17, %v8537_v23 }
 0x802   : > { %1877 = vmax.xlane.f32.xlu1 %v1876_v48  ;;  %v7165_v55 = vpop.f32.mrf.mxu1 }
 0x803   : > { %v1858_v46 = vadd.f32 %v7165_v55, %v8539_v34  ;;  %v1873_v14 = vsel %vm1040_vm5, %v1843_v32, -inf }
 0x804   : > { %1868 = vmax.xlane.f32.xlu0 %v1867_v47  ;;  %v1852_v50 = vpop.f32.mrf.mxu1 }
 0x805   : > { %v1882_v31 = vsel %vm1040_vm5, %v1858_v46, -inf  ;;  %v1853_v54 = vadd.f32 %v1852_v50, %v8546_v40 }
 0x806   : > { %1883 = vmax.xlane.f32.xlu1 %v1882_v31 }
 0x807   : > { %v1879_v37 = vsel %vm1040_vm5, %v1853_v54, -inf }
 0x808   : > { %1874 = vmax.xlane.f32.xlu0 %v1873_v14 }
 0x80c   : > { %1880 = vmax.xlane.f32.xlu0 %v1879_v37 }
 0x817   : > { %2126 = vrot.lane.b32.xlu1 %v8438_v28, %s10591_s26 }
 0x822   : > { %2128 = vrot.lane.b32.xlu0 %v8430_v26, %s10591_s26 }
 0x883   : > { %v1866_v36 = vpop.xlane.xlu1 %1865 }
 0x884   : > { %v1886_v17 = vsub.f32 %v1828_v18, %v1866_v36 }
 0x885   : > { %v1863_v48 = vpop.xlane.xlu0 %1862 }
 0x886   : > { %v1895_v55 = vmul.f32 1.442695, %v1886_v17  ;;  %v1885_v47 = vsub.f32 %v1823_v41, %v1863_v48 }
 0x888   : > { %7859 = vpow2.f32 %v1895_v55  ;;  %v1893_v50 = vmul.f32 1.442695, %v1885_v47 }
 0x889   : > { %v1872_v63 = vpop.xlane.xlu0 %1871 }
 0x88a   : > { %7861 = vpow2.f32 %v1893_v50  ;;  %v1888_v36 = vsub.f32 %v1838_v44, %v1872_v63 }
 0x88b   : > { %v1878_v41 = vpop.xlane.xlu1 %1877 }
 0x88c   : > { %v1899_v55 = vmul.f32 1.442695, %v1888_v36  ;;  %v1890_v47 = vsub.f32 %v1848_v33, %v1878_v41 }
 0x88d   : > { %v1869_v18 = vpop.xlane.xlu0 %1868 }
 0x88e   : > { %v1887_v48 = vsub.f32 %v1833_v21, %v1869_v18  ;;  %7863 = vpow2.f32 %v1899_v55 }
 0x88f   : > { %v1884_v50 = vpop.xlane.xlu1 %1883 }
 0x890   : > { %v1892_v56 = vsub.f32 %v1858_v46, %v1884_v50 }
 0x891   : > { %v1875_v17 = vpop.xlane.xlu0 %1874 }
 0x892   : > { %v1889_v45 = vsub.f32 %v1843_v32, %v1875_v17  ;;  %v1907_v9 = vmul.f32 1.442695, %v1892_v56 }
 0x893   : > { %v2127_v46 = vpop.permute.xlu1 %2126 }
 0x894   : > { %v1901_v11 = vmul.f32 1.442695, %v1889_v45 }
 0x895   : > { %v8884_v31 = vpop.eup %7859  ;;  %v1881_v12 = vpop.xlane.xlu0 %1880 }
 0x896   : > { %v1912_v14 = vsel %vm1040_vm5, %v8884_v31, 0.0  ;;  %v1891_v10 = vsub.f32 %v1853_v54, %v1881_v12 }
 0x897   : > { %v8888_v37 = vpop.eup %7861  ;;  %1913 = vadd.xlane.f32.xlu1 %v1912_v14  ;;  %v1897_v14 = vmul.f32 1.442695, %v1887_v48 }
 0x898   : > { %v1909_v53 = vsel %vm1040_vm5, %v8888_v37, 0.0  ;;  %v1905_v8 = vmul.f32 1.442695, %v1891_v10 }
 0x899   : > { %1910 = vadd.xlane.f32.xlu0 %v1909_v53  ;;  %v1903_v53 = vmul.f32 1.442695, %v1890_v47  ;;  %7865 = vpow2.f32 %v1897_v14  ;;  %v2129_v54 = vpop.permute.xlu0 %2128 }
 0x89b   : > { %7867 = vpow2.f32 %v1903_v53  ;;  %v8896_v63 = vpop.eup %7863 }
 0x89c   : > { %7869 = vpow2.f32 %v1901_v11  ;;  %v1918_v21 = vsel %vm1040_vm5, %v8896_v63, 0.0 }
 0x89d   : > { %7871 = vpow2.f32 %v1907_v9 }
 0x89e   : > { %7873 = vpow2.f32 %v1905_v8 }
 0x8a6   : > { %v8898_v44 = vpop.eup %7865 }
 0x8a7   : > { %v1915_v45 = vsel %vm1040_vm5, %v8898_v44, 0.0 }
 0x8a8   : > { %2122 = vrot.lane.b32.xlu1 %v8446_v30, %s10591_s26  ;;  %v8902_v33 = vpop.eup %7867 }
 0x8a9   : > { %v8906_v12 = vpop.eup %7869  ;;  %v1924_v9 = vsel %vm1040_vm5, %v8902_v33, 0.0 }
 0x8aa   : > { %v8910_v8 = vpop.eup %7871  ;;  %v1921_v10 = vsel %vm1040_vm5, %v8906_v12, 0.0 }
 0x8ab   : > { %v8914_v11 = vpop.eup %7873  ;;  %v1930_v56 = vsel %vm1040_vm5, %v8910_v8, 0.0 }
 0x8ac   : > { %v1927_v32 = vsel %vm1040_vm5, %v8914_v11, 0.0 }
 0x8af   : > { %2124 = vrot.lane.b32.xlu0 %v8434_v27, %s10591_s26 }
 0x8cc   : > { %1919 = vadd.xlane.f32.xlu1 %v1918_v21 }
 0x8ce   : > { %1916 = vadd.xlane.f32.xlu0 %v1915_v45 }
 0x8d0   : > { %1925 = vadd.xlane.f32.xlu1 %v1924_v9 }
 0x8d2   : > { %1922 = vadd.xlane.f32.xlu0 %v1921_v10 }
 0x8d4   : > { %1931 = vadd.xlane.f32.xlu1 %v1930_v56 }
 0x8d6   : > { %1928 = vadd.xlane.f32.xlu0 %v1927_v32 }
 0x8e5   : > { %2118 = vrot.lane.b32.xlu1 %v8420_v16, %s10591_s26 }
 0x8e9   : > { %2104 = vrot.lane.b32.xlu1 %v8442_v29, %s10585_s29 }
 0x8ec   : > { %2120 = vrot.lane.b32.xlu0 %v8442_v29, %s10591_s26 }
 0x8ed   : > { %2108 = vrot.lane.b32.xlu1 %v8434_v27, %s10585_s29 }
 0x8f0   : > { %2102 = vrot.lane.b32.xlu0 %v8420_v16, %s10585_s29 }
 0x8f1   : > { %2112 = vrot.lane.b32.xlu1 %v8430_v26, %s10585_s29 }
 0x8f4   : > { %2106 = vrot.lane.b32.xlu0 %v8446_v30, %s10585_s29 }
 0x8f5   : > { %2116 = vrot.lane.b32.xlu1 %v8428_v22, %s10585_s29 }
 0x8f8   : > { %2110 = vrot.lane.b32.xlu0 %v8438_v28, %s10585_s29 }
 0x8fc   : > { %2114 = vrot.lane.b32.xlu0 %v8424_v19, %s10585_s29  ;;  %s10599_s29 = smov 16  }
 0x920   : > { %v1914_v18 = vpop.xlane.xlu1 %1913 }
 0x921   : > { %7875 = vrcp.f32 %v1914_v18 }
 0x922   : > { %v1911_v41 = vpop.xlane.xlu0 %1910 }
 0x923   : > { %7877 = vrcp.f32 %v1911_v41 }
 0x92e   : > { %v7876_v36 = vpop.eup %7875 }
 0x92f   : > { %v1936_v55 = vmul.f32 %v7876_v36, %v8884_v31  ;;  %v2125_v31 = vpop.permute.xlu0 %2124 }
 0x930   : > { %v7878_v17 = vpop.eup %7877 }
 0x931   : > { %v1934_v48 = vmul.f32 %v7878_v17, %v8888_v37  ;;  %v2123_v37 = vpop.permute.xlu1 %2122 }
 0x933   : > { %7182 = vmatprep.mubr.msk.f32.mxu0 %vm1040_vm5, %v1934_v48 }
 0x934   : > { %7183 = vmatmul.mubr.msk.f32.vlgmr.msra.gmra.mxu0 %vm1040_vm5, %v1936_v55 }
 0x935   : > { %7195 = vmatpush3.xpose.msk.msra.mxu0 %vm902_vm1, %v8834_v58 }
 0x936   : > { %7196 = vmatprep.subr.msk.mxu0 %vm902_vm1, %v8882_v13 }
 0x939   : > { %7197 = vmatpush3.xpose.msk.msra.mxu0 %vm902_vm1, %v8882_v13 }
 0x93a   : > { %7198 = vmatprep.subr.msk.mxu0 %vm902_vm1, %v2129_v54 }
 0x93d   : > { %7199 = vmatpush3.xpose.msk.msra.mxu0 %vm902_vm1, %v2129_v54 }
 0x93e   : > { %7200 = vmatprep.subr.msk.mxu0 %vm902_vm1, %v2127_v46 }
 0x941   : > { %7201 = vmatpush3.xpose.msk.msra.mxu0 %vm902_vm1, %v2127_v46 }
 0x942   : > { %7202 = vmatprep.subr.msk.mxu0 %vm902_vm1, %v2125_v31 }
 0x945   : > { %7203 = vmatpush3.xpose.msk.msra.mxu0 %vm902_vm1, %v2125_v31 }
 0x946   : > { %7204 = vmatprep.subr.msk.mxu0 %vm902_vm1, %v2123_v37 }
 0x949   : > { %7205 = vmatpush3.xpose.msk.msra.mxu0 %vm902_vm1, %v2123_v37 }
 0x955   : > { %v1920_v58 = vpop.xlane.xlu1 %1919 }
 0x956   : > { %7879 = vrcp.f32 %v1920_v58 }
 0x957   : > { %v1917_v13 = vpop.xlane.xlu0 %1916 }
 0x958   : > { %7881 = vrcp.f32 %v1917_v13 }
 0x959   : > { %v1926_v47 = vpop.xlane.xlu1 %1925 }
 0x95a   : > { %7883 = vrcp.f32 %v1926_v47 }
 0x95b   : > { %v1923_v50 = vpop.xlane.xlu0 %1922 }
 0x95c   : > { %7885 = vrcp.f32 %v1923_v50 }
 0x95d   : > { %v1932_v14 = vpop.xlane.xlu1 %1931 }
 0x95e   : > { %7887 = vrcp.f32 %v1932_v14 }
 0x95f   : > { %v1929_v53 = vpop.xlane.xlu0 %1928 }
 0x960   : > { %7889 = vrcp.f32 %v1929_v53 }
 0x961   : > { %v2119_v10 = vpop.permute.xlu1 %2118 }
 0x963   : > { %v2121_v21 = vpop.permute.xlu0 %2120  ;;  %v7880_v45 = vpop.eup %7879 }
 0x964   : > { %7206 = vmatprep.subr.msk.mxu0 %vm902_vm1, %v2121_v21  ;;  %v1940_v32 = vmul.f32 %v7880_v45, %v8896_v63 }
 0x965   : > { %v7882_v9 = vpop.eup %7881  ;;  %7207 = vmatpush3.xpose.msk.msra.mxu0 %vm902_vm1, %v2121_v21  ;;  %v2105_v63 = vpop.permute.xlu1 %2104 }
 0x966   : > { %7208 = vmatprep.subr.msk.mxu0 %vm902_vm1, %v2119_v10  ;;  %v1938_v56 = vmul.f32 %v7882_v9, %v8898_v44 }
 0x967   : > { %v7884_v46 = vpop.eup %7883  ;;  %v2103_v41 = vpop.permute.xlu0 %2102 }
 0x968   : > { %7185 = vmatprep.mubr.msk.f32.mxu0 %vm1040_vm5, %v1938_v56  ;;  %v1944_v36 = vmul.f32 %v7884_v46, %v8902_v33 }
 0x969   : > { %v7886_v54 = vpop.eup %7885  ;;  %7186 = vmatmul.mubr.msk.f32.gmra.mxu0 %vm1040_vm5, %v1940_v32 }
 0x96a   : > { %7209 = vmatpush3.xpose.msk.msra.mxu0 %vm902_vm1, %v2119_v10  ;;  %v1942_v18 = vmul.f32 %v7886_v54, %v8906_v12  ;;  %v2109_v12 = vpop.permute.xlu1 %2108 }
 0x96b   : > { %v7888_v17 = vpop.eup %7887  ;;  %v2107_v31 = vpop.permute.xlu0 %2106 }
 0x96c   : > { %7188 = vmatprep.mubr.msk.f32.mxu0 %vm1040_vm5, %v1942_v18  ;;  %v1948_v55 = vmul.f32 %v7888_v17, %v8910_v8 }
 0x96d   : > { %v7890_v48 = vpop.eup %7889  ;;  %7189 = vmatmul.mubr.msk.f32.gmra.mxu0 %vm1040_vm5, %v1944_v36 }
 0x96e   : > { %v1946_v44 = vmul.f32 %v7890_v48, %v8914_v11  ;;  %v2113_v37 = vpop.permute.xlu1 %2112 }
 0x96f   : > { %v2111_v33 = vpop.permute.xlu0 %2110 }
 0x970   : > { %7191 = vmatprep.mubr.msk.f32.mxu0 %vm1040_vm5, %v1946_v44 }
 0x971   : > { %7192 = vmatmul.mubr.msk.f32.gmra.mxu0 %vm1040_vm5, %v1948_v55 }
 0x972   : > { %7210 = vmatprep.mubr.msk.f32.mxu0 %vm902_vm1, %v2103_v41  ;;  %v2117_v8 = vpop.permute.xlu1 %2116 }
 0x973   : > { %v2115_v11 = vpop.permute.xlu0 %2114 }
 0x975   : > { %7211 = vmatmul.mubr.msk.f32.vlgmr.msra.gmra.mxu0 %vm902_vm1, %v2105_v63 }
 0x976   : > { %7213 = vmatprep.mubr.msk.f32.mxu0 %vm902_vm1, %v2107_v31 }
 0x979   : > { %7214 = vmatmul.mubr.msk.f32.gmra.mxu0 %vm902_vm1, %v2109_v12 }
 0x97a   : > { %7216 = vmatprep.mubr.msk.f32.mxu0 %vm902_vm1, %v2111_v33 }
 0x97d   : > { %7217 = vmatmul.mubr.msk.f32.gmra.mxu0 %vm902_vm1, %v2113_v37 }
 0x97e   : > { %7219 = vmatprep.mubr.msk.f32.mxu0 %vm902_vm1, %v2115_v11 }
 0x981   : > { %7220 = vmatmul.mubr.msk.f32.gmra.mxu0 %vm902_vm1, %v2117_v8 }
 0x9f4   : > { %v8982_v58 = vpop.f32.mrf.mxu0 }
 0x9f6   : > { %v8984_v13 = vpop.f32.mrf.mxu0 }
 0xa29   : > { %v8988_v50 = vpop.f32.mrf.mxu0 }
 0xa2b   : > { %v8990_v14 = vpop.f32.mrf.mxu0 }
 0xa2c   : > { %v7644_v53 = vpack.i.bf16 %v8988_v50, %v8990_v14 }
 0xa2d   : > { %v8994_v21 = vpop.f32.mrf.mxu0 }
 0xa2f   : > { %v8996_v45 = vpop.f32.mrf.mxu0 }
 0xa31   : > { %v9000_v10 = vpop.f32.mrf.mxu0 }
 0xa33   : > { %v9002_v56 = vpop.f32.mrf.mxu0 }
 0xa35   : > { %v7212_v46 = vpop.f32.mrf.mxu0 }
 0xa36   : > { %v2238_v54 = vadd.f32 %v7212_v46, %v8514_v25 }
 0xa37   : > { %v2232_v18 = vpop.f32.mrf.mxu0 }
 0xa38   : > { %v2233_v41 = vadd.f32 %v2232_v18, %v8517_v62  ;;  %v2274_v36 = vsel %vm1040_vm5, %v2238_v54, -inf }
 0xa39   : > { %2275 = vmax.xlane.f32.xlu1 %v2274_v36  ;;  %v7215_v17 = vpop.f32.mrf.mxu0 }
 0xa3a   : > { %v2248_v48 = vadd.f32 %v7215_v17, %v8520_v42  ;;  %v2271_v63 = vsel %vm1040_vm5, %v2233_v41, -inf }
 0xa3b   : > { %2272 = vmax.xlane.f32.xlu0 %v2271_v63  ;;  %v2242_v44 = vpop.f32.mrf.mxu0 }
 0xa3c   : > { %v2243_v31 = vadd.f32 %v2242_v44, %v8528_v52  ;;  %v2280_v33 = vsel %vm1040_vm5, %v2248_v48, -inf }
 0xa3d   : > { %v7218_v55 = vpop.f32.mrf.mxu0 }
 0xa3e   : > { %v2258_v12 = vadd.f32 %v7218_v55, %v8530_v15  ;;  %v2277_v36 = vsel %vm1040_vm5, %v2243_v31, -inf }
 0xa3f   : > { %2281 = vmax.xlane.f32.xlu0 %v2280_v33  ;;  %v2252_v37 = vpop.f32.mrf.mxu0 }
 0xa40   : > { %v2286_v11 = vsel %vm1040_vm5, %v2258_v12, -inf  ;;  %v2253_v46 = vadd.f32 %v2252_v37, %v8537_v23 }
 0xa41   : > { %2287 = vmax.xlane.f32.xlu1 %v2286_v11  ;;  %v7221_v8 = vpop.f32.mrf.mxu0 }
 0xa42   : > { %v2268_v18 = vadd.f32 %v7221_v8, %v8539_v34  ;;  %v2283_v55 = vsel %vm1040_vm5, %v2253_v46, -inf }
 0xa43   : > { %2278 = vmax.xlane.f32.xlu0 %v2277_v36  ;;  %v2262_v17 = vpop.f32.mrf.mxu0 }
 0xa44   : > { %v2292_v63 = vsel %vm1040_vm5, %v2268_v18, -inf  ;;  %v2263_v44 = vadd.f32 %v2262_v17, %v8546_v40 }
 0xa45   : > { %2293 = vmax.xlane.f32.xlu1 %v2292_v63 }
 0xa46   : > { %v2289_v33 = vsel %vm1040_vm5, %v2263_v44, -inf }
 0xa47   : > { %2284 = vmax.xlane.f32.xlu0 %v2283_v55 }
 0xa4b   : > { %2290 = vmax.xlane.f32.xlu0 %v2289_v33 }
 0xa56   : > { %2371 = vrot.lane.b32.xlu1 %v8424_v19, %s10589_s30 }
 0xa5a   : > { %2369 = vrot.lane.b32.xlu1 %v8430_v26, %s10589_s30 }
 0xa5e   : > { %2367 = vrot.lane.b32.xlu1 %v8438_v28, %s10589_s30 }
 0xa61   : > { %2373 = vrot.lane.b32.xlu0 %v8428_v22, %s10589_s30 }
 0xa62   : > { %2363 = vrot.lane.b32.xlu1 %v8446_v30, %s10589_s30 }
 0xa65   : > { %2365 = vrot.lane.b32.xlu0 %v8434_v27, %s10589_s30 }
 0xac2   : > { %v2276_v37 = vpop.xlane.xlu1 %2275 }
 0xac3   : > { %v2296_v11 = vsub.f32 %v2238_v54, %v2276_v37 }
 0xac4   : > { %v2273_v8 = vpop.xlane.xlu0 %2272 }
 0xac5   : > { %v2305_v36 = vmul.f32 1.442695, %v2296_v11  ;;  %v2295_v19 = vsub.f32 %v2233_v41, %v2273_v8 }
 0xac7   : > { %7891 = vpow2.f32 %v2305_v36  ;;  %v2303_v17 = vmul.f32 1.442695, %v2295_v19 }
 0xac8   : > { %v2282_v26 = vpop.xlane.xlu0 %2281 }
 0xac9   : > { %7893 = vpow2.f32 %v2303_v17  ;;  %v2298_v63 = vsub.f32 %v2248_v48, %v2282_v26 }
 0xaca   : > { %v2288_v28 = vpop.xlane.xlu1 %2287 }
 0xacb   : > { %v2309_v55 = vmul.f32 1.442695, %v2298_v63  ;;  %v2300_v33 = vsub.f32 %v2258_v12, %v2288_v28 }
 0xacc   : > { %v2279_v22 = vpop.xlane.xlu0 %2278 }
 0xacd   : > { %7895 = vpow2.f32 %v2309_v55  ;;  %v2313_v32 = vmul.f32 1.442695, %v2300_v33  ;;  %v2297_v30 = vsub.f32 %v2243_v31, %v2279_v22 }
 0xace   : > { %v2294_v9 = vpop.xlane.xlu1 %2293 }
 0xacf   : > { %7897 = vpow2.f32 %v2313_v32  ;;  %v2307_v27 = vmul.f32 1.442695, %v2297_v30  ;;  %v2302_v47 = vsub.f32 %v2268_v18, %v2294_v9 }
 0xad0   : > { %v2285_v54 = vpop.xlane.xlu0 %2284 }
 0xad1   : > { %7899 = vpow2.f32 %v2307_v27  ;;  %v2317_v37 = vmul.f32 1.442695, %v2302_v47  ;;  %v2299_v41 = vsub.f32 %v2253_v46, %v2285_v54 }
 0xad2   : > { %v2372_v11 = vpop.permute.xlu1 %2371 }
 0xad3   : > { %v2311_v8 = vmul.f32 1.442695, %v2299_v41  ;;  %7901 = vpow2.f32 %v2317_v37 }
 0xad4   : > { %v9034_v36 = vpop.eup %7891  ;;  %v2291_v48 = vpop.xlane.xlu0 %2290 }
 0xad5   : > { %7903 = vpow2.f32 %v2311_v8  ;;  %v2301_v12 = vsub.f32 %v2263_v44, %v2291_v48  ;;  %v2322_v19 = vsel %vm1040_vm5, %v9034_v36, 0.0  ;;  %v10619_v8 = vpack.i.bf16 %v8844_v20, %v8846_v49 }
 0xad6   : > { %v9038_v31 = vpop.eup %7893  ;;  %2323 = vadd.xlane.f32.xlu1 %v2322_v19  ;;  %v2370_v9 = vpop.permute.xlu1 %2369  ;;  %v10620_v48 = vpack.i.bf16 %v8856_v39, %v8858_v38  ;;  %v10622_v20 = vpack.i.bf16 %v8982_v58, %v8984_v13  ;;  %v10623_v49 = vpack.i.bf16 %v8850_v35, %v8852_v43 }
 0xad7   : > { %v2315_v32 = vmul.f32 1.442695, %v2301_v12  ;;  %v2319_v47 = vsel %vm1040_vm5, %v9038_v31, 0.0 }
 0xad8   : > { %2320 = vadd.xlane.f32.xlu0 %v2319_v47  ;;  %v2374_v46 = vpop.permute.xlu0 %2373 }
 0xad9   : > { %7905 = vpow2.f32 %v2315_v32  ;;  %7222 = vmatprep.subr.mxu1 %v2374_v46 }
 0xada   : > { %v9042_v18 = vpop.eup %7895  ;;  %7223 = vmatpush3.msra.mxu1 %v2374_v46  ;;  %v2368_v26 = vpop.permute.xlu1 %2367 }
 0xadb   : > { %7224 = vmatprep.subr.mxu1 %v2372_v11  ;;  %v2328_v44 = vsel %vm1040_vm5, %v9042_v18, 0.0 }
 0xadc   : > { %v9046_v17 = vpop.eup %7897  ;;  %2329 = vadd.xlane.f32.xlu1 %v2328_v44  ;;  %7225 = vmatpush3.msra.mxu1 %v2372_v11  ;;  %v2366_v22 = vpop.permute.xlu0 %2365 }
 0xadd   : > { %7226 = vmatprep.subr.mxu1 %v2370_v9  ;;  %v2334_v55 = vsel %vm1040_vm5, %v9046_v17, 0.0 }
 0xade   : > { %v7900_v63 = vpop.eup %7899  ;;  %7227 = vmatpush3.msra.mxu1 %v2370_v9  ;;  %v2364_v27 = vpop.permute.xlu1 %2363 }
 0xadf   : > { %7228 = vmatprep.subr.mxu1 %v2368_v26  ;;  %v2325_v28 = vsel %vm1040_vm5, %v7900_v63, 0.0 }
 0xae0   : > { %2326 = vadd.xlane.f32.xlu0 %v2325_v28  ;;  %2335 = vadd.xlane.f32.xlu1 %v2334_v55  ;;  %v9051_v33 = vpop.eup %7901 }
 0xae1   : > { %7229 = vmatpush3.msra.mxu1 %v2368_v26  ;;  %v2340_v37 = vsel %vm1040_vm5, %v9051_v33, 0.0 }
 0xae2   : > { %v7904_v30 = vpop.eup %7903  ;;  %7230 = vmatprep.subr.mxu1 %v2366_v22 }
 0xae3   : > { %7231 = vmatpush3.msra.mxu1 %v2366_v22  ;;  %v2331_v54 = vsel %vm1040_vm5, %v7904_v30, 0.0 }
 0xae4   : > { %7232 = vmatprep.subr.mxu1 %v2364_v27  ;;  %2332 = vadd.xlane.f32.xlu0 %v2331_v54 }
 0xae5   : > { %2341 = vadd.xlane.f32.xlu1 %v2340_v37  ;;  %7233 = vmatpush3.msra.mxu1 %v2364_v27 }
 0xae6   : > { %v7906_v41 = vpop.eup %7905 }
 0xae7   : > { %v2337_v11 = vsel %vm1040_vm5, %v7906_v41, 0.0 }
 0xae8   : > { %2338 = vadd.xlane.f32.xlu0 %v2337_v11 }
 0xaf6   : > { %2359 = vrot.lane.b32.xlu1 %v8420_v16, %s10589_s30  ;;  %v10621_v16 = vpack.i.bf16 %v8838_v60, %v8840_v61 }
 0xafa   : > { %7635 = vrot.lane.b32.xlu1 %v10619_v8, %s10587_s0  ;;  %v10624_v8 = vpack.i.bf16 %v8994_v21, %v8996_v45 }
 0xafe   : > { %7645 = vrot.lane.b32.xlu1 %v7644_v53, %s10599_s29  ;;  %2361 = vrot.lane.b32.xlu0 %v8442_v29, %s10589_s30  ;;  %s10640_s30 = smov 40  }
 0xb02   : > { %7655 = vrot.lane.b32.xlu1 %v10620_v48, %s10587_s0  ;;  %7630 = vrot.lane.b32.xlu0 %v10621_v16, %s10587_s0 }
 0xb06   : > { %7640 = vrot.lane.b32.xlu0 %v10622_v20, %s10599_s29 }
 0xb0a   : > { %7650 = vrot.lane.b32.xlu0 %v10623_v49, %s10587_s0  ;;  %v10625_v49 = vpack.i.bf16 %v9000_v10, %v9002_v56  ;;  %s10641_s0 = smov 8  }
 0xb5f   : > { %v2324_v29 = vpop.xlane.xlu1 %2323 }
 0xb61   : > { %v2321_v50 = vpop.xlane.xlu0 %2320 }
 0xb62   : > { %7907 = vrcp.f32 %v2321_v50 }
 0xb63   : > { %7909 = vrcp.f32 %v2324_v29 }
 0xb65   : > { %v2330_v39 = vpop.xlane.xlu1 %2329 }
 0xb69   : > { %v2327_v38 = vpop.xlane.xlu0 %2326  ;;  %v2336_v14 = vpop.xlane.xlu1 %2335 }
 0xb6a   : > { %7911 = vrcp.f32 %v2327_v38 }
 0xb6b   : > { %7913 = vrcp.f32 %v2330_v39 }
 0xb6d   : > { %v2333_v60 = vpop.xlane.xlu0 %2332 }
 0xb6e   : > { %7915 = vrcp.f32 %v2333_v60  ;;  %v2342_v13 = vpop.xlane.xlu1 %2341 }
 0xb6f   : > { %v7908_v61 = vpop.eup %7907  ;;  %7917 = vrcp.f32 %v2336_v14 }
 0xb70   : > { %v2344_v58 = vmul.f32 %v7908_v61, %v9038_v31  ;;  %v7910_v35 = vpop.eup %7909 }
 0xb71   : > { %v2339_v53 = vpop.xlane.xlu0 %2338  ;;  %v2346_v32 = vmul.f32 %v7910_v35, %v9034_v36 }
 0xb72   : > { %7919 = vrcp.f32 %v2339_v53  ;;  %7238 = vmatprep.mubr.msk.f32.mxu1 %vm1040_vm5, %v2344_v58  ;;  %v2360_v19 = vpop.permute.xlu1 %2359 }
 0xb73   : > { %7921 = vrcp.f32 %v2342_v13 }
 0xb75   : > { %v2362_v43 = vpop.permute.xlu0 %2361 }
 0xb76   : > { %7234 = vmatprep.subr.mxu1 %v2362_v43  ;;  %v7636_v38 = vpop.permute.xlu1 %7635 }
 0xb77   : > { %v7912_v12 = vpop.eup %7911  ;;  %7235 = vmatpush3.msra.mxu1 %v2362_v43  ;;  %v7638_v53 = vunpack.i.h.bf16 %v7636_v38  ;;  %v7637_v35 = vunpack.i.l.bf16 %v7636_v38 }
 0xb78   : > { %7236 = vmatprep.subr.mxu1 %v2360_v19  ;;  %v2348_v9 = vmul.f32 %v7912_v12, %v7900_v63  ;;  %v7914_v47 = vpop.eup %7913 }
 0xb79   : > { %7237 = vmatpush3.msra.mxu1 %v2360_v19  ;;  %v2350_v46 = vmul.f32 %v7914_v47, %v9042_v18  ;;  %v7753_v18 = vld [vmem:[%s10565_s6 + $0x8] sm:$0xff]   ;;  %v7631_v39 = vpop.permute.xlu0 %7630 }
 0xb7a   : > { %7239 = vmatmul.mubr.msk.f32.vlgmr.msra.gmra.mxu1 %vm1040_vm5, %v2346_v32  ;;  %7250 = vmatprep.subr.bf16.mxu1 %v7753_v18  ;;  %v7646_v45 = vpop.permute.xlu1 %7645  ;;  %v7633_v60 = vunpack.i.h.bf16 %v7631_v39  ;;  %v7632_v61 = vunpack.i.l.bf16 %v7631_v39 }
 0xb7b   : > { %v7916_v31 = vpop.eup %7915  ;;  %7241 = vmatprep.mubr.msk.f32.mxu1 %vm1040_vm5, %v2348_v9  ;;  %7251 = vmatpush3.bf16.msra.mxu1 %v7753_v18  ;;  %v7648_v9 = vunpack.i.h.bf16 %v7646_v45  ;;  %v7647_v47 = vunpack.i.l.bf16 %v7646_v45 }
 0xb7c   : > { %v2352_v44 = vmul.f32 %v7916_v31, %v7904_v30  ;;  %v7918_v26 = vpop.eup %7917  ;;  %v2609_v43 = vsel %vm902_vm1, %v8678_v57, %v7633_v60  ;;  %v2608_v12 = vsel %vm902_vm1, %v8680_v59, %v7632_v61  ;;  %v2610_v57 = vsel %vm902_vm1, %v8684_v24, %v7637_v35 }
 0xb7d   : > { %v2354_v36 = vmul.f32 %v7918_v26, %v9046_v17  ;;  %v7754_v17 = vld [vmem:[%s10565_s6] sm:$0xff]   ;;  %v7641_v21 = vpop.permute.xlu0 %7640 }
 0xb7e   : > { %7242 = vmatmul.mubr.msk.f32.gmra.mxu1 %vm1040_vm5, %v2350_v46  ;;  %7252 = vmatprep.subr.bf16.mxu1 %v7754_v17  ;;  %v7643_v58 = vunpack.i.h.bf16 %v7641_v21  ;;  %v7642_v13 = vunpack.i.l.bf16 %v7641_v21  ;;  %v7656_v10 = vpop.permute.xlu1 %7655 }
 0xb7f   : > { %v7920_v28 = vpop.eup %7919  ;;  %7244 = vmatprep.mubr.msk.f32.mxu1 %vm1040_vm5, %v2352_v44  ;;  %7253 = vmatpush3.bf16.msra.mxu1 %v7754_v17  ;;  %v7658_v24 = vunpack.i.h.bf16 %v7656_v10 }
 0xb80   : > { %v2356_v55 = vmul.f32 %v7920_v28, %v7906_v41  ;;  %v7922_v63 = vpop.eup %7921  ;;  %v2617_v31 = vsel %vm2616_vm11, %v2608_v12, %v7642_v13  ;;  %v2618_v46 = vsel %vm2616_vm11, %v2609_v43, %v7643_v58  ;;  %v2611_v28 = vsel %vm902_vm1, %v8682_v51, %v7638_v53 }
 0xb81   : > { %v2358_v22 = vmul.f32 %v7922_v63, %v9051_v33  ;;  %v7651_v14 = vpop.permute.xlu0 %7650 }
 0xb82   : > { %7245 = vmatmul.mubr.msk.f32.gmra.mxu1 %vm1040_vm5, %v2354_v36  ;;  %v7653_v63 = vunpack.i.h.bf16 %v7651_v14 }
 0xb83   : > { %7247 = vmatprep.mubr.msk.f32.mxu1 %vm1040_vm5, %v2356_v55 }
 0xb86   : > { %7248 = vmatmul.mubr.msk.f32.gmra.mxu1 %vm1040_vm5, %v2358_v22  ;;  %v7652_v22 = vunpack.i.l.bf16 %v7651_v14 }
 0xc3a   : > { %v7240_v30 = vpop.f32.mrf.mxu1 }
 0xc3c   : > { %v2473_v27 = vpop.f32.mrf.mxu1 }
 0xc3d   : > { %v7659_v54 = vpack.i.bf16 %v7240_v30, %v2473_v27  ;;  %v2619_v30 = vsel %vm2616_vm11, %v2610_v57, %v7647_v47  ;;  %v2620_v27 = vsel %vm2616_vm11, %v2611_v28, %v7648_v9 }
 0xc3e   : > { %v7243_v37 = vpop.f32.mrf.mxu1 }
 0xc3f   : > { %7660 = vrot.lane.b32.xlu0 %v7659_v54, %s10597_s23 }
 0xc40   : > { %v2483_v33 = vpop.f32.mrf.mxu1 }
 0xc41   : > { %v7669_v41 = vpack.i.bf16 %v7243_v37, %v2483_v33 }
 0xc42   : > { %v7246_v11 = vpop.f32.mrf.mxu1 }
 0xc43   : > { %7665 = vrot.lane.b32.xlu0 %v10624_v8, %s10599_s29  ;;  %7670 = vrot.lane.b32.xlu1 %v7669_v41, %s10597_s23  ;;  %v7657_v41 = vunpack.i.l.bf16 %v7656_v10 }
 0xc44   : > { %v2493_v48 = vpop.f32.mrf.mxu1 }
 0xc45   : > { %v7679_v16 = vpack.i.bf16 %v7246_v11, %v2493_v48 }
 0xc46   : > { %v7249_v20 = vpop.f32.mrf.mxu1 }
 0xc47   : > { %7675 = vrot.lane.b32.xlu1 %v10625_v49, %s10599_s29  ;;  %7680 = vrot.lane.b32.xlu0 %v7679_v16, %s10597_s23  ;;  %v2613_v16 = vsel %vm902_vm1, %v8686_v0, %v7653_v63  ;;  %v2615_v0 = vsel %vm902_vm1, %v8690_v2, %v7658_v24  ;;  %v6453_v2 = vld [vmem:[%s10566_s7] ss:$0 sm:$0xff] }
 0xc48   : > { %v2503_v29 = vpop.f32.mrf.mxu1 }
 0xc49   : > { %v7684_v50 = vpack.i.bf16 %v7249_v20, %v2503_v29  ;;  %v2612_v20 = vsel %vm902_vm1, %v8688_v1, %v7652_v22  ;;  %v2614_v1 = vsel %vm902_vm1, %v8692_v7, %v7657_v41  ;;  %v10629_v41 = vld [vmem:[#allocation5_spill] sm:$0xff] }
 0xc4b   : > { %7685 = vrot.lane.b32.xlu1 %v7684_v50, %s10597_s23  ;;  %s6666_s23 = sshll.u32 %s10655_s28, 6 }
 0xcb1   : > { %v7661_v56 = vpop.permute.xlu0 %7660 }
 0xcb2   : > { %v7663_v19 = vunpack.i.h.bf16 %v7661_v56  ;;  %v7662_v32 = vunpack.i.l.bf16 %v7661_v56 }
 0xcb4   : > { %v2627_v44 = vsel %vm2625_vm12, %v2618_v46, %v7663_v19  ;;  %v2626_v26 = vsel %vm2625_vm12, %v2617_v31, %v7662_v32 }
 0xcb5   : > { %v7666_v36 = vpop.permute.xlu0 %7665  ;;  %v7671_v59 = vpop.permute.xlu1 %7670  ;;  %v2634_v55 = vpack.c.bf16 %v2627_v44, %v2626_v26 }
 0xcb6   : > { %v7673_v18 = vunpack.i.h.bf16 %v7671_v59  ;;  %v7672_v17 = vunpack.i.l.bf16 %v7671_v59  ;;  %v7668_v54 = vunpack.i.h.bf16 %v7666_v36  ;;  %v7667_v37 = vunpack.i.l.bf16 %v7666_v36 }
 0xcb7   : > { %7254 = vmatprep.mubr.msk.bf16.mxu1 %vm640_vm0, %v2634_v55 }
 0xcb8   : > { %v2628_v51 = vsel %vm2625_vm12, %v2619_v30, %v7672_v17  ;;  %v2629_v33 = vsel %vm2625_vm12, %v2620_v27, %v7673_v18  ;;  %v2622_v50 = vsel %vm2616_vm11, %v2613_v16, %v7668_v54  ;;  %v2621_v39 = vsel %vm2616_vm11, %v2612_v20, %v7667_v37  ;;  %v10626_v30 = vld [vmem:[#allocation2_spill] sm:$0xff]  ;;  %v10627_v37 = vld [vmem:[#allocation3_spill] sm:$0xff] }
 0xcb9   : > { %v2635_v11 = vpack.c.bf16 %v2629_v33, %v2628_v51  ;;  %v7681_v8 = vpop.permute.xlu0 %7680  ;;  %v7676_v48 = vpop.permute.xlu1 %7675  ;;  %v10628_v33 = vld [vmem:[#allocation4_spill] sm:$0xff] }
 0xcba   : > { %v7683_v49 = vunpack.i.h.bf16 %v7681_v8  ;;  %v7682_v29 = vunpack.i.l.bf16 %v7681_v8  ;;  %v7678_v38 = vunpack.i.h.bf16 %v7676_v48  ;;  %v7677_v21 = vunpack.i.l.bf16 %v7676_v48 }
 0xcbb   : > { %7255 = vmatmul.mubr.msk.bf16.vlgmr.msra.gmra.mxu1 %vm640_vm0, %v2635_v11 }
 0xcbc   : > { %v2631_v45 = vsel %vm2625_vm12, %v2622_v50, %v7683_v49  ;;  %v2630_v14 = vsel %vm2625_vm12, %v2621_v39, %v7682_v29  ;;  %v2623_v53 = vsel %vm2616_vm11, %v2614_v1, %v7677_v21  ;;  %v2624_v35 = vsel %vm2616_vm11, %v2615_v0, %v7678_v38 }
 0xcbd   : > { %v7686_v60 = vpop.permute.xlu1 %7685  ;;  %v2636_v61 = vpack.c.bf16 %v2631_v45, %v2630_v14 }
 0xcbe   : > { %v7688_v58 = vunpack.i.h.bf16 %v7686_v60  ;;  %v7687_v13 = vunpack.i.l.bf16 %v7686_v60 }
 0xcbf   : > { %7258 = vmatprep.mubr.msk.bf16.mxu1 %vm640_vm0, %v2636_v61 }
 0xcc0   : > { %v2632_v10 = vsel %vm2625_vm12, %v2623_v53, %v7687_v13  ;;  %v2633_v56 = vsel %vm2625_vm12, %v2624_v35, %v7688_v58 }
 0xcc1   : > { %v2637_v43 = vpack.c.bf16 %v2633_v56, %v2632_v10 }
 0xcc3   : > { %7259 = vmatmul.mubr.msk.bf16.gmra.mxu1 %vm640_vm0, %v2637_v43 }
 0xd7b   : > { %v7256_v12 = vpop.f32.mrf.mxu1 }
 0xd7c   : > { %v2716_v19 = vadd.f32 %v7256_v12, %v6453_v2 }
 0xd7d   : > { %v2707_v7 = vpop.f32.mrf.mxu1 }
 0xd7e   : > { %v2708_v32 = vadd.f32 %v6453_v2, %v2707_v7  ;;  %v9159_v46 = vadd.f32 %v8315_v4, %v2716_v19 }
 0xd7f   : > { %v7257_v9 = vpop.f32.mrf.mxu1 }
 0xd80   : > { %v9156_v47 = vadd.f32 %v8313_v3, %v2708_v32  ;;  %v2719_v44 = vadd.f32 %v7257_v9, %v6453_v2  ;;  %v2754_v4 = vsel %vm640_vm0, %v9159_v46, 0.0 }
 0xd81   : > { %v2710_v31 = vpop.f32.mrf.mxu1 }
 0xd82   : > { %v2711_v26 = vadd.f32 %v6453_v2, %v2710_v31  ;;  %v2748_v28 = vsel %vm640_vm0, %v9156_v47, 0.0  ;;  %v9167_v55 = vadd.f32 %v8319_v6, %v2719_v44 }
 0xd83   : > { %v7260_v57 = vpop.f32.mrf.mxu1  ;;  %2749 = vadd.xlane.f32.xlu0 %v2748_v28 }
 0xd84   : > { %v9164_v36 = vadd.f32 %v8317_v5, %v2711_v26  ;;  %v2732_v18 = vadd.f32 %v7260_v57, %v6453_v2  ;;  %v2757_v6 = vsel %vm640_vm0, %v9167_v55, 0.0 }
 0xd85   : > { %v2723_v59 = vpop.f32.mrf.mxu1 }
 0xd86   : > { %v2724_v3 = vadd.f32 %v6453_v2, %v2723_v59  ;;  %v2751_v63 = vsel %vm640_vm0, %v9164_v36, 0.0  ;;  %v9182_v24 = vadd.f32 %v10628_v33, %v2732_v18 }
 0xd87   : > { %v7261_v22 = vpop.f32.mrf.mxu1  ;;  %2752 = vadd.xlane.f32.xlu1 %v2751_v63  ;;  %2755 = vadd.xlane.f32.xlu0 %v2754_v4 }
 0xd88   : > { %v9174_v27 = vadd.f32 %v10626_v30, %v2724_v3  ;;  %v2735_v5 = vadd.f32 %v7261_v22, %v6453_v2  ;;  %v2766_v20 = vsel %vm640_vm0, %v9182_v24, 0.0 }
 0xd89   : > { %v2726_v17 = vpop.f32.mrf.mxu1 }
 0xd8a   : > { %v2727_v54 = vadd.f32 %v6453_v2, %v2726_v17  ;;  %v9185_v11 = vadd.f32 %v10629_v41, %v2735_v5  ;;  %v2760_v48 = vsel %vm640_vm0, %v9174_v27, 0.0 }
 0xd8b   : > { %2758 = vadd.xlane.f32.xlu0 %v2757_v6  ;;  %v7755_v6 = vld [vmem:[%s10569_s10 + $0x8] sm:$0xff]  }
 0xd8c   : > { %v9179_v51 = vadd.f32 %v10627_v37, %v2727_v54  ;;  %v2769_v16 = vsel %vm640_vm0, %v9185_v11, 0.0  ;;  %7262 = vmatprep.subr.bf16.mxu0 %v7755_v6  ;;  %v7756_v37 = vld [vmem:[%s10569_s10] sm:$0xff]  }
 0xd8d   : > { %7263 = vmatpush3.bf16.msra.mxu0 %v7755_v6 }
 0xd8e   : > { %v2763_v8 = vsel %vm640_vm0, %v9179_v51, 0.0  ;;  %7264 = vmatprep.subr.bf16.mxu0 %v7756_v37 }
 0xd8f   : > { %2764 = vadd.xlane.f32.xlu1 %v2763_v8  ;;  %2761 = vadd.xlane.f32.xlu0 %v2760_v48 }
 0xd91   : > { %7265 = vmatpush3.bf16.msra.mxu0 %v7756_v37 }
 0xd93   : > { %2770 = vadd.xlane.f32.xlu1 %v2769_v16  ;;  %2767 = vadd.xlane.f32.xlu0 %v2766_v20 }
 0xe0c   : > { %v2750_v49 = vpop.xlane.xlu0 %2749 }
 0xe0d   : > { %v2772_v29 = vmul.f32 0.03125, %v2750_v49 }
 0xe0f   : > { %v9196_v50 = vsub.f32 %v9156_v47, %v2772_v29 }
 0xe10   : > { %v2753_v39 = vpop.xlane.xlu1 %2752  ;;  %v2756_v38 = vpop.xlane.xlu0 %2755 }
 0xe11   : > { %v2773_v21 = vmul.f32 0.03125, %v2753_v39  ;;  %v2774_v45 = vmul.f32 0.03125, %v2756_v38  ;;  %v2788_v14 = vmul.f32 %v9196_v50, %v9196_v50 }
 0xe13   : > { %v9201_v60 = vsub.f32 %v9164_v36, %v2773_v21  ;;  %v9204_v61 = vsub.f32 %v9159_v46, %v2774_v45  ;;  %v2796_v0 = vsel %vm640_vm0, %v2788_v14, 0.0 }
 0xe14   : > { %2797 = vadd.xlane.f32.xlu0 %v2796_v0  ;;  %v2759_v1 = vpop.xlane.xlu0 %2758 }
 0xe15   : > { %v2775_v58 = vmul.f32 0.03125, %v2759_v1  ;;  %v2789_v13 = vmul.f32 %v9201_v60, %v9201_v60  ;;  %v2790_v53 = vmul.f32 %v9204_v61, %v9204_v61 }
 0xe17   : > { %v9212_v35 = vsub.f32 %v9167_v55, %v2775_v58  ;;  %v2799_v10 = vsel %vm640_vm0, %v2789_v13, 0.0  ;;  %v2802_v56 = vsel %vm640_vm0, %v2790_v53, 0.0 }
 0xe18   : > { %2800 = vadd.xlane.f32.xlu1 %v2799_v10  ;;  %v2765_v43 = vpop.xlane.xlu1 %2764  ;;  %2803 = vadd.xlane.f32.xlu0 %v2802_v56  ;;  %v2762_v12 = vpop.xlane.xlu0 %2761 }
 0xe19   : > { %v2777_v2 = vmul.f32 0.03125, %v2765_v43  ;;  %v2776_v7 = vmul.f32 0.03125, %v2762_v12  ;;  %v2791_v19 = vmul.f32 %v9212_v35, %v9212_v35 }
 0xe1b   : > { %v9219_v32 = vsub.f32 %v9179_v51, %v2777_v2  ;;  %v9222_v9 = vsub.f32 %v9174_v27, %v2776_v7  ;;  %v2805_v31 = vsel %vm640_vm0, %v2791_v19, 0.0 }
 0xe1c   : > { %v2771_v44 = vpop.xlane.xlu1 %2770  ;;  %2806 = vadd.xlane.f32.xlu1 %v2805_v31  ;;  %v2768_v26 = vpop.xlane.xlu0 %2767 }
 0xe1d   : > { %v2779_v28 = vmul.f32 0.03125, %v2771_v44  ;;  %v2778_v57 = vmul.f32 0.03125, %v2768_v26  ;;  %v2793_v59 = vmul.f32 %v9219_v32, %v9219_v32  ;;  %v2792_v3 = vmul.f32 %v9222_v9, %v9222_v9  ;;  %v6460_v44 = vld [vmem:[%s10567_s8] ss:$0 sm:$0xff] }
 0xe1f   : > { %v9230_v63 = vsub.f32 %v9185_v11, %v2779_v28  ;;  %v9233_v4 = vsub.f32 %v9182_v24, %v2778_v57  ;;  %v2811_v22 = vsel %vm640_vm0, %v2793_v59, 0.0  ;;  %v2808_v18 = vsel %vm640_vm0, %v2792_v3, 0.0 }
 0xe20   : > { %2812 = vadd.xlane.f32.xlu1 %v2811_v22  ;;  %2809 = vadd.xlane.f32.xlu0 %v2808_v18  ;;  %v6461_v22 = vld [vmem:[%s10568_s9] ss:$0 sm:$0xff] }
 0xe21   : > { %v2795_v17 = vmul.f32 %v9230_v63, %v9230_v63  ;;  %v2794_v30 = vmul.f32 %v9233_v4, %v9233_v4 }
 0xe23   : > { %v2817_v5 = vsel %vm640_vm0, %v2795_v17, 0.0  ;;  %v2814_v54 = vsel %vm640_vm0, %v2794_v30, 0.0 }
 0xe24   : > { %2818 = vadd.xlane.f32.xlu1 %v2817_v5  ;;  %2815 = vadd.xlane.f32.xlu0 %v2814_v54 }
 0xe9d   : > { %v2798_v33 = vpop.xlane.xlu0 %2797 }
 0xe9e   : > { %v2820_v41 = vmul.f32 0.03125, %v2798_v33 }
 0xea0   : > { %v2828_v8 = vadd.f32 1e-05, %v2820_v41 }
 0xea1   : > { %v2801_v48 = vpop.xlane.xlu1 %2800  ;;  %v2804_v16 = vpop.xlane.xlu0 %2803 }
 0xea2   : > { %7923 = vrsqrt.f32 %v2828_v8  ;;  %v2821_v20 = vmul.f32 0.03125, %v2801_v48  ;;  %v2822_v49 = vmul.f32 0.03125, %v2804_v16 }
 0xea4   : > { %v2829_v29 = vadd.f32 1e-05, %v2821_v20  ;;  %v2830_v39 = vadd.f32 1e-05, %v2822_v49 }
 0xea5   : > { %v2807_v38 = vpop.xlane.xlu1 %2806 }
 0xea6   : > { %7925 = vrsqrt.f32 %v2829_v29  ;;  %v2823_v21 = vmul.f32 0.03125, %v2807_v38 }
 0xea7   : > { %7927 = vrsqrt.f32 %v2830_v39 }
 0xea8   : > { %v2831_v45 = vadd.f32 1e-05, %v2823_v21 }
 0xea9   : > { %v2813_v14 = vpop.xlane.xlu1 %2812  ;;  %v2810_v0 = vpop.xlane.xlu0 %2809 }
 0xeaa   : > { %7929 = vrsqrt.f32 %v2831_v45  ;;  %v2825_v1 = vmul.f32 0.03125, %v2813_v14  ;;  %v2824_v58 = vmul.f32 0.03125, %v2810_v0 }
 0xeac   : > { %v2833_v13 = vadd.f32 1e-05, %v2825_v1  ;;  %v2832_v53 = vadd.f32 1e-05, %v2824_v58 }
 0xead   : > { %v2819_v10 = vpop.xlane.xlu1 %2818  ;;  %v2816_v56 = vpop.xlane.xlu0 %2815 }
 0xeae   : > { %7931 = vrsqrt.f32 %v2833_v13  ;;  %v2827_v43 = vmul.f32 0.03125, %v2819_v10  ;;  %v2826_v12 = vmul.f32 0.03125, %v2816_v56  ;;  %v7757_v13 = vld [vmem:[%s10571_s12 + $0x38] sm:$0xff]   ;;  %v7762_v56 = vld [vmem:[%s10571_s12 + $0x10] sm:$0xff]  }
 0xeaf   : > { %v7924_v2 = vpop.eup %7923  ;;  %7933 = vrsqrt.f32 %v2832_v53  ;;  %7274 = vmatprep.subr.bf16.mxu1 %v7757_v13  ;;  %v7760_v53 = vld [vmem:[%s10571_s12 + $0x20] sm:$0xff]   ;;  %v7761_v10 = vld [vmem:[%s10571_s12 + $0x18] sm:$0xff]  }
 0xeb0   : > { %v2835_v7 = vadd.f32 1e-05, %v2827_v43  ;;  %v2834_v19 = vadd.f32 1e-05, %v2826_v12  ;;  %v2844_v31 = vmul.f32 %v7924_v2, %v9196_v50  ;;  %7275 = vmatpush3.bf16.msra.mxu1 %v7757_v13  ;;  %v7763_v43 = vld [vmem:[%s10571_s12 + $0x8] sm:$0xff]   ;;  %v7764_v12 = vld [vmem:[%s10571_s12] sm:$0xff]  }
 0xeb1   : > { %v6462_v2 = vld [vmem:[%s10570_s11] ss:$0 sm:$0xff] }
 0xeb2   : > { %7935 = vrsqrt.f32 %v2835_v7  ;;  %v2858_v59 = vmul.f32 %v6460_v44, %v2844_v31 }
 0xeb3   : > { %v7926_v26 = vpop.eup %7925  ;;  %7937 = vrsqrt.f32 %v2834_v19 }
 0xeb4   : > { %v7928_v28 = vpop.eup %7927  ;;  %v2845_v57 = vmul.f32 %v7926_v26, %v9201_v60  ;;  %v2872_v5 = vadd.f32 %v6461_v22, %v2858_v59 }
 0xeb5   : > { %v2846_v3 = vmul.f32 %v7928_v28, %v9204_v61 }
 0xeb6   : > { %v2859_v18 = vmul.f32 %v6460_v44, %v2845_v57 }
 0xeb7   : > { %v7930_v17 = vpop.eup %7929  ;;  %v2860_v50 = vmul.f32 %v6460_v44, %v2846_v3 }
 0xeb8   : > { %v2847_v30 = vmul.f32 %v7930_v17, %v9212_v35  ;;  %v2873_v54 = vadd.f32 %v6461_v22, %v2859_v18 }
 0xeb9   : > { %v2874_v60 = vadd.f32 %v6461_v22, %v2860_v50 }
 0xeba   : > { %v2861_v6 = vmul.f32 %v6460_v44, %v2847_v30  ;;  %v2880_v37 = vpack.c.bf16 %v2873_v54, %v2872_v5 }
 0xebb   : > { %v7932_v33 = vpop.eup %7931 }
 0xebc   : > { %v7934_v41 = vpop.eup %7933  ;;  %7266 = vmatprep.mubr.msk.bf16.mxu0 %vm640_vm0, %v2880_v37  ;;  %v2875_v8 = vadd.f32 %v6461_v22, %v2861_v6  ;;  %v2849_v61 = vmul.f32 %v7932_v33, %v9219_v32 }
 0xebd   : > { %v2848_v48 = vmul.f32 %v7934_v41, %v9222_v9 }
 0xebe   : > { %v2881_v16 = vpack.c.bf16 %v2875_v8, %v2874_v60  ;;  %v2863_v20 = vmul.f32 %v6460_v44, %v2849_v61 }
 0xebf   : > { %v7936_v49 = vpop.eup %7935  ;;  %v2862_v29 = vmul.f32 %v6460_v44, %v2848_v48 }
 0xec0   : > { %v7938_v39 = vpop.eup %7937  ;;  %7267 = vmatmul.mubr.msk.bf16.vlgmr.msra.gmra.mxu0 %vm640_vm0, %v2881_v16  ;;  %v2877_v35 = vadd.f32 %v6461_v22, %v2863_v20  ;;  %v2851_v38 = vmul.f32 %v7936_v49, %v9230_v63  ;;  %v7758_v63 = vld [vmem:[%s10571_s12 + $0x30] sm:$0xff]  }
 0xec1   : > { %v2876_v21 = vadd.f32 %v6461_v22, %v2862_v29  ;;  %v2850_v45 = vmul.f32 %v7938_v39, %v9233_v4  ;;  %7276 = vmatprep.subr.bf16.mxu1 %v7758_v63  ;;  %v7759_v4 = vld [vmem:[%s10571_s12 + $0x28] sm:$0xff]  }
 0xec2   : > { %v2865_v14 = vmul.f32 %v6460_v44, %v2851_v38  ;;  %7277 = vmatpush3.bf16.msra.mxu1 %v7758_v63 }
 0xec3   : > { %v2882_v0 = vpack.c.bf16 %v2877_v35, %v2876_v21  ;;  %v2864_v1 = vmul.f32 %v6460_v44, %v2850_v45  ;;  %7278 = vmatprep.subr.bf16.mxu1 %v7759_v4 }
 0xec4   : > { %v2879_v58 = vadd.f32 %v6461_v22, %v2865_v14 }
 0xec5   : > { %7270 = vmatprep.mubr.msk.bf16.mxu0 %vm640_vm0, %v2882_v0  ;;  %v2878_v32 = vadd.f32 %v6461_v22, %v2864_v1 }
 0xec6   : > { %7279 = vmatpush3.bf16.msra.mxu1 %v7759_v4 }
 0xec7   : > { %v2883_v9 = vpack.c.bf16 %v2879_v58, %v2878_v32  ;;  %7280 = vmatprep.subr.bf16.mxu1 %v7760_v53 }
 0xec9   : > { %7271 = vmatmul.mubr.msk.bf16.gmra.mxu0 %vm640_vm0, %v2883_v9 }
 0xeca   : > { %7281 = vmatpush3.bf16.msra.mxu1 %v7760_v53 }
 0xecb   : > { %7282 = vmatprep.subr.bf16.mxu1 %v7761_v10 }
 0xece   : > { %7283 = vmatpush3.bf16.msra.mxu1 %v7761_v10 }
 0xecf   : > { %7284 = vmatprep.subr.bf16.mxu1 %v7762_v56 }
 0xed2   : > { %7285 = vmatpush3.bf16.msra.mxu1 %v7762_v56 }
 0xed3   : > { %7286 = vmatprep.subr.bf16.mxu1 %v7763_v43 }
 0xed6   : > { %7287 = vmatpush3.bf16.msra.mxu1 %v7763_v43 }
 0xed7   : > { %7288 = vmatprep.subr.bf16.mxu1 %v7764_v12 }
 0xeda   : > { %7289 = vmatpush3.bf16.msra.mxu1 %v7764_v12 }
 0xf80   : > { %v7268_v7 = vpop.f32.mrf.mxu0 }
 0xf81   : > { %v9294_v19 = vadd.f32 %v7268_v7, %v6462_v2 }
 0xf82   : > { %v2953_v31 = vpop.f32.mrf.mxu0 }
 0xf83   : > { %v2986_v44 = vmul.f32 %v9294_v19, %v9294_v19  ;;  %v9298_v26 = vadd.f32 %v6462_v2, %v2953_v31 }
 0xf84   : > { %v7269_v28 = vpop.f32.mrf.mxu0 }
 0xf85   : > { %v2994_v57 = vmul.f32 %v2986_v44, %v9294_v19  ;;  %v2984_v59 = vmul.f32 %v9298_v26, %v9298_v26  ;;  %v9303_v3 = vadd.f32 %v7269_v28, %v6462_v2 }
 0xf86   : > { %v2956_v22 = vpop.f32.mrf.mxu0 }
 0xf87   : > { %v3002_v18 = vmul.f32 0.044715, %v2994_v57  ;;  %v2992_v17 = vmul.f32 %v2984_v59, %v9298_v26  ;;  %v2987_v50 = vmul.f32 %v9303_v3, %v9303_v3  ;;  %v9308_v30 = vadd.f32 %v6462_v2, %v2956_v22 }
 0xf89   : > { %v3010_v5 = vadd.f32 %v3002_v18, %v9294_v19  ;;  %v3000_v54 = vmul.f32 0.044715, %v2992_v17  ;;  %v2995_v6 = vmul.f32 %v2987_v50, %v9303_v3  ;;  %v2985_v37 = vmul.f32 %v9308_v30, %v9308_v30  ;;  %v7272_v33 = vpop.f32.mrf.mxu0 }
 0xf8a   : > { %v9314_v41 = vadd.f32 %v7272_v33, %v6462_v2 }
 0xf8b   : > { %v3018_v60 = vmul.f32 0.7978846, %v3010_v5  ;;  %v3008_v8 = vadd.f32 %v3000_v54, %v9298_v26  ;;  %v3003_v61 = vmul.f32 0.044715, %v2995_v6  ;;  %v2993_v48 = vmul.f32 %v2985_v37, %v9308_v30  ;;  %v2969_v16 = vpop.f32.mrf.mxu0 }
 0xf8c   : > { %v2990_v20 = vmul.f32 %v9314_v41, %v9314_v41  ;;  %v9320_v49 = vadd.f32 %v6462_v2, %v2969_v16 }
 0xf8d   : > { %v3016_v29 = vmul.f32 0.7978846, %v3008_v8  ;;  %v3011_v39 = vadd.f32 %v3003_v61, %v9303_v3  ;;  %v3001_v35 = vmul.f32 0.044715, %v2993_v48  ;;  %v7273_v38 = vpop.f32.mrf.mxu0  ;;  %7939 = vtanh.f32 %v3018_v60 }
 0xf8e   : > { %v2998_v21 = vmul.f32 %v2990_v20, %v9314_v41  ;;  %v2988_v45 = vmul.f32 %v9320_v49, %v9320_v49  ;;  %v2981_v14 = vadd.f32 %v7273_v38, %v6462_v2 }
 0xf8f   : > { %7941 = vtanh.f32 %v3016_v29  ;;  %v3019_v0 = vmul.f32 0.7978846, %v3011_v39  ;;  %v3009_v1 = vadd.f32 %v3001_v35, %v9308_v30  ;;  %v2972_v58 = vpop.f32.mrf.mxu0 }
 0xf90   : > { %v3006_v32 = vmul.f32 0.044715, %v2998_v21  ;;  %v2996_v9 = vmul.f32 %v2988_v45, %v9320_v49  ;;  %v2991_v13 = vmul.f32 %v2981_v14, %v2981_v14  ;;  %v2973_v63 = vadd.f32 %v6462_v2, %v2972_v58 }
 0xf91   : > { %7943 = vtanh.f32 %v3019_v0  ;;  %v3017_v4 = vmul.f32 0.7978846, %v3009_v1 }
 0xf92   : > { %v3014_v53 = vadd.f32 %v3006_v32, %v9314_v41  ;;  %v3004_v10 = vmul.f32 0.044715, %v2996_v9  ;;  %v2999_v56 = vmul.f32 %v2991_v13, %v2981_v14  ;;  %v2989_v43 = vmul.f32 %v2973_v63, %v2973_v63 }
 0xf93   : > { %7945 = vtanh.f32 %v3017_v4 }
 0xf94   : > { %v3022_v12 = vmul.f32 0.7978846, %v3014_v53  ;;  %v3012_v7 = vadd.f32 %v3004_v10, %v9320_v49  ;;  %v3007_v31 = vmul.f32 0.044715, %v2999_v56  ;;  %v2997_v44 = vmul.f32 %v2989_v43, %v2973_v63 }
 0xf96   : > { %v3020_v28 = vmul.f32 0.7978846, %v3012_v7  ;;  %v3015_v57 = vadd.f32 %v3007_v31, %v2981_v14  ;;  %v3005_v59 = vmul.f32 0.044715, %v2997_v44  ;;  %7947 = vtanh.f32 %v3022_v12  ;;  %v6469_v44 = vld [vmem:[%s10572_s13] ss:$0 sm:$0xff] }
 0xf98   : > { %7949 = vtanh.f32 %v3020_v28  ;;  %v3023_v22 = vmul.f32 0.7978846, %v3015_v57  ;;  %v3013_v2 = vadd.f32 %v3005_v59, %v2973_v63 }
 0xf9a   : > { %7951 = vtanh.f32 %v3023_v22  ;;  %v3021_v18 = vmul.f32 0.7978846, %v3013_v2  ;;  %v7940_v17 = vpop.eup %7939 }
 0xf9b   : > { %v3034_v6 = vadd.f32 1.0, %v7940_v17 }
 0xf9c   : > { %v7942_v50 = vpop.eup %7941  ;;  %7953 = vtanh.f32 %v3021_v18 }
 0xf9d   : > { %v3032_v5 = vadd.f32 1.0, %v7942_v50  ;;  %v3042_v48 = vmul.f32 0.5, %v3034_v6 }
 0xf9e   : > { %v7944_v54 = vpop.eup %7943 }
 0xf9f   : > { %v3035_v37 = vadd.f32 1.0, %v7944_v54  ;;  %v3040_v61 = vmul.f32 0.5, %v3032_v5  ;;  %v3050_v21 = vmul.f32 %v3042_v48, %v9294_v19 }
 0xfa0   : > { %v7946_v33 = vpop.eup %7945 }
 0xfa1   : > { %v3043_v60 = vmul.f32 0.5, %v3035_v37  ;;  %v3033_v8 = vadd.f32 1.0, %v7946_v33  ;;  %v3048_v35 = vmul.f32 %v3040_v61, %v9298_v26 }
 0xfa3   : > { %v3041_v16 = vmul.f32 0.5, %v3033_v8  ;;  %v7948_v20 = vpop.eup %7947  ;;  %v3051_v29 = vmul.f32 %v3043_v60, %v9303_v3 }
 0xfa4   : > { %v3038_v58 = vadd.f32 1.0, %v7948_v20 }
 0xfa5   : > { %v7950_v39 = vpop.eup %7949  ;;  %v3049_v38 = vmul.f32 %v3041_v16, %v9308_v30  ;;  %v3057_v32 = vpack.c.bf16 %v3051_v29, %v3050_v21 }
 0xfa6   : > { %v3036_v45 = vadd.f32 1.0, %v7950_v39  ;;  %v3046_v3 = vmul.f32 0.5, %v3038_v58 }
 0xfa7   : > { %v7952_v0 = vpop.eup %7951  ;;  %v3056_v1 = vpack.c.bf16 %v3049_v38, %v3048_v35 }
 0xfa8   : > { %v3039_v9 = vadd.f32 1.0, %v7952_v0  ;;  %v3044_v53 = vmul.f32 0.5, %v3036_v45  ;;  %v3054_v19 = vmul.f32 %v3046_v3, %v9314_v41 }
 0xfa9   : > { %v7954_v13 = vpop.eup %7953  ;;  %7290 = vmatprep.mubr.bf16.mxu1 %v3056_v1 }
 0xfaa   : > { %7291 = vmatmul.mubr.bf16.vlgmr.msra.gmra.mxu1 %v3057_v32  ;;  %v3037_v4 = vadd.f32 1.0, %v7954_v13  ;;  %v3047_v10 = vmul.f32 0.5, %v3039_v9  ;;  %v3052_v26 = vmul.f32 %v3044_v53, %v9320_v49 }
 0xfac   : > { %v3045_v56 = vmul.f32 0.5, %v3037_v4  ;;  %v3055_v43 = vmul.f32 %v3047_v10, %v2981_v14 }
 0xfae   : > { %v3053_v30 = vmul.f32 %v3045_v56, %v2973_v63  ;;  %v3059_v7 = vpack.c.bf16 %v3055_v43, %v3054_v19 }
 0xfb0   : > { %v3058_v12 = vpack.c.bf16 %v3053_v30, %v3052_v26 }
 0xfb2   : > { %7294 = vmatprep.mubr.bf16.mxu1 %v3058_v12 }
 0xfb3   : > { %7295 = vmatmul.mubr.bf16.gmra.mxu1 %v3059_v7 }
0x106a   : > { %v7292_v31 = vpop.f32.mrf.mxu1 }
0x106b   : > { %v3174_v57 = vadd.f32 %v7292_v31, %v6469_v44 }
0x106c   : > { %v3165_v28 = vpop.f32.mrf.mxu1 }
0x106d   : > { %v3166_v59 = vadd.f32 %v6469_v44, %v3165_v28  ;;  %v9343_v63 = vadd.f32 %v3174_v57, %v9159_v46 }
0x106e   : > { %v7293_v22 = vpop.f32.mrf.mxu1 }
0x106f   : > { %v9340_v14 = vadd.f32 %v3166_v59, %v9156_v47  ;;  %v3177_v41 = vadd.f32 %v7293_v22, %v6469_v44  ;;  %v3214_v46 = vsel %vm640_vm0, %v9343_v63, 0.0 }
0x1070   : > { %v3168_v49 = vpop.f32.mrf.mxu1 }
0x1071   : > { %v3169_v2 = vadd.f32 %v6469_v44, %v3168_v49  ;;  %v3208_v18 = vsel %vm640_vm0, %v9340_v14, 0.0  ;;  %v9351_v5 = vadd.f32 %v3177_v41, %v9167_v55 }
0x1072   : > { %3209 = vadd.xlane.f32.xlu0 %v3208_v18 }
0x1073   : > { %v9348_v17 = vadd.f32 %v3169_v2, %v9164_v36  ;;  %v7296_v50 = vpop.f32.mrf.mxu1  ;;  %v3217_v55 = vsel %vm640_vm0, %v9351_v5, 0.0 }
0x1074   : > { %v3190_v6 = vadd.f32 %v7296_v50, %v6469_v44 }
0x1075   : > { %v3181_v54 = vpop.f32.mrf.mxu1  ;;  %v3211_v47 = vsel %vm640_vm0, %v9348_v17, 0.0 }
0x1076   : > { %v3182_v37 = vadd.f32 %v6469_v44, %v3181_v54  ;;  %3212 = vadd.xlane.f32.xlu1 %v3211_v47  ;;  %3215 = vadd.xlane.f32.xlu0 %v3214_v46  ;;  %v9363_v8 = vadd.f32 %v3190_v6, %v9182_v24 }
0x1077   : > { %v7297_v33 = vpop.f32.mrf.mxu1 }
0x1078   : > { %v9358_v60 = vadd.f32 %v3182_v37, %v9174_v27  ;;  %10631 = vst [vmem:[#allocation3_spill] sm:$0xff] %v9363_v8  ;;  %v3193_v61 = vadd.f32 %v7297_v33, %v6469_v44  ;;  %v3226_v24 = vsel %vm640_vm0, %v9363_v8, 0.0 }
0x1079   : > { %v3184_v36 = vpop.f32.mrf.mxu1 }
0x107a   : > { %10630 = vst [vmem:[#allocation2_spill] sm:$0xff] %v9358_v60  ;;  %v3185_v48 = vadd.f32 %v6469_v44, %v3184_v36  ;;  %3218 = vadd.xlane.f32.xlu1 %v3217_v55  ;;  %v3220_v16 = vsel %vm640_vm0, %v9358_v60, 0.0  ;;  %v9371_v27 = vadd.f32 %v3193_v61, %v9185_v11  ;;  %v7765_v36 = vld [vmem:[%s10563_s4 + $0x18] sm:$0xff]   ;;  %v7766_v55 = vld [vmem:[%s10563_s4 + $0x10] sm:$0xff]  }
0x107b   : > { %3221 = vadd.xlane.f32.xlu0 %v3220_v16  ;;  %7298 = vmatprep.subr.bf16.mxu0 %v7765_v36 }
0x107c   : > { %v9368_v20 = vadd.f32 %v3185_v48, %v9179_v51  ;;  %10633 = vst [vmem:[#allocation5_spill] sm:$0xff] %v9371_v27  ;;  %v3229_v39 = vsel %vm640_vm0, %v9371_v27, 0.0  ;;  %7299 = vmatpush3.bf16.msra.mxu0 %v7765_v36 }
0x107d   : > { %7300 = vmatprep.subr.bf16.mxu0 %v7766_v55 }
0x107e   : > { %10632 = vst [vmem:[#allocation4_spill] sm:$0xff] %v9368_v20  ;;  %v3223_v29 = vsel %vm640_vm0, %v9368_v20, 0.0 }
0x107f   : > { %3224 = vadd.xlane.f32.xlu1 %v3223_v29  ;;  %3227 = vadd.xlane.f32.xlu0 %v3226_v24 }
0x1080   : > { %7301 = vmatpush3.bf16.msra.mxu0 %v7766_v55 }
0x1083   : > { %3230 = vadd.xlane.f32.xlu1 %v3229_v39 }
0x10fb   : > { %v3210_v35 = vpop.xlane.xlu0 %3209 }
0x10fc   : > { %v3232_v38 = vmul.f32 0.03125, %v3210_v35 }
0x10fe   : > { %v9380_v51 = vsub.f32 %v9340_v14, %v3232_v38 }
0x10ff   : > { %v3213_v21 = vpop.xlane.xlu1 %3212  ;;  %v3216_v11 = vpop.xlane.xlu0 %3215 }
0x1100   : > { %v3233_v45 = vmul.f32 0.03125, %v3213_v21  ;;  %v3234_v0 = vmul.f32 0.03125, %v3216_v11  ;;  %v3248_v1 = vmul.f32 %v9380_v51, %v9380_v51 }
0x1102   : > { %v9385_v58 = vsub.f32 %v9348_v17, %v3233_v45  ;;  %v9388_v32 = vsub.f32 %v9343_v63, %v3234_v0  ;;  %v3256_v9 = vsel %vm640_vm0, %v3248_v1, 0.0 }
0x1103   : > { %v3219_v13 = vpop.xlane.xlu1 %3218  ;;  %3257 = vadd.xlane.f32.xlu0 %v3256_v9 }
0x1104   : > { %v3235_v4 = vmul.f32 0.03125, %v3219_v13  ;;  %v3222_v53 = vpop.xlane.xlu0 %3221  ;;  %v3249_v10 = vmul.f32 %v9385_v58, %v9385_v58  ;;  %v3250_v3 = vmul.f32 %v9388_v32, %v9388_v32 }
0x1105   : > { %v3236_v56 = vmul.f32 0.03125, %v3222_v53 }
0x1106   : > { %v9396_v43 = vsub.f32 %v9351_v5, %v3235_v4  ;;  %v3259_v26 = vsel %vm640_vm0, %v3249_v10, 0.0  ;;  %v3262_v30 = vsel %vm640_vm0, %v3250_v3, 0.0 }
0x1107   : > { %v9401_v19 = vsub.f32 %v9358_v60, %v3236_v56  ;;  %3260 = vadd.xlane.f32.xlu1 %v3259_v26  ;;  %3263 = vadd.xlane.f32.xlu0 %v3262_v30 }
0x1108   : > { %v3225_v12 = vpop.xlane.xlu1 %3224  ;;  %v3228_v7 = vpop.xlane.xlu0 %3227  ;;  %v3251_v31 = vmul.f32 %v9396_v43, %v9396_v43 }
0x1109   : > { %v3237_v44 = vmul.f32 0.03125, %v3225_v12  ;;  %v3238_v28 = vmul.f32 0.03125, %v3228_v7  ;;  %v3252_v57 = vmul.f32 %v9401_v19, %v9401_v19 }
0x110a   : > { %v3265_v59 = vsel %vm640_vm0, %v3251_v31, 0.0 }
0x110b   : > { %v9409_v22 = vsub.f32 %v9368_v20, %v3237_v44  ;;  %v9412_v49 = vsub.f32 %v9363_v8, %v3238_v28  ;;  %3266 = vadd.xlane.f32.xlu1 %v3265_v59  ;;  %v3268_v41 = vsel %vm640_vm0, %v3252_v57, 0.0  ;;  %v6480_v44 = vld [vmem:[%s10617_s25 + $0x1] ss:$0 sm:$0xff] }
0x110c   : > { %v3231_v2 = vpop.xlane.xlu1 %3230  ;;  %3269 = vadd.xlane.f32.xlu0 %v3268_v41 }
0x110d   : > { %v3239_v18 = vmul.f32 0.03125, %v3231_v2  ;;  %v3253_v50 = vmul.f32 %v9409_v22, %v9409_v22  ;;  %v3254_v54 = vmul.f32 %v9412_v49, %v9412_v49 }
0x110f   : > { %v9420_v47 = vsub.f32 %v9371_v27, %v3239_v18  ;;  %v3271_v46 = vsel %vm640_vm0, %v3253_v50, 0.0  ;;  %v3274_v6 = vsel %vm640_vm0, %v3254_v54, 0.0  ;;  %v6481_v50 = vld [vmem:[%s10562_s3 + $0x1] ss:$0 sm:$0xff] }
0x1110   : > { %3272 = vadd.xlane.f32.xlu1 %v3271_v46  ;;  %3275 = vadd.xlane.f32.xlu0 %v3274_v6 }
0x1111   : > { %v3255_v37 = vmul.f32 %v9420_v47, %v9420_v47 }
0x1113   : > { %v3277_v33 = vsel %vm640_vm0, %v3255_v37, 0.0 }
0x1114   : > { %3278 = vadd.xlane.f32.xlu1 %v3277_v33 }
0x118c   : > { %v3258_v61 = vpop.xlane.xlu0 %3257 }
0x118d   : > { %v3280_v48 = vmul.f32 0.03125, %v3258_v61 }
0x118f   : > { %v3288_v16 = vadd.f32 1e-05, %v3280_v48 }
0x1190   : > { %v3261_v29 = vpop.xlane.xlu1 %3260  ;;  %v3264_v24 = vpop.xlane.xlu0 %3263 }
0x1191   : > { %7955 = vrsqrt.f32 %v3288_v16  ;;  %v3281_v39 = vmul.f32 0.03125, %v3261_v29  ;;  %v3282_v35 = vmul.f32 0.03125, %v3264_v24 }
0x1193   : > { %v3289_v38 = vadd.f32 1e-05, %v3281_v39  ;;  %v3290_v21 = vadd.f32 1e-05, %v3282_v35 }
0x1194   : > { %v3267_v11 = vpop.xlane.xlu1 %3266 }
0x1195   : > { %7957 = vrsqrt.f32 %v3289_v38  ;;  %v3283_v45 = vmul.f32 0.03125, %v3267_v11  ;;  %v3270_v0 = vpop.xlane.xlu0 %3269 }
0x1196   : > { %7959 = vrsqrt.f32 %v3290_v21  ;;  %v3284_v1 = vmul.f32 0.03125, %v3270_v0 }
0x1197   : > { %v3291_v9 = vadd.f32 1e-05, %v3283_v45 }
0x1198   : > { %v3292_v13 = vadd.f32 1e-05, %v3284_v1 }
0x1199   : > { %7961 = vrsqrt.f32 %v3291_v9  ;;  %v3273_v4 = vpop.xlane.xlu1 %3272  ;;  %v3276_v53 = vpop.xlane.xlu0 %3275 }
0x119a   : > { %7963 = vrsqrt.f32 %v3292_v13  ;;  %v3285_v10 = vmul.f32 0.03125, %v3273_v4  ;;  %v3286_v3 = vmul.f32 0.03125, %v3276_v53 }
0x119c   : > { %v3293_v56 = vadd.f32 1e-05, %v3285_v10  ;;  %v3294_v26 = vadd.f32 1e-05, %v3286_v3 }
0x119d   : > { %v3279_v30 = vpop.xlane.xlu1 %3278 }
0x119e   : > { %v7956_v12 = vpop.eup %7955  ;;  %7965 = vrsqrt.f32 %v3293_v56  ;;  %v3287_v7 = vmul.f32 0.03125, %v3279_v30 }
0x119f   : > { %7967 = vrsqrt.f32 %v3294_v26  ;;  %v3304_v31 = vmul.f32 %v7956_v12, %v9380_v51 }
0x11a0   : > { %v3295_v28 = vadd.f32 1e-05, %v3287_v7 }
0x11a1   : > { %v3318_v2 = vmul.f32 %v6480_v44, %v3304_v31 }
0x11a2   : > { %v7958_v57 = vpop.eup %7957  ;;  %7969 = vrsqrt.f32 %v3295_v28 }
0x11a3   : > { %v7960_v59 = vpop.eup %7959  ;;  %v3305_v41 = vmul.f32 %v7958_v57, %v9385_v58  ;;  %v3332_v33 = vadd.f32 %v6481_v50, %v3318_v2 }
0x11a4   : > { %v3306_v18 = vmul.f32 %v7960_v59, %v9388_v32 }
0x11a5   : > { %v3319_v54 = vmul.f32 %v6480_v44, %v3305_v41 }
0x11a6   : > { %v7962_v46 = vpop.eup %7961  ;;  %v3320_v6 = vmul.f32 %v6480_v44, %v3306_v18 }
0x11a7   : > { %v7964_v51 = vpop.eup %7963  ;;  %v3307_v37 = vmul.f32 %v7962_v46, %v9396_v43  ;;  %v3333_v36 = vadd.f32 %v6481_v50, %v3319_v54 }
0x11a8   : > { %v3308_v55 = vmul.f32 %v7964_v51, %v9401_v19  ;;  %v3334_v32 = vadd.f32 %v6481_v50, %v3320_v6 }
0x11a9   : > { %v3321_v61 = vmul.f32 %v6480_v44, %v3307_v37  ;;  %v3340_v48 = vpack.c.bf16 %v3333_v36, %v3332_v33 }
0x11aa   : > { %v3322_v39 = vmul.f32 %v6480_v44, %v3308_v55 }
0x11ab   : > { %v7966_v58 = vpop.eup %7965  ;;  %7302 = vmatprep.mubr.msk.bf16.mxu0 %vm640_vm0, %v3340_v48  ;;  %v3335_v16 = vadd.f32 %v6481_v50, %v3321_v61 }
0x11ac   : > { %v7968_v29 = vpop.eup %7967  ;;  %v3309_v24 = vmul.f32 %v7966_v58, %v9409_v22  ;;  %v3336_v11 = vadd.f32 %v6481_v50, %v3322_v39 }
0x11ad   : > { %v3341_v35 = vpack.c.bf16 %v3335_v16, %v3334_v32  ;;  %v3310_v38 = vmul.f32 %v7968_v29, %v9412_v49  ;;  %v6487_v49 = vld [vmem:[%s10564_s5 + $0x1] ss:$0 sm:$0xff] }
0x11ae   : > { %v3323_v21 = vmul.f32 %v6480_v44, %v3309_v24 }
0x11af   : > { %v7970_v43 = vpop.eup %7969  ;;  %7303 = vmatmul.mubr.msk.bf16.vlgmr.msra.gmra.mxu0 %vm640_vm0, %v3341_v35  ;;  %v3324_v0 = vmul.f32 %v6480_v44, %v3310_v38 }
0x11b0   : > { %v3337_v19 = vadd.f32 %v6481_v50, %v3323_v21  ;;  %v3311_v45 = vmul.f32 %v7970_v43, %v9420_v47 }
0x11b1   : > { %v3338_v13 = vadd.f32 %v6481_v50, %v3324_v0 }
0x11b2   : > { %v3342_v1 = vpack.c.bf16 %v3337_v19, %v3336_v11  ;;  %v3325_v9 = vmul.f32 %v6480_v44, %v3311_v45 }
0x11b4   : > { %7306 = vmatprep.mubr.msk.bf16.mxu0 %vm640_vm0, %v3342_v1  ;;  %v3339_v4 = vadd.f32 %v6481_v50, %v3325_v9 }
0x11b6   : > { %v3343_v22 = vpack.c.bf16 %v3339_v4, %v3338_v13 }
0x11b8   : > { %7307 = vmatmul.mubr.msk.bf16.gmra.mxu0 %vm640_vm0, %v3343_v22 }
0x126f   : > { %v7304_v53 = vpop.f32.mrf.mxu0 }
0x1270   : > { %v9480_v2 = vadd.f32 %v7304_v53, %v6487_v49 }
0x1271   : > { %v3415_v10 = vpop.f32.mrf.mxu0 }
0x1272   : > { %v9454_v3 = vadd.f32 %v6487_v49, %v3415_v10 }
0x1273   : > { %v7305_v56 = vpop.f32.mrf.mxu0 }
0x1274   : > { %7326 = vmatprep.mubr.msk.f32.mxu0 %vm902_vm1, %v9454_v3  ;;  %v9468_v57 = vadd.f32 %v7305_v56, %v6487_v49 }
0x1275   : > { %v3418_v47 = vpop.f32.mrf.mxu0 }
0x1276   : > { %v9476_v41 = vadd.f32 %v6487_v49, %v3418_v47 }
0x1278   : > { %v7308_v26 = vpop.f32.mrf.mxu0 }
0x1279   : > { %v9458_v30 = vadd.f32 %v7308_v26, %v6487_v49 }
0x127a   : > { %v3431_v12 = vpop.f32.mrf.mxu0 }
0x127b   : > { %3466 = vrot.lane.b32.xlu1 %v9458_v30, %s8187_s19  ;;  %v9472_v59 = vadd.f32 %v6487_v49, %v3431_v12 }
0x127c   : > { %v7309_v7 = vpop.f32.mrf.mxu0 }
0x127d   : > { %v9462_v31 = vadd.f32 %v7309_v7, %v6487_v49 }
0x127e   : > { %v3434_v44 = vpop.f32.mrf.mxu0 }
0x127f   : > { %v9464_v28 = vadd.f32 %v6487_v49, %v3434_v44  ;;  %3468 = vrot.lane.b32.xlu0 %v9462_v31, %s8187_s19 }
0x1281   : > { %3464 = vrot.lane.b32.xlu1 %v9464_v28, %s8187_s19 }
0x1283   : > { %3460 = vrot.lane.b32.xlu0 %v9468_v57, %s8187_s19 }
0x1285   : > { %3462 = vrot.lane.b32.xlu1 %v9472_v59, %s8187_s19 }
0x1287   : > { %3456 = vrot.lane.b32.xlu0 %v9476_v41, %s8187_s19 }
0x1289   : > { %3458 = vrot.lane.b32.xlu1 %v9480_v2, %s8187_s19 }
0x128b   : > { %3709 = vrot.lane.b32.xlu0 %v9462_v31, %s8188_s1 }
0x128d   : > { %3454 = vrot.lane.b32.xlu1 %v9454_v3, %s8187_s19  ;;  %s10634_s19 = smov 56  }
0x128f   : > { %3701 = vrot.lane.b32.xlu0 %v9468_v57, %s8188_s1 }
0x1291   : > { %3707 = vrot.lane.b32.xlu1 %v9458_v30, %s8188_s1 }
0x1293   : > { %3697 = vrot.lane.b32.xlu0 %v9476_v41, %s8188_s1 }
0x1295   : > { %3703 = vrot.lane.b32.xlu1 %v9472_v59, %s8188_s1 }
0x1297   : > { %3878 = vrot.lane.b32.xlu0 %v9462_v31, %s8189_s20 }
0x1299   : > { %3699 = vrot.lane.b32.xlu1 %v9480_v2, %s8188_s1 }
0x129d   : > { %3695 = vrot.lane.b32.xlu1 %v9454_v3, %s8188_s1 }
0x12a1   : > { %3876 = vrot.lane.b32.xlu1 %v9458_v30, %s8189_s20 }
0x12a5   : > { %3705 = vrot.lane.b32.xlu1 %v9464_v28, %s8188_s1  ;;  %s10635_s1 = smov 80  }
0x12ed   : > { %v3467_v18 = vpop.permute.xlu1 %3466 }
0x12f1   : > { %v3469_v50 = vpop.permute.xlu0 %3468 }
0x12f2   : > { %7310 = vmatprep.subr.msk.mxu0 %vm902_vm1, %v3469_v50 }
0x12f3   : > { %7311 = vmatpush3.xpose.msk.msra.mxu0 %vm902_vm1, %v3469_v50  ;;  %v3465_v54 = vpop.permute.xlu1 %3464 }
0x12f4   : > { %7312 = vmatprep.subr.msk.mxu0 %vm902_vm1, %v3467_v18 }
0x12f5   : > { %v3461_v46 = vpop.permute.xlu0 %3460 }
0x12f7   : > { %7313 = vmatpush3.xpose.msk.msra.mxu0 %vm902_vm1, %v3467_v18  ;;  %v3463_v51 = vpop.permute.xlu1 %3462 }
0x12f8   : > { %7314 = vmatprep.subr.msk.mxu0 %vm902_vm1, %v3465_v54 }
0x12f9   : > { %v3457_v6 = vpop.permute.xlu0 %3456 }
0x12fb   : > { %7315 = vmatpush3.xpose.msk.msra.mxu0 %vm902_vm1, %v3465_v54  ;;  %v3459_v37 = vpop.permute.xlu1 %3458 }
0x12fc   : > { %7316 = vmatprep.subr.msk.mxu0 %vm902_vm1, %v3463_v51 }
0x12fd   : > { %v3710_v33 = vpop.permute.xlu0 %3709 }
0x12fe   : > { %7338 = vmatprep.subr.mxu1 %v3710_v33 }
0x12ff   : > { %7317 = vmatpush3.xpose.msk.msra.mxu0 %vm902_vm1, %v3463_v51  ;;  %7339 = vmatpush3.msra.mxu1 %v3710_v33  ;;  %v3455_v36 = vpop.permute.xlu1 %3454 }
0x1300   : > { %7318 = vmatprep.subr.msk.mxu0 %vm902_vm1, %v3461_v46 }
0x1301   : > { %v3702_v16 = vpop.permute.xlu0 %3701 }
0x1303   : > { %7319 = vmatpush3.xpose.msk.msra.mxu0 %vm902_vm1, %v3461_v46  ;;  %v3708_v55 = vpop.permute.xlu1 %3707 }
0x1304   : > { %7320 = vmatprep.subr.msk.mxu0 %vm902_vm1, %v3459_v37  ;;  %7340 = vmatprep.subr.mxu1 %v3708_v55 }
0x1305   : > { %7341 = vmatpush3.msra.mxu1 %v3708_v55  ;;  %v3698_v24 = vpop.permute.xlu0 %3697 }
0x1307   : > { %7321 = vmatpush3.xpose.msk.msra.mxu0 %vm902_vm1, %v3459_v37  ;;  %v3704_v61 = vpop.permute.xlu1 %3703 }
0x1308   : > { %7322 = vmatprep.subr.msk.mxu0 %vm902_vm1, %v3457_v6 }
0x1309   : > { %v9540_v39 = vpop.permute.xlu0 %3878 }
0x130b   : > { %7323 = vmatpush3.xpose.msk.msra.mxu0 %vm902_vm1, %v3457_v6  ;;  %v3700_v48 = vpop.permute.xlu1 %3699 }
0x130c   : > { %7324 = vmatprep.subr.msk.mxu0 %vm902_vm1, %v3455_v36 }
0x130f   : > { %7325 = vmatpush3.xpose.msk.msra.mxu0 %vm902_vm1, %v3455_v36  ;;  %v3696_v58 = vpop.permute.xlu1 %3695 }
0x1312   : > { %7327 = vmatmul.mubr.msk.f32.vlgmr.msra.gmra.mxu0 %vm902_vm1, %v9476_v41 }
0x1313   : > { %7329 = vmatprep.mubr.msk.f32.mxu0 %vm902_vm1, %v9480_v2  ;;  %v9528_v32 = vpop.permute.xlu1 %3876 }
0x1316   : > { %7330 = vmatmul.mubr.msk.f32.gmra.mxu0 %vm902_vm1, %v9468_v57 }
0x1317   : > { %7332 = vmatprep.mubr.msk.f32.mxu0 %vm902_vm1, %v9472_v59  ;;  %v3706_v29 = vpop.permute.xlu1 %3705 }
0x1318   : > { %7342 = vmatprep.subr.mxu1 %v3706_v29 }
0x1319   : > { %7343 = vmatpush3.msra.mxu1 %v3706_v29 }
0x131a   : > { %7333 = vmatmul.mubr.msk.f32.gmra.mxu0 %vm902_vm1, %v9464_v28  ;;  %7344 = vmatprep.subr.mxu1 %v3704_v61 }
0x131b   : > { %7335 = vmatprep.mubr.msk.f32.mxu0 %vm902_vm1, %v9458_v30  ;;  %7345 = vmatpush3.msra.mxu1 %v3704_v61 }
0x131c   : > { %7346 = vmatprep.subr.mxu1 %v3702_v16 }
0x131d   : > { %7347 = vmatpush3.msra.mxu1 %v3702_v16 }
0x131e   : > { %7336 = vmatmul.mubr.msk.f32.gmra.mxu0 %vm902_vm1, %v9462_v31  ;;  %7348 = vmatprep.subr.mxu1 %v3700_v48 }
0x131f   : > { %7349 = vmatpush3.msra.mxu1 %v3700_v48 }
0x1320   : > { %7350 = vmatprep.subr.mxu1 %v3698_v24 }
0x1321   : > { %7351 = vmatpush3.msra.mxu1 %v3698_v24 }
0x1322   : > { %7352 = vmatprep.subr.mxu1 %v3696_v58 }
0x1323   : > { %7353 = vmatpush3.msra.mxu1 %v3696_v58 }
0x1324   : > { %7366 = vmatprep.subr.msk.mxu1 %vm902_vm1, %v9540_v39 }
0x13d2   : > { %v7328_v35 = vpop.f32.mrf.mxu0 }
0x13d3   : > { %v3574_v38 = vadd.f32 %v7328_v35, %v8514_v25 }
0x13d4   : > { %v3568_v21 = vpop.f32.mrf.mxu0 }
0x13d5   : > { %v3569_v43 = vadd.f32 %v3568_v21, %v8517_v62  ;;  %v3610_v11 = vsel %vm1040_vm5, %v3574_v38, -inf }
0x13d6   : > { %3611 = vmax.xlane.f32.xlu1 %v3610_v11  ;;  %v7331_v19 = vpop.f32.mrf.mxu0 }
0x13d7   : > { %v3584_v45 = vadd.f32 %v7331_v19, %v8520_v42  ;;  %v3607_v0 = vsel %vm1040_vm5, %v3569_v43, -inf }
0x13d8   : > { %v3578_v1 = vpop.f32.mrf.mxu0  ;;  %3608 = vmax.xlane.f32.xlu0 %v3607_v0 }
0x13d9   : > { %v3579_v13 = vadd.f32 %v3578_v1, %v8528_v52  ;;  %v3616_v22 = vsel %vm1040_vm5, %v3584_v45, -inf }
0x13da   : > { %v7334_v9 = vpop.f32.mrf.mxu0 }
0x13db   : > { %v3594_v4 = vadd.f32 %v7334_v9, %v8530_v15  ;;  %v3613_v26 = vsel %vm1040_vm5, %v3579_v13, -inf }
0x13dc   : > { %v3588_v53 = vpop.f32.mrf.mxu0  ;;  %3617 = vmax.xlane.f32.xlu0 %v3616_v22 }
0x13dd   : > { %v3622_v49 = vsel %vm1040_vm5, %v3594_v4, -inf  ;;  %v3589_v56 = vadd.f32 %v3588_v53, %v8537_v23 }
0x13de   : > { %3623 = vmax.xlane.f32.xlu1 %v3622_v49  ;;  %v7337_v10 = vpop.f32.mrf.mxu0 }
0x13df   : > { %v3604_v47 = vadd.f32 %v7337_v10, %v8539_v34  ;;  %v3619_v18 = vsel %vm1040_vm5, %v3589_v56, -inf }
0x13e0   : > { %v3598_v12 = vpop.f32.mrf.mxu0  ;;  %3614 = vmax.xlane.f32.xlu0 %v3613_v26 }
0x13e1   : > { %v3628_v7 = vsel %vm1040_vm5, %v3604_v47, -inf  ;;  %v3599_v44 = vadd.f32 %v3598_v12, %v8546_v40 }
0x13e2   : > { %3629 = vmax.xlane.f32.xlu1 %v3628_v7 }
0x13e3   : > { %v3625_v50 = vsel %vm1040_vm5, %v3599_v44, -inf }
0x13e4   : > { %3620 = vmax.xlane.f32.xlu0 %v3619_v18 }
0x13e8   : > { %3626 = vmax.xlane.f32.xlu0 %v3625_v50 }
0x13f3   : > { %3872 = vrot.lane.b32.xlu1 %v9472_v59, %s8189_s20 }
0x13fe   : > { %3874 = vrot.lane.b32.xlu0 %v9464_v28, %s8189_s20 }
0x145f   : > { %v3612_v54 = vpop.xlane.xlu1 %3611 }
0x1460   : > { %v3632_v46 = vsub.f32 %v3574_v38, %v3612_v54 }
0x1461   : > { %v3609_v51 = vpop.xlane.xlu0 %3608 }
0x1462   : > { %v3641_v6 = vmul.f32 1.442695, %v3632_v46  ;;  %v3631_v37 = vsub.f32 %v3569_v43, %v3609_v51 }
0x1464   : > { %7971 = vpow2.f32 %v3641_v6  ;;  %v3639_v33 = vmul.f32 1.442695, %v3631_v37 }
0x1465   : > { %v3618_v58 = vpop.xlane.xlu0 %3617 }
0x1466   : > { %7973 = vpow2.f32 %v3639_v33  ;;  %v3634_v24 = vsub.f32 %v3584_v45, %v3618_v58 }
0x1467   : > { %v3624_v29 = vpop.xlane.xlu1 %3623 }
0x1468   : > { %v3645_v21 = vmul.f32 1.442695, %v3634_v24  ;;  %v3636_v43 = vsub.f32 %v3594_v4, %v3624_v29 }
0x1469   : > { %v3615_v16 = vpop.xlane.xlu0 %3614 }
0x146a   : > { %v3633_v38 = vsub.f32 %v3579_v13, %v3615_v16  ;;  %7975 = vpow2.f32 %v3645_v21  ;;  %v3649_v9 = vmul.f32 1.442695, %v3636_v43 }
0x146b   : > { %v3630_v11 = vpop.xlane.xlu1 %3629 }
0x146c   : > { %v3643_v19 = vmul.f32 1.442695, %v3633_v38  ;;  %v3638_v22 = vsub.f32 %v3604_v47, %v3630_v11 }
0x146d   : > { %v3621_v35 = vpop.xlane.xlu0 %3620 }
0x146e   : > { %v3635_v0 = vsub.f32 %v3589_v56, %v3621_v35  ;;  %7977 = vpow2.f32 %v3643_v19  ;;  %v3653_v10 = vmul.f32 1.442695, %v3638_v22 }
0x146f   : > { %7979 = vpow2.f32 %v3649_v9  ;;  %v3873_v51 = vpop.permute.xlu1 %3872 }
0x1470   : > { %v3647_v53 = vmul.f32 1.442695, %v3635_v0 }
0x1471   : > { %v9564_v36 = vpop.eup %7971  ;;  %v3627_v1 = vpop.xlane.xlu0 %3626 }
0x1472   : > { %v3658_v55 = vsel %vm1040_vm5, %v9564_v36, 0.0  ;;  %v3637_v49 = vsub.f32 %v3599_v44, %v3627_v1  ;;  %7981 = vpow2.f32 %v3647_v53 }
0x1473   : > { %v9568_v61 = vpop.eup %7973  ;;  %3659 = vadd.xlane.f32.xlu1 %v3658_v55  ;;  %7983 = vpow2.f32 %v3653_v10 }
0x1474   : > { %v3655_v48 = vsel %vm1040_vm5, %v9568_v61, 0.0  ;;  %v3651_v26 = vmul.f32 1.442695, %v3637_v49 }
0x1475   : > { %3656 = vadd.xlane.f32.xlu0 %v3655_v48  ;;  %v3875_v6 = vpop.permute.xlu0 %3874 }
0x1476   : > { %7985 = vpow2.f32 %v3651_v26 }
0x1477   : > { %v9576_v45 = vpop.eup %7975 }
0x1478   : > { %v3664_v4 = vsel %vm1040_vm5, %v9576_v45, 0.0 }
0x147b   : > { %v9578_v13 = vpop.eup %7977 }
0x147c   : > { %v9582_v56 = vpop.eup %7979  ;;  %v3661_v47 = vsel %vm1040_vm5, %v9578_v13, 0.0 }
0x147d   : > { %v3670_v7 = vsel %vm1040_vm5, %v9582_v56, 0.0 }
0x147f   : > { %v9586_v12 = vpop.eup %7981 }
0x1480   : > { %v9590_v44 = vpop.eup %7983  ;;  %v3667_v18 = vsel %vm1040_vm5, %v9586_v12, 0.0 }
0x1481   : > { %v3676_v54 = vsel %vm1040_vm5, %v9590_v44, 0.0 }
0x1483   : > { %v9594_v50 = vpop.eup %7985 }
0x1484   : > { %3868 = vrot.lane.b32.xlu1 %v9480_v2, %s8189_s20  ;;  %v3673_v46 = vsel %vm1040_vm5, %v9594_v50, 0.0 }
0x148b   : > { %3870 = vrot.lane.b32.xlu0 %v9468_v57, %s8189_s20 }
0x14a8   : > { %3665 = vadd.xlane.f32.xlu1 %v3664_v4 }
0x14aa   : > { %3662 = vadd.xlane.f32.xlu0 %v3661_v47 }
0x14ac   : > { %3671 = vadd.xlane.f32.xlu1 %v3670_v7 }
0x14ae   : > { %3668 = vadd.xlane.f32.xlu0 %v3667_v18 }
0x14b0   : > { %3677 = vadd.xlane.f32.xlu1 %v3676_v54 }
0x14b2   : > { %3674 = vadd.xlane.f32.xlu0 %v3673_v46 }
0x14c1   : > { %3864 = vrot.lane.b32.xlu1 %v9454_v3, %s8189_s20 }
0x14c5   : > { %3850 = vrot.lane.b32.xlu1 %v9476_v41, %s8191_s21 }
0x14c8   : > { %3866 = vrot.lane.b32.xlu0 %v9476_v41, %s8189_s20  ;;  %s10636_s20 = smov 112  }
0x14c9   : > { %3854 = vrot.lane.b32.xlu1 %v9468_v57, %s8191_s21 }
0x14cc   : > { %3848 = vrot.lane.b32.xlu0 %v9454_v3, %s8191_s21 }
0x14cd   : > { %3858 = vrot.lane.b32.xlu1 %v9464_v28, %s8191_s21 }
0x14d0   : > { %3852 = vrot.lane.b32.xlu0 %v9480_v2, %s8191_s21 }
0x14d1   : > { %3862 = vrot.lane.b32.xlu1 %v9462_v31, %s8191_s21 }
0x14d4   : > { %3856 = vrot.lane.b32.xlu0 %v9472_v59, %s8191_s21 }
0x14d5   : > { %4117 = vrot.lane.b32.xlu1 %v9458_v30, %s10634_s19 }
0x14d8   : > { %3860 = vrot.lane.b32.xlu0 %v9458_v30, %s8191_s21  ;;  %s10637_s21 = smov 48  }
0x14d9   : > { %4115 = vrot.lane.b32.xlu1 %v9464_v28, %s10634_s19 }
0x14dc   : > { %4119 = vrot.lane.b32.xlu0 %v9462_v31, %s10634_s19 }
0x14dd   : > { %4113 = vrot.lane.b32.xlu1 %v9472_v59, %s10634_s19 }
0x14e0   : > { %4111 = vrot.lane.b32.xlu0 %v9468_v57, %s10634_s19 }
0x14e1   : > { %4109 = vrot.lane.b32.xlu1 %v9480_v2, %s10634_s19 }
0x14e4   : > { %4107 = vrot.lane.b32.xlu0 %v9476_v41, %s10634_s19 }
0x14e5   : > { %4105 = vrot.lane.b32.xlu1 %v9454_v3, %s10634_s19 }
0x14e8   : > { %4288 = vrot.lane.b32.xlu0 %v9462_v31, %s10635_s1 }
0x14e9   : > { %4286 = vrot.lane.b32.xlu1 %v9458_v30, %s10635_s1 }
0x14fc   : > { %v3660_v37 = vpop.xlane.xlu1 %3659 }
0x14fd   : > { %7987 = vrcp.f32 %v3660_v37 }
0x14fe   : > { %v3657_v33 = vpop.xlane.xlu0 %3656 }
0x14ff   : > { %7989 = vrcp.f32 %v3657_v33 }
0x150a   : > { %v7988_v55 = vpop.eup %7987 }
0x150b   : > { %v3682_v16 = vmul.f32 %v7988_v55, %v9564_v36  ;;  %v3871_v36 = vpop.permute.xlu0 %3870 }
0x150c   : > { %v7990_v48 = vpop.eup %7989 }
0x150d   : > { %v3680_v58 = vmul.f32 %v7990_v48, %v9568_v61  ;;  %v3869_v61 = vpop.permute.xlu1 %3868 }
0x150f   : > { %7354 = vmatprep.mubr.msk.f32.mxu1 %vm1040_vm5, %v3680_v58 }
0x1510   : > { %7355 = vmatmul.mubr.msk.f32.vlgmr.msra.gmra.mxu1 %vm1040_vm5, %v3682_v16 }
0x1511   : > { %7367 = vmatpush3.xpose.msk.msra.mxu1 %vm902_vm1, %v9540_v39 }
0x1512   : > { %7368 = vmatprep.subr.msk.mxu1 %vm902_vm1, %v9528_v32 }
0x1515   : > { %7369 = vmatpush3.xpose.msk.msra.mxu1 %vm902_vm1, %v9528_v32 }
0x1516   : > { %7370 = vmatprep.subr.msk.mxu1 %vm902_vm1, %v3875_v6 }
0x1519   : > { %7371 = vmatpush3.xpose.msk.msra.mxu1 %vm902_vm1, %v3875_v6 }
0x151a   : > { %7372 = vmatprep.subr.msk.mxu1 %vm902_vm1, %v3873_v51 }
0x151d   : > { %7373 = vmatpush3.xpose.msk.msra.mxu1 %vm902_vm1, %v3873_v51 }
0x151e   : > { %7374 = vmatprep.subr.msk.mxu1 %vm902_vm1, %v3871_v36 }
0x1521   : > { %7375 = vmatpush3.xpose.msk.msra.mxu1 %vm902_vm1, %v3871_v36 }
0x1522   : > { %7376 = vmatprep.subr.msk.mxu1 %vm902_vm1, %v3869_v61 }
0x1525   : > { %7377 = vmatpush3.xpose.msk.msra.mxu1 %vm902_vm1, %v3869_v61 }
0x1531   : > { %v3666_v39 = vpop.xlane.xlu1 %3665 }
0x1532   : > { %7991 = vrcp.f32 %v3666_v39 }
0x1533   : > { %v3663_v32 = vpop.xlane.xlu0 %3662 }
0x1534   : > { %7993 = vrcp.f32 %v3663_v32 }
0x1535   : > { %v3672_v29 = vpop.xlane.xlu1 %3671 }
0x1536   : > { %7995 = vrcp.f32 %v3672_v29 }
0x1537   : > { %v3669_v24 = vpop.xlane.xlu0 %3668 }
0x1538   : > { %7997 = vrcp.f32 %v3669_v24 }
0x1539   : > { %v3678_v35 = vpop.xlane.xlu1 %3677 }
0x153a   : > { %7999 = vrcp.f32 %v3678_v35 }
0x153b   : > { %v3675_v38 = vpop.xlane.xlu0 %3674 }
0x153c   : > { %8001 = vrcp.f32 %v3675_v38 }
0x153d   : > { %v3865_v21 = vpop.permute.xlu1 %3864 }
0x153f   : > { %v3867_v43 = vpop.permute.xlu0 %3866  ;;  %v7992_v11 = vpop.eup %7991 }
0x1540   : > { %7378 = vmatprep.subr.msk.mxu1 %vm902_vm1, %v3867_v43  ;;  %v3686_v22 = vmul.f32 %v7992_v11, %v9576_v45 }
0x1541   : > { %v7994_v19 = vpop.eup %7993  ;;  %7379 = vmatpush3.xpose.msk.msra.mxu1 %vm902_vm1, %v3867_v43  ;;  %v3851_v0 = vpop.permute.xlu1 %3850 }
0x1542   : > { %7380 = vmatprep.subr.msk.mxu1 %vm902_vm1, %v3865_v21  ;;  %v3684_v1 = vmul.f32 %v7994_v19, %v9578_v13 }
0x1543   : > { %v3849_v9 = vpop.permute.xlu0 %3848  ;;  %v7996_v53 = vpop.eup %7995 }
0x1544   : > { %7357 = vmatprep.mubr.msk.f32.mxu1 %vm1040_vm5, %v3684_v1  ;;  %v3690_v47 = vmul.f32 %v7996_v53, %v9582_v56 }
0x1545   : > { %v7998_v49 = vpop.eup %7997  ;;  %7358 = vmatmul.mubr.msk.f32.gmra.mxu1 %vm1040_vm5, %v3686_v22  ;;  %v3855_v10 = vpop.permute.xlu1 %3854 }
0x1546   : > { %7381 = vmatpush3.xpose.msk.msra.mxu1 %vm902_vm1, %v3865_v21  ;;  %v3688_v26 = vmul.f32 %v7998_v49, %v9586_v12 }
0x1547   : > { %v3853_v4 = vpop.permute.xlu0 %3852  ;;  %v8000_v7 = vpop.eup %7999 }
0x1548   : > { %7360 = vmatprep.mubr.msk.f32.mxu1 %vm1040_vm5, %v3688_v26  ;;  %v3694_v46 = vmul.f32 %v8000_v7, %v9590_v44 }
0x1549   : > { %v8002_v13 = vpop.eup %8001  ;;  %7361 = vmatmul.mubr.msk.f32.gmra.mxu1 %vm1040_vm5, %v3690_v47  ;;  %v3859_v45 = vpop.permute.xlu1 %3858 }
0x154a   : > { %v3692_v18 = vmul.f32 %v8002_v13, %v9594_v50 }
0x154b   : > { %v3857_v54 = vpop.permute.xlu0 %3856 }
0x154c   : > { %7363 = vmatprep.mubr.msk.f32.mxu1 %vm1040_vm5, %v3692_v18 }
0x154d   : > { %7364 = vmatmul.mubr.msk.f32.gmra.mxu1 %vm1040_vm5, %v3694_v46  ;;  %v3863_v12 = vpop.permute.xlu1 %3862 }
0x154e   : > { %7382 = vmatprep.mubr.msk.f32.mxu1 %vm902_vm1, %v3849_v9 }
0x154f   : > { %v3861_v56 = vpop.permute.xlu0 %3860 }
0x1551   : > { %7383 = vmatmul.mubr.msk.f32.vlgmr.msra.gmra.mxu1 %vm902_vm1, %v3851_v0  ;;  %v4118_v51 = vpop.permute.xlu1 %4117 }
0x1552   : > { %7385 = vmatprep.mubr.msk.f32.mxu1 %vm902_vm1, %v3853_v4 }
0x1553   : > { %v4120_v6 = vpop.permute.xlu0 %4119 }
0x1554   : > { %7394 = vmatprep.subr.mxu0 %v4120_v6 }
0x1555   : > { %7386 = vmatmul.mubr.msk.f32.gmra.mxu1 %vm902_vm1, %v3855_v10  ;;  %7395 = vmatpush3.msra.mxu0 %v4120_v6  ;;  %v4116_v50 = vpop.permute.xlu1 %4115 }
0x1556   : > { %7388 = vmatprep.mubr.msk.f32.mxu1 %vm902_vm1, %v3857_v54  ;;  %7396 = vmatprep.subr.mxu0 %v4118_v51 }
0x1557   : > { %v4112_v44 = vpop.permute.xlu0 %4111  ;;  %7397 = vmatpush3.msra.mxu0 %v4118_v51 }
0x1558   : > { %7398 = vmatprep.subr.mxu0 %v4116_v50 }
0x1559   : > { %7389 = vmatmul.mubr.msk.f32.gmra.mxu1 %vm902_vm1, %v3859_v45  ;;  %7399 = vmatpush3.msra.mxu0 %v4116_v50  ;;  %v4114_v37 = vpop.permute.xlu1 %4113 }
0x155a   : > { %7391 = vmatprep.mubr.msk.f32.mxu1 %vm902_vm1, %v3861_v56  ;;  %7400 = vmatprep.subr.mxu0 %v4114_v37 }
0x155b   : > { %7401 = vmatpush3.msra.mxu0 %v4114_v37  ;;  %v4108_v33 = vpop.permute.xlu0 %4107 }
0x155c   : > { %7402 = vmatprep.subr.mxu0 %v4112_v44 }
0x155d   : > { %7392 = vmatmul.mubr.msk.f32.gmra.mxu1 %vm902_vm1, %v3863_v12  ;;  %7403 = vmatpush3.msra.mxu0 %v4112_v44  ;;  %v4110_v55 = vpop.permute.xlu1 %4109 }
0x155e   : > { %7404 = vmatprep.subr.mxu0 %v4110_v55 }
0x155f   : > { %7405 = vmatpush3.msra.mxu0 %v4110_v55  ;;  %v9682_v58 = vpop.permute.xlu0 %4288 }
0x1560   : > { %7406 = vmatprep.subr.mxu0 %v4108_v33 }
0x1561   : > { %7407 = vmatpush3.msra.mxu0 %v4108_v33  ;;  %v4106_v48 = vpop.permute.xlu1 %4105 }
0x1562   : > { %7408 = vmatprep.subr.mxu0 %v4106_v48 }
0x1563   : > { %7409 = vmatpush3.msra.mxu0 %v4106_v48 }
0x1564   : > { %7422 = vmatprep.subr.msk.mxu0 %vm902_vm1, %v9682_v58 }
0x1565   : > { %v9722_v6 = vpop.permute.xlu1 %4286 }
0x15d0   : > { %v9686_v16 = vpop.f32.mrf.mxu1 }
0x15d2   : > { %v9688_v36 = vpop.f32.mrf.mxu1 }
0x1605   : > { %v9690_v61 = vpop.f32.mrf.mxu1 }
0x1607   : > { %v9692_v39 = vpop.f32.mrf.mxu1 }
0x1609   : > { %v9694_v32 = vpop.f32.mrf.mxu1 }
0x160b   : > { %v9696_v29 = vpop.f32.mrf.mxu1 }
0x160d   : > { %v9698_v24 = vpop.f32.mrf.mxu1 }
0x160f   : > { %v9700_v35 = vpop.f32.mrf.mxu1 }
0x1611   : > { %v7384_v38 = vpop.f32.mrf.mxu1 }
0x1612   : > { %v3984_v21 = vadd.f32 %v7384_v38, %v8514_v25 }
0x1613   : > { %v3978_v43 = vpop.f32.mrf.mxu1 }
0x1614   : > { %v3979_v11 = vadd.f32 %v3978_v43, %v8517_v62  ;;  %v4020_v19 = vsel %vm1040_vm5, %v3984_v21, -inf }
0x1615   : > { %4021 = vmax.xlane.f32.xlu1 %v4020_v19  ;;  %v7387_v0 = vpop.f32.mrf.mxu1 }
0x1616   : > { %v3994_v1 = vadd.f32 %v7387_v0, %v8520_v42  ;;  %v4017_v9 = vsel %vm1040_vm5, %v3979_v11, -inf }
0x1617   : > { %4018 = vmax.xlane.f32.xlu0 %v4017_v9  ;;  %v3988_v22 = vpop.f32.mrf.mxu1 }
0x1618   : > { %v3989_v49 = vadd.f32 %v3988_v22, %v8528_v52  ;;  %v4026_v26 = vsel %vm1040_vm5, %v3994_v1, -inf }
0x1619   : > { %v7390_v53 = vpop.f32.mrf.mxu1 }
0x161a   : > { %v4004_v10 = vadd.f32 %v7390_v53, %v8530_v15  ;;  %v4023_v18 = vsel %vm1040_vm5, %v3989_v49, -inf }
0x161b   : > { %4027 = vmax.xlane.f32.xlu0 %v4026_v26  ;;  %v3998_v4 = vpop.f32.mrf.mxu1 }
0x161c   : > { %v4032_v47 = vsel %vm1040_vm5, %v4004_v10, -inf  ;;  %v3999_v13 = vadd.f32 %v3998_v4, %v8537_v23 }
0x161d   : > { %4033 = vmax.xlane.f32.xlu1 %v4032_v47  ;;  %v7393_v7 = vpop.f32.mrf.mxu1 }
0x161e   : > { %v4014_v45 = vadd.f32 %v7393_v7, %v8539_v34  ;;  %v4029_v56 = vsel %vm1040_vm5, %v3999_v13, -inf }
0x161f   : > { %4024 = vmax.xlane.f32.xlu0 %v4023_v18  ;;  %v4008_v54 = vpop.f32.mrf.mxu1 }
0x1620   : > { %v4038_v46 = vsel %vm1040_vm5, %v4014_v45, -inf  ;;  %v4009_v12 = vadd.f32 %v4008_v54, %v8546_v40 }
0x1621   : > { %4039 = vmax.xlane.f32.xlu1 %v4038_v46 }
0x1622   : > { %v4035_v51 = vsel %vm1040_vm5, %v4009_v12, -inf }
0x1623   : > { %4030 = vmax.xlane.f32.xlu0 %v4029_v56 }
0x1627   : > { %4036 = vmax.xlane.f32.xlu0 %v4035_v51 }
0x1632   : > { %4282 = vrot.lane.b32.xlu1 %v9472_v59, %s10635_s1 }
0x163d   : > { %4284 = vrot.lane.b32.xlu0 %v9464_v28, %s10635_s1 }
0x169e   : > { %v4022_v50 = vpop.xlane.xlu1 %4021 }
0x169f   : > { %v4042_v44 = vsub.f32 %v3984_v21, %v4022_v50 }
0x16a0   : > { %v4019_v37 = vpop.xlane.xlu0 %4018 }
0x16a1   : > { %v4051_v33 = vmul.f32 1.442695, %v4042_v44  ;;  %v4041_v55 = vsub.f32 %v3979_v11, %v4019_v37 }
0x16a3   : > { %8003 = vpow2.f32 %v4051_v33  ;;  %v4049_v48 = vmul.f32 1.442695, %v4041_v55 }
0x16a4   : > { %v4028_v9 = vpop.xlane.xlu0 %4027 }
0x16a5   : > { %8005 = vpow2.f32 %v4049_v48  ;;  %v4044_v22 = vsub.f32 %v3994_v1, %v4028_v9 }
0x16a6   : > { %v4034_v11 = vpop.xlane.xlu1 %4033 }
0x16a7   : > { %v4055_v4 = vmul.f32 1.442695, %v4044_v22  ;;  %v4046_v47 = vsub.f32 %v4004_v10, %v4034_v11 }
0x16a8   : > { %v4025_v21 = vpop.xlane.xlu0 %4024 }
0x16a9   : > { %v4043_v26 = vsub.f32 %v3989_v49, %v4025_v21  ;;  %8007 = vpow2.f32 %v4055_v4  ;;  %v4059_v56 = vmul.f32 1.442695, %v4046_v47 }
0x16aa   : > { %v4040_v7 = vpop.xlane.xlu1 %4039 }
0x16ab   : > { %v4053_v18 = vmul.f32 1.442695, %v4043_v26  ;;  %v4048_v51 = vsub.f32 %v4014_v45, %v4040_v7 }
0x16ac   : > { %v4031_v53 = vpop.xlane.xlu0 %4030 }
0x16ad   : > { %v4045_v54 = vsub.f32 %v3999_v13, %v4031_v53  ;;  %8009 = vpow2.f32 %v4053_v18  ;;  %v4063_v37 = vmul.f32 1.442695, %v4048_v51 }
0x16ae   : > { %8011 = vpow2.f32 %v4059_v56  ;;  %v4283_v11 = vpop.permute.xlu1 %4282 }
0x16af   : > { %v4057_v50 = vmul.f32 1.442695, %v4045_v54 }
0x16b0   : > { %v9724_v38 = vpop.eup %8003  ;;  %v4037_v46 = vpop.xlane.xlu0 %4036 }
0x16b1   : > { %v4068_v43 = vsel %vm1040_vm5, %v9724_v38, 0.0  ;;  %v4047_v44 = vsub.f32 %v4009_v12, %v4037_v46  ;;  %8013 = vpow2.f32 %v4057_v50 }
0x16b2   : > { %v9728_v19 = vpop.eup %8005  ;;  %4069 = vadd.xlane.f32.xlu1 %v4068_v43  ;;  %8015 = vpow2.f32 %v4063_v37 }
0x16b3   : > { %v4065_v0 = vsel %vm1040_vm5, %v9728_v19, 0.0  ;;  %v4061_v33 = vmul.f32 1.442695, %v4047_v44 }
0x16b4   : > { %4066 = vadd.xlane.f32.xlu0 %v4065_v0  ;;  %v4285_v22 = vpop.permute.xlu0 %4284 }
0x16b5   : > { %8017 = vpow2.f32 %v4061_v33 }
0x16b6   : > { %v9736_v1 = vpop.eup %8007 }
0x16b7   : > { %v4074_v10 = vsel %vm1040_vm5, %v9736_v1, 0.0 }
0x16ba   : > { %v9738_v49 = vpop.eup %8009 }
0x16bb   : > { %v9742_v13 = vpop.eup %8011  ;;  %v4071_v45 = vsel %vm1040_vm5, %v9738_v49, 0.0 }
0x16bc   : > { %v4080_v55 = vsel %vm1040_vm5, %v9742_v13, 0.0 }
0x16be   : > { %v9746_v12 = vpop.eup %8013 }
0x16bf   : > { %v9750_v48 = vpop.eup %8015  ;;  %v4077_v43 = vsel %vm1040_vm5, %v9746_v12, 0.0 }
0x16c0   : > { %v4086_v9 = vsel %vm1040_vm5, %v9750_v48, 0.0 }
0x16c2   : > { %v9754_v0 = vpop.eup %8017 }
0x16c3   : > { %4278 = vrot.lane.b32.xlu1 %v9480_v2, %s10635_s1  ;;  %v4083_v21 = vsel %vm1040_vm5, %v9754_v0, 0.0 }
0x16ca   : > { %4280 = vrot.lane.b32.xlu0 %v9468_v57, %s10635_s1 }
0x16e7   : > { %4075 = vadd.xlane.f32.xlu1 %v4074_v10 }
0x16e9   : > { %4072 = vadd.xlane.f32.xlu0 %v4071_v45 }
0x16eb   : > { %4081 = vadd.xlane.f32.xlu1 %v4080_v55 }
0x16ed   : > { %4078 = vadd.xlane.f32.xlu0 %v4077_v43 }
0x16ef   : > { %4087 = vadd.xlane.f32.xlu1 %v4086_v9 }
0x16f1   : > { %4084 = vadd.xlane.f32.xlu0 %v4083_v21 }
0x1700   : > { %4274 = vrot.lane.b32.xlu1 %v9454_v3, %s10635_s1 }
0x1704   : > { %4260 = vrot.lane.b32.xlu1 %v9476_v41, %s10636_s20 }
0x1707   : > { %4276 = vrot.lane.b32.xlu0 %v9476_v41, %s10635_s1  ;;  %s10647_s1 = smov 24  }
0x1708   : > { %4264 = vrot.lane.b32.xlu1 %v9468_v57, %s10636_s20 }
0x170b   : > { %4258 = vrot.lane.b32.xlu0 %v9454_v3, %s10636_s20 }
0x170c   : > { %4268 = vrot.lane.b32.xlu1 %v9464_v28, %s10636_s20 }
0x170f   : > { %4262 = vrot.lane.b32.xlu0 %v9480_v2, %s10636_s20 }
0x1710   : > { %4272 = vrot.lane.b32.xlu1 %v9462_v31, %s10636_s20 }
0x1713   : > { %4266 = vrot.lane.b32.xlu0 %v9472_v59, %s10636_s20 }
0x1714   : > { %4527 = vrot.lane.b32.xlu1 %v9458_v30, %s10637_s21 }
0x1717   : > { %4270 = vrot.lane.b32.xlu0 %v9458_v30, %s10636_s20 }
0x1718   : > { %4525 = vrot.lane.b32.xlu1 %v9464_v28, %s10637_s21 }
0x171b   : > { %4529 = vrot.lane.b32.xlu0 %v9462_v31, %s10637_s21 }
0x171c   : > { %4523 = vrot.lane.b32.xlu1 %v9472_v59, %s10637_s21 }
0x171f   : > { %4521 = vrot.lane.b32.xlu0 %v9468_v57, %s10637_s21 }
0x1720   : > { %4519 = vrot.lane.b32.xlu1 %v9480_v2, %s10637_s21 }
0x1723   : > { %4517 = vrot.lane.b32.xlu0 %v9476_v41, %s10637_s21 }
0x1724   : > { %4515 = vrot.lane.b32.xlu1 %v9454_v3, %s10637_s21  ;;  %s6347_s21 = sshll.u32 %s10655_s28, 3 }
0x1727   : > { %4698 = vrot.lane.b32.xlu0 %v9462_v31, %s10638_s22 }
0x1728   : > { %4696 = vrot.lane.b32.xlu1 %v9458_v30, %s10638_s22 }
0x173b   : > { %v4070_v53 = vpop.xlane.xlu1 %4069 }
0x173c   : > { %8019 = vrcp.f32 %v4070_v53 }
0x173d   : > { %v4067_v26 = vpop.xlane.xlu0 %4066 }
0x173e   : > { %8021 = vrcp.f32 %v4067_v26 }
0x1749   : > { %v8020_v4 = vpop.eup %8019 }
0x174a   : > { %v4092_v18 = vmul.f32 %v8020_v4, %v9724_v38  ;;  %v4281_v38 = vpop.permute.xlu0 %4280 }
0x174b   : > { %v8022_v47 = vpop.eup %8021 }
0x174c   : > { %v4090_v7 = vmul.f32 %v8022_v47, %v9728_v19  ;;  %v4279_v19 = vpop.permute.xlu1 %4278 }
0x174e   : > { %7410 = vmatprep.mubr.msk.f32.mxu0 %vm1040_vm5, %v4090_v7 }
0x174f   : > { %7411 = vmatmul.mubr.msk.f32.vlgmr.msra.gmra.mxu0 %vm1040_vm5, %v4092_v18 }
0x1750   : > { %7423 = vmatpush3.xpose.msk.msra.mxu0 %vm902_vm1, %v9682_v58 }
0x1751   : > { %7424 = vmatprep.subr.msk.mxu0 %vm902_vm1, %v9722_v6 }
0x1754   : > { %7425 = vmatpush3.xpose.msk.msra.mxu0 %vm902_vm1, %v9722_v6 }
0x1755   : > { %7426 = vmatprep.subr.msk.mxu0 %vm902_vm1, %v4285_v22 }
0x1758   : > { %7427 = vmatpush3.xpose.msk.msra.mxu0 %vm902_vm1, %v4285_v22 }
0x1759   : > { %7428 = vmatprep.subr.msk.mxu0 %vm902_vm1, %v4283_v11 }
0x175c   : > { %7429 = vmatpush3.xpose.msk.msra.mxu0 %vm902_vm1, %v4283_v11 }
0x175d   : > { %7430 = vmatprep.subr.msk.mxu0 %vm902_vm1, %v4281_v38 }
0x1760   : > { %7431 = vmatpush3.xpose.msk.msra.mxu0 %vm902_vm1, %v4281_v38 }
0x1761   : > { %7432 = vmatprep.subr.msk.mxu0 %vm902_vm1, %v4279_v19 }
0x1764   : > { %7433 = vmatpush3.xpose.msk.msra.mxu0 %vm902_vm1, %v4279_v19 }
0x1770   : > { %v4076_v58 = vpop.xlane.xlu1 %4075 }
0x1771   : > { %8023 = vrcp.f32 %v4076_v58 }
0x1772   : > { %v4073_v6 = vpop.xlane.xlu0 %4072 }
0x1773   : > { %8025 = vrcp.f32 %v4073_v6 }
0x1774   : > { %v4082_v54 = vpop.xlane.xlu1 %4081 }
0x1775   : > { %8027 = vrcp.f32 %v4082_v54 }
0x1776   : > { %v4079_v46 = vpop.xlane.xlu0 %4078 }
0x1777   : > { %8029 = vrcp.f32 %v4079_v46 }
0x1778   : > { %v4088_v56 = vpop.xlane.xlu1 %4087 }
0x1779   : > { %8031 = vrcp.f32 %v4088_v56 }
0x177a   : > { %v4085_v51 = vpop.xlane.xlu0 %4084 }
0x177b   : > { %8033 = vrcp.f32 %v4085_v51 }
0x177c   : > { %v4275_v50 = vpop.permute.xlu1 %4274 }
0x177e   : > { %v4277_v44 = vpop.permute.xlu0 %4276  ;;  %v8024_v37 = vpop.eup %8023 }
0x177f   : > { %7434 = vmatprep.subr.msk.mxu0 %vm902_vm1, %v4277_v44  ;;  %v4096_v43 = vmul.f32 %v8024_v37, %v9736_v1 }
0x1780   : > { %v8026_v33 = vpop.eup %8025  ;;  %7435 = vmatpush3.xpose.msk.msra.mxu0 %vm902_vm1, %v4277_v44  ;;  %v4261_v10 = vpop.permute.xlu1 %4260 }
0x1781   : > { %7436 = vmatprep.subr.msk.mxu0 %vm902_vm1, %v4275_v50  ;;  %v4094_v45 = vmul.f32 %v8026_v33, %v9738_v49 }
0x1782   : > { %v4259_v55 = vpop.permute.xlu0 %4258  ;;  %v8028_v9 = vpop.eup %8027 }
0x1783   : > { %7413 = vmatprep.mubr.msk.f32.mxu0 %vm1040_vm5, %v4094_v45  ;;  %v4100_v26 = vmul.f32 %v8028_v9, %v9742_v13 }
0x1784   : > { %v8030_v21 = vpop.eup %8029  ;;  %7414 = vmatmul.mubr.msk.f32.gmra.mxu0 %vm1040_vm5, %v4096_v43  ;;  %v4265_v11 = vpop.permute.xlu1 %4264 }
0x1785   : > { %7437 = vmatpush3.xpose.msk.msra.mxu0 %vm902_vm1, %v4275_v50  ;;  %v4098_v22 = vmul.f32 %v8030_v21, %v9746_v12 }
0x1786   : > { %v4263_v53 = vpop.permute.xlu0 %4262  ;;  %v8032_v4 = vpop.eup %8031 }
0x1787   : > { %7416 = vmatprep.mubr.msk.f32.mxu0 %vm1040_vm5, %v4098_v22  ;;  %v4104_v18 = vmul.f32 %v8032_v4, %v9750_v48 }
0x1788   : > { %v8034_v49 = vpop.eup %8033  ;;  %7417 = vmatmul.mubr.msk.f32.gmra.mxu0 %vm1040_vm5, %v4100_v26  ;;  %v4269_v1 = vpop.permute.xlu1 %4268 }
0x1789   : > { %v4102_v47 = vmul.f32 %v8034_v49, %v9754_v0 }
0x178a   : > { %v4267_v7 = vpop.permute.xlu0 %4266 }
0x178b   : > { %7419 = vmatprep.mubr.msk.f32.mxu0 %vm1040_vm5, %v4102_v47 }
0x178c   : > { %7420 = vmatmul.mubr.msk.f32.gmra.mxu0 %vm1040_vm5, %v4104_v18  ;;  %v4273_v12 = vpop.permute.xlu1 %4272 }
0x178d   : > { %7438 = vmatprep.mubr.msk.f32.mxu0 %vm902_vm1, %v4259_v55 }
0x178e   : > { %v4271_v13 = vpop.permute.xlu0 %4270 }
0x1790   : > { %7439 = vmatmul.mubr.msk.f32.vlgmr.msra.gmra.mxu0 %vm902_vm1, %v4261_v10  ;;  %v4528_v38 = vpop.permute.xlu1 %4527 }
0x1791   : > { %7441 = vmatprep.mubr.msk.f32.mxu0 %vm902_vm1, %v4263_v53 }
0x1792   : > { %v4530_v19 = vpop.permute.xlu0 %4529 }
0x1793   : > { %7450 = vmatprep.subr.mxu1 %v4530_v19 }
0x1794   : > { %7442 = vmatmul.mubr.msk.f32.gmra.mxu0 %vm902_vm1, %v4265_v11  ;;  %7451 = vmatpush3.msra.mxu1 %v4530_v19  ;;  %v4526_v0 = vpop.permute.xlu1 %4525 }
0x1795   : > { %7444 = vmatprep.mubr.msk.f32.mxu0 %vm902_vm1, %v4267_v7  ;;  %7452 = vmatprep.subr.mxu1 %v4528_v38 }
0x1796   : > { %v4522_v48 = vpop.permute.xlu0 %4521  ;;  %7453 = vmatpush3.msra.mxu1 %v4528_v38 }
0x1797   : > { %7454 = vmatprep.subr.mxu1 %v4526_v0 }
0x1798   : > { %7445 = vmatmul.mubr.msk.f32.gmra.mxu0 %vm902_vm1, %v4269_v1  ;;  %7455 = vmatpush3.msra.mxu1 %v4526_v0  ;;  %v4524_v58 = vpop.permute.xlu1 %4523 }
0x1799   : > { %7447 = vmatprep.mubr.msk.f32.mxu0 %vm902_vm1, %v4271_v13  ;;  %7456 = vmatprep.subr.mxu1 %v4524_v58 }
0x179a   : > { %7457 = vmatpush3.msra.mxu1 %v4524_v58  ;;  %v4518_v6 = vpop.permute.xlu0 %4517 }
0x179b   : > { %7458 = vmatprep.subr.mxu1 %v4522_v48 }
0x179c   : > { %7448 = vmatmul.mubr.msk.f32.gmra.mxu0 %vm902_vm1, %v4273_v12  ;;  %7459 = vmatpush3.msra.mxu1 %v4522_v48  ;;  %v4520_v54 = vpop.permute.xlu1 %4519 }
0x179d   : > { %7460 = vmatprep.subr.mxu1 %v4520_v54 }
0x179e   : > { %7461 = vmatpush3.msra.mxu1 %v4520_v54  ;;  %v9842_v56 = vpop.permute.xlu0 %4698 }
0x179f   : > { %7462 = vmatprep.subr.mxu1 %v4518_v6 }
0x17a0   : > { %7463 = vmatpush3.msra.mxu1 %v4518_v6  ;;  %v4516_v46 = vpop.permute.xlu1 %4515 }
0x17a1   : > { %7464 = vmatprep.subr.mxu1 %v4516_v46 }
0x17a2   : > { %7465 = vmatpush3.msra.mxu1 %v4516_v46 }
0x17a3   : > { %7478 = vmatprep.subr.msk.mxu1 %vm902_vm1, %v9842_v56 }
0x180f   : > { %v9846_v51 = vpop.f32.mrf.mxu0 }
0x1811   : > { %v9848_v50 = vpop.f32.mrf.mxu0 }
0x1844   : > { %v9852_v37 = vpop.f32.mrf.mxu0 }
0x1846   : > { %v9854_v33 = vpop.f32.mrf.mxu0 }
0x1848   : > { %v9858_v45 = vpop.f32.mrf.mxu0 }
0x184a   : > { %v9860_v55 = vpop.f32.mrf.mxu0 }
0x184c   : > { %v9864_v9 = vpop.f32.mrf.mxu0 }
0x184e   : > { %v9866_v21 = vpop.f32.mrf.mxu0 }
0x1850   : > { %v7440_v22 = vpop.f32.mrf.mxu0 }
0x1851   : > { %v4394_v53 = vadd.f32 %v7440_v22, %v8514_v25 }
0x1852   : > { %v4388_v26 = vpop.f32.mrf.mxu0 }
0x1853   : > { %v4389_v4 = vadd.f32 %v4388_v26, %v8517_v62  ;;  %v4430_v49 = vsel %vm1040_vm5, %v4394_v53, -inf }
0x1854   : > { %4431 = vmax.xlane.f32.xlu1 %v4430_v49  ;;  %v7443_v1 = vpop.f32.mrf.mxu0 }
0x1855   : > { %v4404_v47 = vadd.f32 %v7443_v1, %v8520_v42  ;;  %v4427_v7 = vsel %vm1040_vm5, %v4389_v4, -inf }
0x1856   : > { %4428 = vmax.xlane.f32.xlu0 %v4427_v7  ;;  %v4398_v18 = vpop.f32.mrf.mxu0 }
0x1857   : > { %v4399_v13 = vadd.f32 %v4398_v18, %v8528_v52  ;;  %v4436_v19 = vsel %vm1040_vm5, %v4404_v47, -inf  ;;  %v9890_v18 = vpop.permute.xlu1 %4696 }
0x1858   : > { %v7446_v12 = vpop.f32.mrf.mxu0 }
0x1859   : > { %v4414_v38 = vadd.f32 %v7446_v12, %v8530_v15  ;;  %v4433_v46 = vsel %vm1040_vm5, %v4399_v13, -inf }
0x185a   : > { %4437 = vmax.xlane.f32.xlu0 %v4436_v19  ;;  %v4408_v0 = vpop.f32.mrf.mxu0 }
0x185b   : > { %v4442_v48 = vsel %vm1040_vm5, %v4414_v38, -inf  ;;  %v4409_v6 = vadd.f32 %v4408_v0, %v8537_v23 }
0x185c   : > { %4443 = vmax.xlane.f32.xlu1 %v4442_v48  ;;  %v7449_v58 = vpop.f32.mrf.mxu0 }
0x185d   : > { %v4424_v54 = vadd.f32 %v7449_v58, %v8539_v34  ;;  %v4439_v1 = vsel %vm1040_vm5, %v4409_v6, -inf }
0x185e   : > { %4434 = vmax.xlane.f32.xlu0 %v4433_v46  ;;  %v4418_v22 = vpop.f32.mrf.mxu0 }
0x185f   : > { %v4448_v26 = vsel %vm1040_vm5, %v4424_v54, -inf  ;;  %v4419_v49 = vadd.f32 %v4418_v22, %v8546_v40 }
0x1860   : > { %4449 = vmax.xlane.f32.xlu1 %v4448_v26 }
0x1861   : > { %v4445_v7 = vsel %vm1040_vm5, %v4419_v49, -inf }
0x1862   : > { %4440 = vmax.xlane.f32.xlu0 %v4439_v1 }
0x1866   : > { %4446 = vmax.xlane.f32.xlu0 %v4445_v7 }
0x1871   : > { %4692 = vrot.lane.b32.xlu1 %v9472_v59, %s10638_s22 }
0x187c   : > { %4694 = vrot.lane.b32.xlu0 %v9464_v28, %s10638_s22 }
0x18dd   : > { %v4432_v12 = vpop.xlane.xlu1 %4431 }
0x18de   : > { %v4452_v19 = vsub.f32 %v4394_v53, %v4432_v12 }
0x18df   : > { %v4429_v0 = vpop.xlane.xlu0 %4428 }
0x18e0   : > { %v4461_v48 = vmul.f32 1.442695, %v4452_v19  ;;  %v4451_v58 = vsub.f32 %v4389_v4, %v4429_v0 }
0x18e2   : > { %8035 = vpow2.f32 %v4461_v48  ;;  %v4459_v46 = vmul.f32 1.442695, %v4451_v58 }
0x18e3   : > { %v4438_v43 = vpop.xlane.xlu0 %4437 }
0x18e4   : > { %8037 = vpow2.f32 %v4459_v46  ;;  %v4454_v12 = vsub.f32 %v4404_v47, %v4438_v43 }
0x18e5   : > { %v4444_v4 = vpop.xlane.xlu1 %4443 }
0x18e6   : > { %v4465_v48 = vmul.f32 1.442695, %v4454_v12  ;;  %v4456_v58 = vsub.f32 %v4414_v38, %v4444_v4 }
0x18e7   : > { %v4435_v53 = vpop.xlane.xlu0 %4434 }
0x18e8   : > { %v4453_v0 = vsub.f32 %v4399_v13, %v4435_v53  ;;  %8039 = vpow2.f32 %v4465_v48 }
0x18e9   : > { %v4450_v46 = vpop.xlane.xlu1 %4449 }
0x18ea   : > { %v4458_v10 = vsub.f32 %v4424_v54, %v4450_v46 }
0x18eb   : > { %v4441_v19 = vpop.xlane.xlu0 %4440 }
0x18ec   : > { %v4455_v44 = vsub.f32 %v4409_v6, %v4441_v19  ;;  %v4473_v20 = vmul.f32 1.442695, %v4458_v10 }
0x18ed   : > { %v4693_v54 = vpop.permute.xlu1 %4692 }
0x18ee   : > { %v4467_v27 = vmul.f32 1.442695, %v4455_v44 }
0x18ef   : > { %v9892_v22 = vpop.eup %8035  ;;  %v4447_v11 = vpop.xlane.xlu0 %4446 }
0x18f0   : > { %v4478_v26 = vsel %vm1040_vm5, %v9892_v22, 0.0  ;;  %v4457_v8 = vsub.f32 %v4419_v49, %v4447_v11 }
0x18f1   : > { %v9896_v1 = vpop.eup %8037  ;;  %4479 = vadd.xlane.f32.xlu1 %v4478_v26  ;;  %v4463_v26 = vmul.f32 1.442695, %v4453_v0 }
0x18f2   : > { %v4475_v7 = vsel %vm1040_vm5, %v9896_v1, 0.0  ;;  %v4471_v60 = vmul.f32 1.442695, %v4457_v8 }
0x18f3   : > { %4476 = vadd.xlane.f32.xlu0 %v4475_v7  ;;  %v4469_v7 = vmul.f32 1.442695, %v4456_v58  ;;  %8041 = vpow2.f32 %v4463_v26  ;;  %v4695_v49 = vpop.permute.xlu0 %4694 }
0x18f5   : > { %8043 = vpow2.f32 %v4469_v7  ;;  %v9904_v43 = vpop.eup %8039 }
0x18f6   : > { %8045 = vpow2.f32 %v4467_v27  ;;  %v4484_v13 = vsel %vm1040_vm5, %v9904_v43, 0.0 }
0x18f7   : > { %8047 = vpow2.f32 %v4473_v20 }
0x18f8   : > { %8049 = vpow2.f32 %v4471_v60 }
0x1900   : > { %v9906_v47 = vpop.eup %8041 }
0x1901   : > { %v4481_v44 = vsel %vm1040_vm5, %v9906_v47, 0.0 }
0x1902   : > { %4688 = vrot.lane.b32.xlu1 %v9480_v2, %s10638_s22  ;;  %v9910_v38 = vpop.eup %8043 }
0x1903   : > { %v9914_v11 = vpop.eup %8045  ;;  %v4490_v8 = vsel %vm1040_vm5, %v9910_v38, 0.0 }
0x1904   : > { %v9918_v60 = vpop.eup %8047  ;;  %v4487_v20 = vsel %vm1040_vm5, %v9914_v11, 0.0 }
0x1905   : > { %v9922_v27 = vpop.eup %8049  ;;  %v4496_v10 = vsel %vm1040_vm5, %v9918_v60, 0.0 }
0x1906   : > { %v4493_v6 = vsel %vm1040_vm5, %v9922_v27, 0.0 }
0x1909   : > { %4690 = vrot.lane.b32.xlu0 %v9468_v57, %s10638_s22 }
0x1926   : > { %4485 = vadd.xlane.f32.xlu1 %v4484_v13 }
0x1928   : > { %4482 = vadd.xlane.f32.xlu0 %v4481_v44 }
0x192a   : > { %4491 = vadd.xlane.f32.xlu1 %v4490_v8 }
0x192c   : > { %4488 = vadd.xlane.f32.xlu0 %v4487_v20 }
0x192e   : > { %4497 = vadd.xlane.f32.xlu1 %v4496_v10 }
0x1930   : > { %4494 = vadd.xlane.f32.xlu0 %v4493_v6 }
0x193f   : > { %4684 = vrot.lane.b32.xlu1 %v9454_v3, %s10638_s22 }
0x1943   : > { %4670 = vrot.lane.b32.xlu1 %v9476_v41, %s10639_s2 }
0x1946   : > { %4686 = vrot.lane.b32.xlu0 %v9476_v41, %s10638_s22 }
0x1947   : > { %4674 = vrot.lane.b32.xlu1 %v9468_v57, %s10639_s2 }
0x194a   : > { %4668 = vrot.lane.b32.xlu0 %v9454_v3, %s10639_s2 }
0x194b   : > { %4678 = vrot.lane.b32.xlu1 %v9464_v28, %s10639_s2 }
0x194e   : > { %4672 = vrot.lane.b32.xlu0 %v9480_v2, %s10639_s2 }
0x194f   : > { %4682 = vrot.lane.b32.xlu1 %v9462_v31, %s10639_s2 }
0x1952   : > { %4676 = vrot.lane.b32.xlu0 %v9472_v59, %s10639_s2 }
0x1956   : > { %4680 = vrot.lane.b32.xlu0 %v9458_v30, %s10639_s2 }
0x197a   : > { %v4480_v53 = vpop.xlane.xlu1 %4479 }
0x197b   : > { %8051 = vrcp.f32 %v4480_v53 }
0x197c   : > { %v4477_v4 = vpop.xlane.xlu0 %4476 }
0x197d   : > { %8053 = vrcp.f32 %v4477_v4 }
0x1988   : > { %v8052_v12 = vpop.eup %8051 }
0x1989   : > { %v4502_v48 = vmul.f32 %v8052_v12, %v9892_v22  ;;  %v4691_v22 = vpop.permute.xlu0 %4690 }
0x198a   : > { %v8054_v19 = vpop.eup %8053 }
0x198b   : > { %v4500_v0 = vmul.f32 %v8054_v19, %v9896_v1  ;;  %v4689_v1 = vpop.permute.xlu1 %4688 }
0x198d   : > { %7466 = vmatprep.mubr.msk.f32.mxu1 %vm1040_vm5, %v4500_v0 }
0x198e   : > { %7467 = vmatmul.mubr.msk.f32.vlgmr.msra.gmra.mxu1 %vm1040_vm5, %v4502_v48 }
0x198f   : > { %7479 = vmatpush3.xpose.msk.msra.mxu1 %vm902_vm1, %v9842_v56 }
0x1990   : > { %7480 = vmatprep.subr.msk.mxu1 %vm902_vm1, %v9890_v18 }
0x1993   : > { %7481 = vmatpush3.xpose.msk.msra.mxu1 %vm902_vm1, %v9890_v18 }
0x1994   : > { %7482 = vmatprep.subr.msk.mxu1 %vm902_vm1, %v4695_v49 }
0x1997   : > { %7483 = vmatpush3.xpose.msk.msra.mxu1 %vm902_vm1, %v4695_v49 }
0x1998   : > { %7484 = vmatprep.subr.msk.mxu1 %vm902_vm1, %v4693_v54 }
0x199b   : > { %7485 = vmatpush3.xpose.msk.msra.mxu1 %vm902_vm1, %v4693_v54 }
0x199c   : > { %7486 = vmatprep.subr.msk.mxu1 %vm902_vm1, %v4691_v22 }
0x199f   : > { %7487 = vmatpush3.xpose.msk.msra.mxu1 %vm902_vm1, %v4691_v22 }
0x19a0   : > { %7488 = vmatprep.subr.msk.mxu1 %vm902_vm1, %v4689_v1 }
0x19a3   : > { %7489 = vmatpush3.xpose.msk.msra.mxu1 %vm902_vm1, %v4689_v1 }
0x19af   : > { %v4486_v56 = vpop.xlane.xlu1 %4485 }
0x19b0   : > { %8055 = vrcp.f32 %v4486_v56 }
0x19b1   : > { %v4483_v18 = vpop.xlane.xlu0 %4482 }
0x19b2   : > { %8057 = vrcp.f32 %v4483_v18 }
0x19b3   : > { %v4492_v58 = vpop.xlane.xlu1 %4491 }
0x19b4   : > { %8059 = vrcp.f32 %v4492_v58 }
0x19b5   : > { %v4489_v46 = vpop.xlane.xlu0 %4488 }
0x19b6   : > { %8061 = vrcp.f32 %v4489_v46 }
0x19b7   : > { %v4498_v26 = vpop.xlane.xlu1 %4497 }
0x19b8   : > { %8063 = vrcp.f32 %v4498_v26 }
0x19b9   : > { %v4495_v7 = vpop.xlane.xlu0 %4494 }
0x19ba   : > { %8065 = vrcp.f32 %v4495_v7 }
0x19bb   : > { %v4685_v20 = vpop.permute.xlu1 %4684 }
0x19bd   : > { %v4687_v13 = vpop.permute.xlu0 %4686  ;;  %v8056_v44 = vpop.eup %8055 }
0x19be   : > { %7490 = vmatprep.subr.msk.mxu1 %vm902_vm1, %v4687_v13  ;;  %v4506_v6 = vmul.f32 %v8056_v44, %v9904_v43 }
0x19bf   : > { %v8058_v8 = vpop.eup %8057  ;;  %7491 = vmatpush3.xpose.msk.msra.mxu1 %vm902_vm1, %v4687_v13  ;;  %v4671_v43 = vpop.permute.xlu1 %4670 }
0x19c0   : > { %7492 = vmatprep.subr.msk.mxu1 %vm902_vm1, %v4685_v20  ;;  %v4504_v10 = vmul.f32 %v8058_v8, %v9906_v47 }
0x19c1   : > { %v8060_v54 = vpop.eup %8059  ;;  %v4669_v4 = vpop.permute.xlu0 %4668 }
0x19c2   : > { %7469 = vmatprep.mubr.msk.f32.mxu1 %vm1040_vm5, %v4504_v10  ;;  %v4510_v12 = vmul.f32 %v8060_v54, %v9910_v38 }
0x19c3   : > { %v8062_v49 = vpop.eup %8061  ;;  %7470 = vmatmul.mubr.msk.f32.gmra.mxu1 %vm1040_vm5, %v4506_v6 }
0x19c4   : > { %7493 = vmatpush3.xpose.msk.msra.mxu1 %vm902_vm1, %v4685_v20  ;;  %v4508_v53 = vmul.f32 %v8062_v49, %v9914_v11  ;;  %v4675_v11 = vpop.permute.xlu1 %4674 }
0x19c5   : > { %v8064_v19 = vpop.eup %8063  ;;  %v4673_v22 = vpop.permute.xlu0 %4672 }
0x19c6   : > { %7472 = vmatprep.mubr.msk.f32.mxu1 %vm1040_vm5, %v4508_v53  ;;  %v4514_v48 = vmul.f32 %v8064_v19, %v9918_v60 }
0x19c7   : > { %v8066_v0 = vpop.eup %8065  ;;  %7473 = vmatmul.mubr.msk.f32.gmra.mxu1 %vm1040_vm5, %v4510_v12 }
0x19c8   : > { %v4512_v47 = vmul.f32 %v8066_v0, %v9922_v27  ;;  %v4679_v1 = vpop.permute.xlu1 %4678 }
0x19c9   : > { %v4677_v38 = vpop.permute.xlu0 %4676 }
0x19ca   : > { %7475 = vmatprep.mubr.msk.f32.mxu1 %vm1040_vm5, %v4512_v47 }
0x19cb   : > { %7476 = vmatmul.mubr.msk.f32.gmra.mxu1 %vm1040_vm5, %v4514_v48 }
0x19cc   : > { %7494 = vmatprep.mubr.msk.f32.mxu1 %vm902_vm1, %v4669_v4  ;;  %v4683_v60 = vpop.permute.xlu1 %4682 }
0x19cd   : > { %v4681_v27 = vpop.permute.xlu0 %4680 }
0x19cf   : > { %7495 = vmatmul.mubr.msk.f32.vlgmr.msra.gmra.mxu1 %vm902_vm1, %v4671_v43 }
0x19d0   : > { %7497 = vmatprep.mubr.msk.f32.mxu1 %vm902_vm1, %v4673_v22 }
0x19d3   : > { %7498 = vmatmul.mubr.msk.f32.gmra.mxu1 %vm902_vm1, %v4675_v11 }
0x19d4   : > { %7500 = vmatprep.mubr.msk.f32.mxu1 %vm902_vm1, %v4677_v38 }
0x19d7   : > { %7501 = vmatmul.mubr.msk.f32.gmra.mxu1 %vm902_vm1, %v4679_v1 }
0x19d8   : > { %7503 = vmatprep.mubr.msk.f32.mxu1 %vm902_vm1, %v4681_v27 }
0x19db   : > { %7504 = vmatmul.mubr.msk.f32.gmra.mxu1 %vm902_vm1, %v4683_v60 }
0x1a4e   : > { %v9990_v56 = vpop.f32.mrf.mxu1 }
0x1a50   : > { %v9992_v18 = vpop.f32.mrf.mxu1 }
0x1a51   : > { %v7699_v58 = vpack.i.bf16 %v9990_v56, %v9992_v18 }
0x1a83   : > { %v9996_v46 = vpop.f32.mrf.mxu1 }
0x1a85   : > { %v9998_v26 = vpop.f32.mrf.mxu1 }
0x1a86   : > { %v7704_v7 = vpack.i.bf16 %v9996_v46, %v9998_v26 }
0x1a87   : > { %v10002_v13 = vpop.f32.mrf.mxu1 }
0x1a89   : > { %v10004_v44 = vpop.f32.mrf.mxu1 }
0x1a8a   : > { %v7724_v8 = vpack.i.bf16 %v10002_v13, %v10004_v44 }
0x1a8b   : > { %v10008_v20 = vpop.f32.mrf.mxu1 }
0x1a8d   : > { %v10010_v10 = vpop.f32.mrf.mxu1 }
0x1a8e   : > { %v7734_v6 = vpack.i.bf16 %v10008_v20, %v10010_v10 }
0x1a8f   : > { %v7496_v54 = vpop.f32.mrf.mxu1 }
0x1a90   : > { %v4804_v49 = vadd.f32 %v7496_v54, %v8514_v25 }
0x1a91   : > { %v4798_v53 = vpop.f32.mrf.mxu1 }
0x1a92   : > { %v4799_v4 = vadd.f32 %v4798_v53, %v8517_v62  ;;  %v4840_v12 = vsel %vm1040_vm5, %v4804_v49, -inf }
0x1a93   : > { %4841 = vmax.xlane.f32.xlu1 %v4840_v12  ;;  %v7499_v19 = vpop.f32.mrf.mxu1 }
0x1a94   : > { %v4814_v0 = vadd.f32 %v7499_v19, %v8520_v42  ;;  %v4837_v43 = vsel %vm1040_vm5, %v4799_v4, -inf }
0x1a95   : > { %4838 = vmax.xlane.f32.xlu0 %v4837_v43  ;;  %v4808_v47 = vpop.f32.mrf.mxu1 }
0x1a96   : > { %v4809_v22 = vadd.f32 %v4808_v47, %v8528_v52  ;;  %v4846_v25 = vsel %vm1040_vm5, %v4814_v0, -inf }
0x1a97   : > { %v7502_v48 = vpop.f32.mrf.mxu1 }
0x1a98   : > { %v4824_v11 = vadd.f32 %v7502_v48, %v8530_v15  ;;  %v4843_v60 = vsel %vm1040_vm5, %v4809_v22, -inf }
0x1a99   : > { %4847 = vmax.xlane.f32.xlu0 %v4846_v25  ;;  %v4818_v38 = vpop.f32.mrf.mxu1 }
0x1a9a   : > { %v4852_v62 = vsel %vm1040_vm5, %v4824_v11, -inf  ;;  %v4819_v27 = vadd.f32 %v4818_v38, %v8537_v23 }
0x1a9b   : > { %4853 = vmax.xlane.f32.xlu1 %v4852_v62  ;;  %v7505_v1 = vpop.f32.mrf.mxu1 }
0x1a9c   : > { %v4834_v42 = vadd.f32 %v7505_v1, %v8539_v34  ;;  %v4849_v53 = vsel %vm1040_vm5, %v4819_v27, -inf }
0x1a9d   : > { %4844 = vmax.xlane.f32.xlu0 %v4843_v60  ;;  %v4828_v54 = vpop.f32.mrf.mxu1 }
0x1a9e   : > { %v4858_v52 = vsel %vm1040_vm5, %v4834_v42, -inf  ;;  %v4829_v15 = vadd.f32 %v4828_v54, %v8546_v40 }
0x1a9f   : > { %4859 = vmax.xlane.f32.xlu1 %v4858_v52 }
0x1aa0   : > { %v4855_v12 = vsel %vm1040_vm5, %v4829_v15, -inf }
0x1aa1   : > { %4850 = vmax.xlane.f32.xlu0 %v4849_v53 }
0x1aa5   : > { %4856 = vmax.xlane.f32.xlu0 %v4855_v12 }
0x1ab0   : > { %4937 = vrot.lane.b32.xlu1 %v9458_v30, %s10640_s30 }
0x1ab4   : > { %4935 = vrot.lane.b32.xlu1 %v9464_v28, %s10640_s30 }
0x1ab8   : > { %4933 = vrot.lane.b32.xlu1 %v9472_v59, %s10640_s30 }
0x1abb   : > { %4939 = vrot.lane.b32.xlu0 %v9462_v31, %s10640_s30 }
0x1abc   : > { %4929 = vrot.lane.b32.xlu1 %v9480_v2, %s10640_s30 }
0x1abf   : > { %4931 = vrot.lane.b32.xlu0 %v9468_v57, %s10640_s30 }
0x1b1c   : > { %v4842_v23 = vpop.xlane.xlu1 %4841 }
0x1b1d   : > { %v4862_v34 = vsub.f32 %v4804_v49, %v4842_v23 }
0x1b1e   : > { %v4839_v40 = vpop.xlane.xlu0 %4838 }
0x1b1f   : > { %v4871_v19 = vmul.f32 1.442695, %v4862_v34  ;;  %v4861_v30 = vsub.f32 %v4799_v4, %v4839_v40 }
0x1b21   : > { %8067 = vpow2.f32 %v4871_v19  ;;  %v4869_v43 = vmul.f32 1.442695, %v4861_v30 }
0x1b22   : > { %v4848_v28 = vpop.xlane.xlu0 %4847 }
0x1b23   : > { %8069 = vpow2.f32 %v4869_v43  ;;  %v4864_v47 = vsub.f32 %v4814_v0, %v4848_v28 }
0x1b24   : > { %v4854_v59 = vpop.xlane.xlu1 %4853 }
0x1b25   : > { %v4875_v48 = vmul.f32 1.442695, %v4864_v47  ;;  %v4866_v25 = vsub.f32 %v4824_v11, %v4854_v59 }
0x1b26   : > { %v4845_v31 = vpop.xlane.xlu0 %4844 }
0x1b27   : > { %8071 = vpow2.f32 %v4875_v48  ;;  %v4879_v38 = vmul.f32 1.442695, %v4866_v25  ;;  %v4863_v2 = vsub.f32 %v4809_v22, %v4845_v31 }
0x1b28   : > { %v4860_v62 = vpop.xlane.xlu1 %4859 }
0x1b29   : > { %8073 = vpow2.f32 %v4879_v38  ;;  %v4873_v57 = vmul.f32 1.442695, %v4863_v2  ;;  %v4868_v1 = vsub.f32 %v4834_v42, %v4860_v62 }
0x1b2a   : > { %v4851_v49 = vpop.xlane.xlu0 %4850 }
0x1b2b   : > { %8075 = vpow2.f32 %v4873_v57  ;;  %v4883_v60 = vmul.f32 1.442695, %v4868_v1  ;;  %v4865_v4 = vsub.f32 %v4819_v27, %v4851_v49  ;;  %v10642_v1 = vpack.i.bf16 %v9852_v37, %v9854_v33 }
0x1b2c   : > { %v4938_v54 = vpop.permute.xlu1 %4937  ;;  %v10644_v49 = vpack.i.bf16 %v9864_v9, %v9866_v21  ;;  %v10646_v37 = vpack.i.bf16 %v9858_v45, %v9860_v55 }
0x1b2d   : > { %v4877_v52 = vmul.f32 1.442695, %v4865_v4  ;;  %8077 = vpow2.f32 %v4883_v60 }
0x1b2e   : > { %v10042_v53 = vpop.eup %8067  ;;  %v4857_v0 = vpop.xlane.xlu0 %4856 }
0x1b2f   : > { %8079 = vpow2.f32 %v4877_v52  ;;  %v4867_v11 = vsub.f32 %v4829_v15, %v4857_v0  ;;  %v4888_v12 = vsel %vm1040_vm5, %v10042_v53, 0.0 }
0x1b30   : > { %v8070_v22 = vpop.eup %8069  ;;  %4889 = vadd.xlane.f32.xlu1 %v4888_v12  ;;  %v4936_v34 = vpop.permute.xlu1 %4935 }
0x1b31   : > { %v4881_v23 = vmul.f32 1.442695, %v4867_v11  ;;  %v4885_v42 = vsel %vm1040_vm5, %v8070_v22, 0.0 }
0x1b32   : > { %4886 = vadd.xlane.f32.xlu0 %v4885_v42  ;;  %v4940_v40 = vpop.permute.xlu0 %4939 }
0x1b33   : > { %8081 = vpow2.f32 %v4881_v23  ;;  %7506 = vmatprep.subr.mxu0 %v4940_v40 }
0x1b34   : > { %v10047_v27 = vpop.eup %8071  ;;  %7507 = vmatpush3.msra.mxu0 %v4940_v40  ;;  %v4934_v30 = vpop.permute.xlu1 %4933  ;;  %v7767_v40 = vld [vmem:[%s10565_s6 + $0x18] sm:$0xff]  }
0x1b35   : > { %7508 = vmatprep.subr.mxu0 %v4938_v54  ;;  %v4894_v15 = vsel %vm1040_vm5, %v10047_v27, 0.0 }
0x1b36   : > { %v10051_v19 = vpop.eup %8073  ;;  %4895 = vadd.xlane.f32.xlu1 %v4894_v15  ;;  %7509 = vmatpush3.msra.mxu0 %v4938_v54  ;;  %v4932_v48 = vpop.permute.xlu0 %4931 }
0x1b37   : > { %7510 = vmatprep.subr.mxu0 %v4936_v34  ;;  %v4900_v47 = vsel %vm1040_vm5, %v10051_v19, 0.0 }
0x1b38   : > { %v8076_v43 = vpop.eup %8075  ;;  %7511 = vmatpush3.msra.mxu0 %v4936_v34  ;;  %v4930_v31 = vpop.permute.xlu1 %4929 }
0x1b39   : > { %7512 = vmatprep.subr.mxu0 %v4934_v30  ;;  %v4891_v28 = vsel %vm1040_vm5, %v8076_v43, 0.0 }
0x1b3a   : > { %4892 = vadd.xlane.f32.xlu0 %v4891_v28  ;;  %4901 = vadd.xlane.f32.xlu1 %v4900_v47  ;;  %v10056_v59 = vpop.eup %8077 }
0x1b3b   : > { %7513 = vmatpush3.msra.mxu0 %v4934_v30  ;;  %v4906_v2 = vsel %vm1040_vm5, %v10056_v59, 0.0 }
0x1b3c   : > { %v8080_v25 = vpop.eup %8079  ;;  %7514 = vmatprep.subr.mxu0 %v4932_v48 }
0x1b3d   : > { %7515 = vmatpush3.msra.mxu0 %v4932_v48  ;;  %v4897_v38 = vsel %vm1040_vm5, %v8080_v25, 0.0 }
0x1b3e   : > { %7516 = vmatprep.subr.mxu0 %v4930_v31  ;;  %4898 = vadd.xlane.f32.xlu0 %v4897_v38 }
0x1b3f   : > { %4907 = vadd.xlane.f32.xlu1 %v4906_v2  ;;  %7517 = vmatpush3.msra.mxu0 %v4930_v31 }
0x1b40   : > { %v8082_v62 = vpop.eup %8081 }
0x1b41   : > { %v4903_v57 = vsel %vm1040_vm5, %v8082_v62, 0.0 }
0x1b42   : > { %4904 = vadd.xlane.f32.xlu0 %v4903_v57 }
0x1b50   : > { %4925 = vrot.lane.b32.xlu1 %v9454_v3, %s10640_s30  ;;  %v10645_v3 = vpack.i.bf16 %v9846_v51, %v9848_v50 }
0x1b54   : > { %7695 = vrot.lane.b32.xlu1 %v10642_v1, %s10641_s0 }
0x1b58   : > { %7705 = vrot.lane.b32.xlu1 %v7704_v7, %s10643_s24  ;;  %4927 = vrot.lane.b32.xlu0 %v9476_v41, %s10640_s30 }
0x1b5c   : > { %7715 = vrot.lane.b32.xlu1 %v10644_v49, %s10641_s0  ;;  %7690 = vrot.lane.b32.xlu0 %v10645_v3, %s10641_s0 }
0x1b60   : > { %7700 = vrot.lane.b32.xlu0 %v7699_v58, %s10643_s24 }
0x1b64   : > { %7710 = vrot.lane.b32.xlu0 %v10646_v37, %s10641_s0  ;;  %s593_s0 = scalar_lea.vmem %s10577_s18, %s6347_s21 }
0x1bb9   : > { %v4890_v41 = vpop.xlane.xlu1 %4889 }
0x1bbb   : > { %v4887_v33 = vpop.xlane.xlu0 %4886 }
0x1bbc   : > { %8083 = vrcp.f32 %v4887_v33 }
0x1bbd   : > { %8085 = vrcp.f32 %v4890_v41 }
0x1bbf   : > { %v4896_v9 = vpop.xlane.xlu1 %4895 }
0x1bc3   : > { %v4893_v21 = vpop.xlane.xlu0 %4892  ;;  %v4902_v46 = vpop.xlane.xlu1 %4901 }
0x1bc4   : > { %8087 = vrcp.f32 %v4893_v21 }
0x1bc5   : > { %8089 = vrcp.f32 %v4896_v9 }
0x1bc7   : > { %v4899_v51 = vpop.xlane.xlu0 %4898 }
0x1bc8   : > { %8091 = vrcp.f32 %v4899_v51  ;;  %v4908_v18 = vpop.xlane.xlu1 %4907 }
0x1bc9   : > { %v8084_v50 = vpop.eup %8083  ;;  %8093 = vrcp.f32 %v4902_v46 }
0x1bca   : > { %v4910_v56 = vmul.f32 %v8084_v50, %v8070_v22  ;;  %v8086_v45 = vpop.eup %8085 }
0x1bcb   : > { %v4905_v58 = vpop.xlane.xlu0 %4904  ;;  %v4912_v60 = vmul.f32 %v8086_v45, %v10042_v53 }
0x1bcc   : > { %8095 = vrcp.f32 %v4905_v58  ;;  %7522 = vmatprep.mubr.msk.f32.mxu0 %vm1040_vm5, %v4910_v56  ;;  %v4926_v7 = vpop.permute.xlu1 %4925 }
0x1bcd   : > { %8097 = vrcp.f32 %v4908_v18 }
0x1bcf   : > { %v4928_v55 = vpop.permute.xlu0 %4927 }
0x1bd0   : > { %7518 = vmatprep.subr.mxu0 %v4928_v55  ;;  %v7696_v57 = vpop.permute.xlu1 %7695 }
0x1bd1   : > { %v8088_v26 = vpop.eup %8087  ;;  %7519 = vmatpush3.msra.mxu0 %v4928_v55  ;;  %v7698_v41 = vunpack.i.h.bf16 %v7696_v57  ;;  %v7697_v33 = vunpack.i.l.bf16 %v7696_v57 }
0x1bd2   : > { %7520 = vmatprep.subr.mxu0 %v4926_v7  ;;  %v4914_v4 = vmul.f32 %v8088_v26, %v8076_v43  ;;  %v8090_v54 = vpop.eup %8089 }
0x1bd3   : > { %7521 = vmatpush3.msra.mxu0 %v4926_v7  ;;  %v4916_v0 = vmul.f32 %v8090_v54, %v10047_v27  ;;  %v7768_v27 = vld [vmem:[%s10565_s6 + $0x10] sm:$0xff]   ;;  %v5177_v55 = vsel %vm902_vm1, %v9690_v61, %v7698_v41 }
0x1bd4   : > { %7523 = vmatmul.mubr.msk.f32.vlgmr.msra.gmra.mxu0 %vm1040_vm5, %v4912_v60  ;;  %7534 = vmatprep.subr.bf16.mxu0 %v7767_v40  ;;  %v7706_v44 = vpop.permute.xlu1 %7705 }
0x1bd5   : > { %v8092_v52 = vpop.eup %8091  ;;  %7525 = vmatprep.mubr.msk.f32.mxu0 %vm1040_vm5, %v4914_v4  ;;  %7535 = vmatpush3.bf16.msra.mxu0 %v7767_v40  ;;  %v7708_v51 = vunpack.i.h.bf16 %v7706_v44  ;;  %v7707_v50 = vunpack.i.l.bf16 %v7706_v44 }
0x1bd6   : > { %v4918_v11 = vmul.f32 %v8092_v52, %v8080_v25  ;;  %v8094_v12 = vpop.eup %8093  ;;  %7536 = vmatprep.subr.bf16.mxu0 %v7768_v27 }
0x1bd7   : > { %v4920_v53 = vmul.f32 %v8094_v12, %v10051_v19 }
0x1bd8   : > { %7526 = vmatmul.mubr.msk.f32.gmra.mxu0 %vm1040_vm5, %v4916_v0  ;;  %v7716_v9 = vpop.permute.xlu1 %7715 }
0x1bd9   : > { %v8096_v22 = vpop.eup %8095  ;;  %7528 = vmatprep.mubr.msk.f32.mxu0 %vm1040_vm5, %v4918_v11  ;;  %7537 = vmatpush3.bf16.msra.mxu0 %v7768_v27  ;;  %v5185_v11 = vsel %vm2616_vm11, %v5177_v55, %v7708_v51 }
0x1bda   : > { %v4922_v23 = vmul.f32 %v8096_v22, %v8082_v62  ;;  %v8098_v34 = vpop.eup %8097  ;;  %v7691_v62 = vpop.permute.xlu0 %7690 }
0x1bdb   : > { %v4924_v42 = vmul.f32 %v8098_v34, %v10056_v59  ;;  %v7693_v1 = vunpack.i.h.bf16 %v7691_v62  ;;  %v7692_v49 = vunpack.i.l.bf16 %v7691_v62 }
0x1bdc   : > { %7529 = vmatmul.mubr.msk.f32.gmra.mxu0 %vm1040_vm5, %v4920_v53 }
0x1bdd   : > { %7531 = vmatprep.mubr.msk.f32.mxu0 %vm1040_vm5, %v4922_v23  ;;  %v5175_v10 = vsel %vm902_vm1, %v9686_v16, %v7693_v1  ;;  %v5176_v16 = vsel %vm902_vm1, %v9692_v39, %v7697_v33  ;;  %v7718_v39 = vunpack.i.h.bf16 %v7716_v9  ;;  %v7717_v23 = vunpack.i.l.bf16 %v7716_v9 }
0x1bde   : > { %v7701_v13 = vpop.permute.xlu0 %7700  ;;  %v5184_v0 = vsel %vm2616_vm11, %v5176_v16, %v7707_v50  ;;  %v10648_v16 = vld [vmem:[#allocation2_spill] sm:$0xff] }
0x1bdf   : > { %v7703_v3 = vunpack.i.h.bf16 %v7701_v13  ;;  %v7702_v37 = vunpack.i.l.bf16 %v7701_v13 }
0x1be0   : > { %7532 = vmatmul.mubr.msk.f32.gmra.mxu0 %vm1040_vm5, %v4924_v42 }
0x1be1   : > { %v5183_v18 = vsel %vm2616_vm11, %v5175_v10, %v7703_v3 }
0x1c94   : > { %v7524_v15 = vpop.f32.mrf.mxu0 }
0x1c96   : > { %v5039_v19 = vpop.f32.mrf.mxu0 }
0x1c97   : > { %v7719_v30 = vpack.i.bf16 %v7524_v15, %v5039_v19 }
0x1c98   : > { %v7527_v43 = vpop.f32.mrf.mxu0 }
0x1c99   : > { %7720 = vrot.lane.b32.xlu0 %v7719_v30, %s10647_s1 }
0x1c9a   : > { %v5049_v28 = vpop.f32.mrf.mxu0 }
0x1c9b   : > { %v7729_v47 = vpack.i.bf16 %v7527_v43, %v5049_v28 }
0x1c9c   : > { %v7530_v59 = vpop.f32.mrf.mxu0 }
0x1c9d   : > { %7725 = vrot.lane.b32.xlu0 %v7724_v8, %s10643_s24  ;;  %7730 = vrot.lane.b32.xlu1 %v7729_v47, %s10647_s1  ;;  %v7711_v8 = vpop.permute.xlu0 %7710 }
0x1c9e   : > { %v5059_v48 = vpop.f32.mrf.mxu0  ;;  %v7713_v60 = vunpack.i.h.bf16 %v7711_v8  ;;  %v7712_v4 = vunpack.i.l.bf16 %v7711_v8 }
0x1c9f   : > { %v7739_v25 = vpack.i.bf16 %v7530_v59, %v5059_v48 }
0x1ca0   : > { %v7533_v31 = vpop.f32.mrf.mxu0  ;;  %v5179_v27 = vsel %vm902_vm1, %v9694_v32, %v7713_v60  ;;  %v5178_v15 = vsel %vm902_vm1, %v9696_v29, %v7712_v4  ;;  %v5181_v32 = vsel %vm902_vm1, %v9698_v24, %v7718_v39  ;;  %v5180_v29 = vsel %vm902_vm1, %v9700_v35, %v7717_v23  ;;  %v6595_v24 = vld [vmem:[%s10566_s7 + $0x1] ss:$0 sm:$0xff]  ;;  %v10650_v4 = vld [vmem:[#allocation3_spill] sm:$0xff] }
0x1ca1   : > { %7735 = vrot.lane.b32.xlu1 %v7734_v6, %s10643_s24  ;;  %7740 = vrot.lane.b32.xlu0 %v7739_v25, %s10647_s1  ;;  %v5174_v6 = vsel %vm902_vm1, %v9688_v36, %v7692_v49 }
0x1ca2   : > { %v5069_v38 = vpop.f32.mrf.mxu0  ;;  %v5182_v56 = vsel %vm2616_vm11, %v5174_v6, %v7702_v37 }
0x1ca3   : > { %v7744_v2 = vpack.i.bf16 %v7533_v31, %v5069_v38 }
0x1ca5   : > { %7745 = vrot.lane.b32.xlu1 %v7744_v2, %s10647_s1  ;;  %s10652_s1 = sld [smem:[#allocation8_spill]] }
0x1cab   : > { %s589_s20 = scalar_lea.vmem %s10652_s1, %s6666_s23 }
0x1d0b   : > { %v7721_v20 = vpop.permute.xlu0 %7720 }
0x1d0c   : > { %v7723_v21 = vunpack.i.h.bf16 %v7721_v20  ;;  %v7722_v46 = vunpack.i.l.bf16 %v7721_v20 }
0x1d0e   : > { %v5191_v58 = vsel %vm2625_vm12, %v5183_v18, %v7723_v21  ;;  %v5190_v45 = vsel %vm2625_vm12, %v5182_v56, %v7722_v46 }
0x1d0f   : > { %v5198_v26 = vpack.c.bf16 %v5191_v58, %v5190_v45  ;;  %v7726_v36 = vpop.permute.xlu0 %7725  ;;  %v7731_v7 = vpop.permute.xlu1 %7730 }
0x1d10   : > { %v7733_v54 = vunpack.i.h.bf16 %v7731_v7  ;;  %v7732_v52 = vunpack.i.l.bf16 %v7731_v7  ;;  %v7728_v12 = vunpack.i.h.bf16 %v7726_v36  ;;  %v7727_v22 = vunpack.i.l.bf16 %v7726_v36  ;;  %v10649_v7 = vld [vmem:[#allocation4_spill] sm:$0xff] }
0x1d11   : > { %7538 = vmatprep.mubr.msk.bf16.mxu0 %vm640_vm0, %v5198_v26 }
0x1d12   : > { %v5192_v61 = vsel %vm2625_vm12, %v5184_v0, %v7732_v52  ;;  %v5193_v53 = vsel %vm2625_vm12, %v5185_v11, %v7733_v54  ;;  %v5187_v43 = vsel %vm2616_vm11, %v5179_v27, %v7728_v12  ;;  %v5186_v28 = vsel %vm2616_vm11, %v5178_v15, %v7727_v22  ;;  %v10651_v52 = vld [vmem:[#allocation5_spill] sm:$0xff] }
0x1d13   : > { %v5199_v34 = vpack.c.bf16 %v5193_v53, %v5192_v61  ;;  %v7741_v42 = vpop.permute.xlu0 %7740  ;;  %v7736_v40 = vpop.permute.xlu1 %7735 }
0x1d14   : > { %v7743_v19 = vunpack.i.h.bf16 %v7741_v42  ;;  %v7742_v30 = vunpack.i.l.bf16 %v7741_v42  ;;  %v7738_v47 = vunpack.i.h.bf16 %v7736_v40  ;;  %v7737_v59 = vunpack.i.l.bf16 %v7736_v40 }
0x1d15   : > { %7539 = vmatmul.mubr.msk.bf16.vlgmr.msra.gmra.mxu0 %vm640_vm0, %v5199_v34 }
0x1d16   : > { %v5195_v48 = vsel %vm2625_vm12, %v5187_v43, %v7743_v19  ;;  %v5194_v25 = vsel %vm2625_vm12, %v5186_v28, %v7742_v30  ;;  %v5188_v57 = vsel %vm2616_vm11, %v5180_v29, %v7737_v59  ;;  %v5189_v13 = vsel %vm2616_vm11, %v5181_v32, %v7738_v47 }
0x1d17   : > { %v5200_v31 = vpack.c.bf16 %v5195_v48, %v5194_v25  ;;  %v7746_v38 = vpop.permute.xlu1 %7745 }
0x1d18   : > { %v7748_v2 = vunpack.i.h.bf16 %v7746_v38  ;;  %v7747_v62 = vunpack.i.l.bf16 %v7746_v38 }
0x1d19   : > { %7542 = vmatprep.mubr.msk.bf16.mxu0 %vm640_vm0, %v5200_v31 }
0x1d1a   : > { %v5196_v44 = vsel %vm2625_vm12, %v5188_v57, %v7747_v62  ;;  %v5197_v8 = vsel %vm2625_vm12, %v5189_v13, %v7748_v2 }
0x1d1b   : > { %v5201_v1 = vpack.c.bf16 %v5197_v8, %v5196_v44 }
0x1d1d   : > { %7543 = vmatmul.mubr.msk.bf16.gmra.mxu0 %vm640_vm0, %v5201_v1 }
0x1dd5   : > { %v7540_v49 = vpop.f32.mrf.mxu0 }
0x1dd6   : > { %v5282_v3 = vadd.f32 %v7540_v49, %v6595_v24 }
0x1dd7   : > { %v5273_v35 = vpop.f32.mrf.mxu0 }
0x1dd8   : > { %v5274_v37 = vadd.f32 %v6595_v24, %v5273_v35  ;;  %v10163_v20 = vadd.f32 %v5282_v3, %v9343_v63 }
0x1dd9   : > { %v7541_v41 = vpop.f32.mrf.mxu0 }
0x1dda   : > { %v10160_v33 = vadd.f32 %v5274_v37, %v9340_v14  ;;  %v5285_v10 = vadd.f32 %v7541_v41, %v6595_v24  ;;  %v5322_v63 = vsel %vm640_vm0, %v10163_v20, 0.0 }
0x1ddb   : > { %v5276_v9 = vpop.f32.mrf.mxu0 }
0x1ddc   : > { %v5277_v6 = vadd.f32 %v6595_v24, %v5276_v9  ;;  %v5316_v21 = vsel %vm640_vm0, %v10160_v33, 0.0  ;;  %v10171_v56 = vadd.f32 %v5285_v10, %v9351_v5 }
0x1ddd   : > { %v7544_v46 = vpop.f32.mrf.mxu0  ;;  %5317 = vadd.xlane.f32.xlu0 %v5316_v21 }
0x1dde   : > { %v10168_v51 = vadd.f32 %v5277_v6, %v9348_v17  ;;  %v5298_v45 = vadd.f32 %v7544_v46, %v6595_v24  ;;  %v5325_v5 = vsel %vm640_vm0, %v10171_v56, 0.0 }
0x1ddf   : > { %v5289_v50 = vpop.f32.mrf.mxu0 }
0x1de0   : > { %v5290_v14 = vadd.f32 %v6595_v24, %v5289_v50  ;;  %v5319_v18 = vsel %vm640_vm0, %v10168_v51, 0.0  ;;  %v10186_v54 = vadd.f32 %v5298_v45, %v10650_v4 }
0x1de1   : > { %v7545_v58 = vpop.f32.mrf.mxu0  ;;  %5320 = vadd.xlane.f32.xlu1 %v5319_v18  ;;  %5323 = vadd.xlane.f32.xlu0 %v5322_v63  ;;  %v7769_v18 = vld [vmem:[%s10569_s10 + $0x18] sm:$0xff]   ;;  %v7770_v63 = vld [vmem:[%s10569_s10 + $0x10] sm:$0xff]  }
0x1de2   : > { %v10178_v26 = vadd.f32 %v5290_v14, %v10648_v16  ;;  %v5301_v17 = vadd.f32 %v7545_v58, %v6595_v24  ;;  %v5334_v61 = vsel %vm640_vm0, %v10186_v54, 0.0  ;;  %7546 = vmatprep.subr.bf16.mxu1 %v7769_v18 }
0x1de3   : > { %v5292_v55 = vpop.f32.mrf.mxu0  ;;  %7547 = vmatpush3.bf16.msra.mxu1 %v7769_v18 }
0x1de4   : > { %v5293_v36 = vadd.f32 %v6595_v24, %v5292_v55  ;;  %v10189_v0 = vadd.f32 %v5301_v17, %v10651_v52  ;;  %v5328_v12 = vsel %vm640_vm0, %v10178_v26, 0.0  ;;  %7548 = vmatprep.subr.bf16.mxu1 %v7770_v63 }
0x1de5   : > { %5326 = vadd.xlane.f32.xlu0 %v5325_v5 }
0x1de6   : > { %v10183_v60 = vadd.f32 %v5293_v36, %v10649_v7  ;;  %v5337_v22 = vsel %vm640_vm0, %v10189_v0, 0.0 }
0x1de7   : > { %7549 = vmatpush3.bf16.msra.mxu1 %v7770_v63 }
0x1de8   : > { %v5331_v11 = vsel %vm640_vm0, %v10183_v60, 0.0 }
0x1de9   : > { %5332 = vadd.xlane.f32.xlu1 %v5331_v11  ;;  %5329 = vadd.xlane.f32.xlu0 %v5328_v12 }
0x1ded   : > { %5338 = vadd.xlane.f32.xlu1 %v5337_v22  ;;  %5335 = vadd.xlane.f32.xlu0 %v5334_v61 }
0x1e66   : > { %v5318_v53 = vpop.xlane.xlu0 %5317 }
0x1e67   : > { %v5340_v39 = vmul.f32 0.03125, %v5318_v53 }
0x1e69   : > { %v10200_v23 = vsub.f32 %v10160_v33, %v5340_v39 }
0x1e6a   : > { %v5321_v34 = vpop.xlane.xlu1 %5320  ;;  %v5324_v42 = vpop.xlane.xlu0 %5323 }
0x1e6b   : > { %v5341_v40 = vmul.f32 0.03125, %v5321_v34  ;;  %v5342_v27 = vmul.f32 0.03125, %v5324_v42  ;;  %v5356_v15 = vmul.f32 %v10200_v23, %v10200_v23 }
0x1e6d   : > { %v10205_v19 = vsub.f32 %v10168_v51, %v5341_v40  ;;  %v10208_v30 = vsub.f32 %v10163_v20, %v5342_v27  ;;  %v5364_v43 = vsel %vm640_vm0, %v5356_v15, 0.0 }
0x1e6e   : > { %5365 = vadd.xlane.f32.xlu0 %v5364_v43  ;;  %v5327_v28 = vpop.xlane.xlu0 %5326 }
0x1e6f   : > { %v5343_v47 = vmul.f32 0.03125, %v5327_v28  ;;  %v5357_v59 = vmul.f32 %v10205_v19, %v10205_v19  ;;  %v5358_v48 = vmul.f32 %v10208_v30, %v10208_v30 }
0x1e71   : > { %v10216_v25 = vsub.f32 %v10171_v56, %v5343_v47  ;;  %v5367_v31 = vsel %vm640_vm0, %v5357_v59, 0.0  ;;  %v5370_v38 = vsel %vm640_vm0, %v5358_v48, 0.0 }
0x1e72   : > { %5368 = vadd.xlane.f32.xlu1 %v5367_v31  ;;  %v5333_v32 = vpop.xlane.xlu1 %5332  ;;  %5371 = vadd.xlane.f32.xlu0 %v5370_v38  ;;  %v5330_v29 = vpop.xlane.xlu0 %5329  ;;  %v6604_v31 = vld [vmem:[%s10567_s8 + $0x1] ss:$0 sm:$0xff] }
0x1e73   : > { %v5345_v2 = vmul.f32 0.03125, %v5333_v32  ;;  %v5344_v62 = vmul.f32 0.03125, %v5330_v29  ;;  %v5359_v57 = vmul.f32 %v10216_v25, %v10216_v25 }
0x1e75   : > { %v10223_v13 = vsub.f32 %v10183_v60, %v5345_v2  ;;  %v10226_v44 = vsub.f32 %v10178_v26, %v5344_v62  ;;  %v5373_v8 = vsel %vm640_vm0, %v5359_v57, 0.0  ;;  %v6605_v57 = vld [vmem:[%s10568_s9 + $0x1] ss:$0 sm:$0xff] }
0x1e76   : > { %v5339_v1 = vpop.xlane.xlu1 %5338  ;;  %5374 = vadd.xlane.f32.xlu1 %v5373_v8  ;;  %v5336_v49 = vpop.xlane.xlu0 %5335 }
0x1e77   : > { %v5347_v24 = vmul.f32 0.03125, %v5339_v1  ;;  %v5346_v35 = vmul.f32 0.03125, %v5336_v49  ;;  %v5361_v3 = vmul.f32 %v10223_v13, %v10223_v13  ;;  %v5360_v37 = vmul.f32 %v10226_v44, %v10226_v44 }
0x1e79   : > { %v10234_v41 = vsub.f32 %v10189_v0, %v5347_v24  ;;  %v10237_v9 = vsub.f32 %v10186_v54, %v5346_v35  ;;  %v5379_v10 = vsel %vm640_vm0, %v5361_v3, 0.0  ;;  %v5376_v6 = vsel %vm640_vm0, %v5360_v37, 0.0 }
0x1e7a   : > { %5380 = vadd.xlane.f32.xlu1 %v5379_v10  ;;  %5377 = vadd.xlane.f32.xlu0 %v5376_v6 }
0x1e7b   : > { %v5363_v21 = vmul.f32 %v10234_v41, %v10234_v41  ;;  %v5362_v46 = vmul.f32 %v10237_v9, %v10237_v9 }
0x1e7d   : > { %v5385_v50 = vsel %vm640_vm0, %v5363_v21, 0.0  ;;  %v5382_v14 = vsel %vm640_vm0, %v5362_v46, 0.0 }
0x1e7e   : > { %5386 = vadd.xlane.f32.xlu1 %v5385_v50  ;;  %5383 = vadd.xlane.f32.xlu0 %v5382_v14 }
0x1ef7   : > { %v5366_v58 = vpop.xlane.xlu0 %5365 }
0x1ef8   : > { %v5388_v45 = vmul.f32 0.03125, %v5366_v58 }
0x1efa   : > { %v5396_v55 = vadd.f32 1e-05, %v5388_v45 }
0x1efb   : > { %v5369_v16 = vpop.xlane.xlu1 %5368  ;;  %v5372_v17 = vpop.xlane.xlu0 %5371 }
0x1efc   : > { %8099 = vrsqrt.f32 %v5396_v55  ;;  %v5389_v36 = vmul.f32 0.03125, %v5369_v16  ;;  %v5390_v5 = vmul.f32 0.03125, %v5372_v17 }
0x1efe   : > { %v5397_v7 = vadd.f32 1e-05, %v5389_v36  ;;  %v5398_v4 = vadd.f32 1e-05, %v5390_v5 }
0x1eff   : > { %v5375_v52 = vpop.xlane.xlu1 %5374 }
0x1f00   : > { %8101 = vrsqrt.f32 %v5397_v7  ;;  %v5391_v11 = vmul.f32 0.03125, %v5375_v52  ;;  %v7774_v52 = vld [vmem:[%s10571_s12 + $0x60] sm:$0xff]  }
0x1f01   : > { %8103 = vrsqrt.f32 %v5398_v4  ;;  %v7771_v4 = vld [vmem:[%s10571_s12 + $0x78] sm:$0xff]  }
0x1f02   : > { %v5399_v12 = vadd.f32 1e-05, %v5391_v11  ;;  %7558 = vmatprep.subr.bf16.mxu0 %v7771_v4  ;;  %v7775_v11 = vld [vmem:[%s10571_s12 + $0x58] sm:$0xff]  }
0x1f03   : > { %v5381_v22 = vpop.xlane.xlu1 %5380  ;;  %v5378_v61 = vpop.xlane.xlu0 %5377  ;;  %7559 = vmatpush3.bf16.msra.mxu0 %v7771_v4 }
0x1f04   : > { %8105 = vrsqrt.f32 %v5399_v12  ;;  %v5393_v53 = vmul.f32 0.03125, %v5381_v22  ;;  %v5392_v39 = vmul.f32 0.03125, %v5378_v61  ;;  %v7776_v12 = vld [vmem:[%s10571_s12 + $0x50] sm:$0xff]   ;;  %v7777_v22 = vld [vmem:[%s10571_s12 + $0x48] sm:$0xff]   ;;  %v7778_v61 = vld [vmem:[%s10571_s12 + $0x40] sm:$0xff]  }
0x1f06   : > { %v5401_v34 = vadd.f32 1e-05, %v5393_v53  ;;  %v5400_v42 = vadd.f32 1e-05, %v5392_v39  ;;  %v6611_v53 = vld [vmem:[%s10570_s11 + $0x1] ss:$0 sm:$0xff] }
0x1f07   : > { %v5387_v40 = vpop.xlane.xlu1 %5386  ;;  %v5384_v27 = vpop.xlane.xlu0 %5383 }
0x1f08   : > { %8107 = vrsqrt.f32 %v5401_v34  ;;  %v5395_v15 = vmul.f32 0.03125, %v5387_v40  ;;  %v5394_v43 = vmul.f32 0.03125, %v5384_v27 }
0x1f09   : > { %v8100_v28 = vpop.eup %8099  ;;  %8109 = vrsqrt.f32 %v5400_v42 }
0x1f0a   : > { %v5403_v47 = vadd.f32 1e-05, %v5395_v15  ;;  %v5402_v59 = vadd.f32 1e-05, %v5394_v43  ;;  %v5412_v48 = vmul.f32 %v8100_v28, %v10200_v23 }
0x1f0c   : > { %8111 = vrsqrt.f32 %v5403_v47  ;;  %v5426_v2 = vmul.f32 %v6604_v31, %v5412_v48 }
0x1f0d   : > { %v8102_v38 = vpop.eup %8101  ;;  %8113 = vrsqrt.f32 %v5402_v59 }
0x1f0e   : > { %v8104_v32 = vpop.eup %8103  ;;  %v5413_v29 = vmul.f32 %v8102_v38, %v10205_v19  ;;  %v5440_v24 = vadd.f32 %v6605_v57, %v5426_v2 }
0x1f0f   : > { %v5414_v62 = vmul.f32 %v8104_v32, %v10208_v30 }
0x1f10   : > { %v5427_v8 = vmul.f32 %v6604_v31, %v5413_v29 }
0x1f11   : > { %v8106_v1 = vpop.eup %8105  ;;  %v5428_v23 = vmul.f32 %v6604_v31, %v5414_v62 }
0x1f12   : > { %v5415_v49 = vmul.f32 %v8106_v1, %v10216_v25  ;;  %v5441_v35 = vadd.f32 %v6605_v57, %v5427_v8 }
0x1f13   : > { %v5442_v19 = vadd.f32 %v6605_v57, %v5428_v23 }
0x1f14   : > { %v5429_v3 = vmul.f32 %v6604_v31, %v5415_v49  ;;  %v5448_v37 = vpack.c.bf16 %v5441_v35, %v5440_v24 }
0x1f15   : > { %v8108_v10 = vpop.eup %8107 }
0x1f16   : > { %v8110_v6 = vpop.eup %8109  ;;  %7550 = vmatprep.mubr.msk.bf16.mxu1 %vm640_vm0, %v5448_v37  ;;  %v5443_v21 = vadd.f32 %v6605_v57, %v5429_v3  ;;  %v5417_v30 = vmul.f32 %v8108_v10, %v10223_v13 }
0x1f17   : > { %v5416_v46 = vmul.f32 %v8110_v6, %v10226_v44 }
0x1f18   : > { %v5449_v50 = vpack.c.bf16 %v5443_v21, %v5442_v19  ;;  %v5431_v14 = vmul.f32 %v6604_v31, %v5417_v30 }
0x1f19   : > { %v8112_v18 = vpop.eup %8111  ;;  %v5430_v63 = vmul.f32 %v6604_v31, %v5416_v46 }
0x1f1a   : > { %v8114_v58 = vpop.eup %8113  ;;  %7551 = vmatmul.mubr.msk.bf16.vlgmr.msra.gmra.mxu1 %vm640_vm0, %v5449_v50  ;;  %v5445_v25 = vadd.f32 %v6605_v57, %v5431_v14  ;;  %v5419_v45 = vmul.f32 %v8112_v18, %v10234_v41  ;;  %v7772_v41 = vld [vmem:[%s10571_s12 + $0x70] sm:$0xff]  }
0x1f1b   : > { %v5444_v55 = vadd.f32 %v6605_v57, %v5430_v63  ;;  %v5418_v16 = vmul.f32 %v8114_v58, %v10237_v9  ;;  %7560 = vmatprep.subr.bf16.mxu0 %v7772_v41  ;;  %v7773_v9 = vld [vmem:[%s10571_s12 + $0x68] sm:$0xff]  }
0x1f1c   : > { %v5433_v17 = vmul.f32 %v6604_v31, %v5419_v45  ;;  %7561 = vmatpush3.bf16.msra.mxu0 %v7772_v41 }
0x1f1d   : > { %v5450_v36 = vpack.c.bf16 %v5445_v25, %v5444_v55  ;;  %v5432_v5 = vmul.f32 %v6604_v31, %v5418_v16  ;;  %7562 = vmatprep.subr.bf16.mxu0 %v7773_v9 }
0x1f1e   : > { %v5447_v7 = vadd.f32 %v6605_v57, %v5433_v17 }
0x1f1f   : > { %7554 = vmatprep.mubr.msk.bf16.mxu1 %vm640_vm0, %v5450_v36  ;;  %v5446_v13 = vadd.f32 %v6605_v57, %v5432_v5 }
0x1f20   : > { %7563 = vmatpush3.bf16.msra.mxu0 %v7773_v9 }
0x1f21   : > { %v5451_v44 = vpack.c.bf16 %v5447_v7, %v5446_v13  ;;  %7564 = vmatprep.subr.bf16.mxu0 %v7774_v52 }
0x1f23   : > { %7555 = vmatmul.mubr.msk.bf16.gmra.mxu1 %vm640_vm0, %v5451_v44 }
0x1f24   : > { %7565 = vmatpush3.bf16.msra.mxu0 %v7774_v52 }
0x1f25   : > { %7566 = vmatprep.subr.bf16.mxu0 %v7775_v11 }
0x1f28   : > { %7567 = vmatpush3.bf16.msra.mxu0 %v7775_v11 }
0x1f29   : > { %7568 = vmatprep.subr.bf16.mxu0 %v7776_v12 }
0x1f2c   : > { %7569 = vmatpush3.bf16.msra.mxu0 %v7776_v12 }
0x1f2d   : > { %7570 = vmatprep.subr.bf16.mxu0 %v7777_v22 }
0x1f30   : > { %7571 = vmatpush3.bf16.msra.mxu0 %v7777_v22 }
0x1f31   : > { %7572 = vmatprep.subr.bf16.mxu0 %v7778_v61 }
0x1f34   : > { %7573 = vmatpush3.bf16.msra.mxu0 %v7778_v61 }
0x1fda   : > { %v7552_v39 = vpop.f32.mrf.mxu1 }
0x1fdb   : > { %v10298_v34 = vadd.f32 %v7552_v39, %v6611_v53 }
0x1fdc   : > { %v5523_v42 = vpop.f32.mrf.mxu1 }
0x1fdd   : > { %v5556_v40 = vmul.f32 %v10298_v34, %v10298_v34  ;;  %v10302_v27 = vadd.f32 %v6611_v53, %v5523_v42 }
0x1fde   : > { %v7553_v15 = vpop.f32.mrf.mxu1 }
0x1fdf   : > { %v5564_v43 = vmul.f32 %v5556_v40, %v10298_v34  ;;  %v5554_v28 = vmul.f32 %v10302_v27, %v10302_v27  ;;  %v10307_v47 = vadd.f32 %v7553_v15, %v6611_v53 }
0x1fe0   : > { %v5526_v59 = vpop.f32.mrf.mxu1 }
0x1fe1   : > { %v5572_v48 = vmul.f32 0.044715, %v5564_v43  ;;  %v5562_v31 = vmul.f32 %v5554_v28, %v10302_v27  ;;  %v5557_v38 = vmul.f32 %v10307_v47, %v10307_v47  ;;  %v10312_v32 = vadd.f32 %v6611_v53, %v5526_v59 }
0x1fe3   : > { %v5580_v29 = vadd.f32 %v5572_v48, %v10298_v34  ;;  %v5570_v2 = vmul.f32 0.044715, %v5562_v31  ;;  %v5565_v62 = vmul.f32 %v5557_v38, %v10307_v47  ;;  %v5555_v57 = vmul.f32 %v10312_v32, %v10312_v32  ;;  %v7556_v8 = vpop.f32.mrf.mxu1 }
0x1fe4   : > { %v10318_v1 = vadd.f32 %v7556_v8, %v6611_v53 }
0x1fe5   : > { %v5588_v23 = vmul.f32 0.7978846, %v5580_v29  ;;  %v5578_v49 = vadd.f32 %v5570_v2, %v10302_v27  ;;  %v5573_v24 = vmul.f32 0.044715, %v5565_v62  ;;  %v5563_v35 = vmul.f32 %v5555_v57, %v10312_v32  ;;  %v5539_v3 = vpop.f32.mrf.mxu1 }
0x1fe6   : > { %v5560_v37 = vmul.f32 %v10318_v1, %v10318_v1  ;;  %v10324_v10 = vadd.f32 %v6611_v53, %v5539_v3 }
0x1fe7   : > { %v5586_v6 = vmul.f32 0.7978846, %v5578_v49  ;;  %v5581_v19 = vadd.f32 %v5573_v24, %v10307_v47  ;;  %v5571_v21 = vmul.f32 0.044715, %v5563_v35  ;;  %v7557_v30 = vpop.f32.mrf.mxu1  ;;  %8115 = vtanh.f32 %v5588_v23 }
0x1fe8   : > { %v5568_v46 = vmul.f32 %v5560_v37, %v10318_v1  ;;  %v5558_v50 = vmul.f32 %v10324_v10, %v10324_v10  ;;  %v5551_v14 = vadd.f32 %v7557_v30, %v6611_v53 }
0x1fe9   : > { %8117 = vtanh.f32 %v5586_v6  ;;  %v5589_v18 = vmul.f32 0.7978846, %v5581_v19  ;;  %v5579_v63 = vadd.f32 %v5571_v21, %v10312_v32  ;;  %v5542_v58 = vpop.f32.mrf.mxu1 }
0x1fea   : > { %v5576_v25 = vmul.f32 0.044715, %v5568_v46  ;;  %v5566_v45 = vmul.f32 %v5558_v50, %v10324_v10  ;;  %v5561_v55 = vmul.f32 %v5551_v14, %v5551_v14  ;;  %v5543_v16 = vadd.f32 %v6611_v53, %v5542_v58 }
0x1feb   : > { %8119 = vtanh.f32 %v5589_v18  ;;  %v5587_v17 = vmul.f32 0.7978846, %v5579_v63 }
0x1fec   : > { %v5584_v36 = vadd.f32 %v5576_v25, %v10318_v1  ;;  %v5574_v5 = vmul.f32 0.044715, %v5566_v45  ;;  %v5569_v7 = vmul.f32 %v5561_v55, %v5551_v14  ;;  %v5559_v13 = vmul.f32 %v5543_v16, %v5543_v16 }
0x1fed   : > { %8121 = vtanh.f32 %v5587_v17  ;;  %v6635_v17 = vld [vmem:[%s10572_s13 + $0x1] ss:$0 sm:$0xff] }
0x1fee   : > { %v5592_v44 = vmul.f32 0.7978846, %v5584_v36  ;;  %v5582_v4 = vadd.f32 %v5574_v5, %v10324_v10  ;;  %v5577_v41 = vmul.f32 0.044715, %v5569_v7  ;;  %v5567_v9 = vmul.f32 %v5559_v13, %v5543_v16 }
0x1ff0   : > { %v5590_v52 = vmul.f32 0.7978846, %v5582_v4  ;;  %v5585_v11 = vadd.f32 %v5577_v41, %v5551_v14  ;;  %v5575_v12 = vmul.f32 0.044715, %v5567_v9  ;;  %8123 = vtanh.f32 %v5592_v44 }
0x1ff2   : > { %8125 = vtanh.f32 %v5590_v52  ;;  %v5593_v22 = vmul.f32 0.7978846, %v5585_v11  ;;  %v5583_v61 = vadd.f32 %v5575_v12, %v5543_v16 }
0x1ff4   : > { %8127 = vtanh.f32 %v5593_v22  ;;  %v5591_v53 = vmul.f32 0.7978846, %v5583_v61  ;;  %v8116_v39 = vpop.eup %8115 }
0x1ff5   : > { %v5604_v43 = vadd.f32 1.0, %v8116_v39 }
0x1ff6   : > { %v8118_v42 = vpop.eup %8117  ;;  %8129 = vtanh.f32 %v5591_v53 }
0x1ff7   : > { %v5602_v40 = vadd.f32 1.0, %v8118_v42  ;;  %v5612_v29 = vmul.f32 0.5, %v5604_v43 }
0x1ff8   : > { %v8120_v15 = vpop.eup %8119 }
0x1ff9   : > { %v5605_v28 = vadd.f32 1.0, %v8120_v15  ;;  %v5610_v38 = vmul.f32 0.5, %v5602_v40  ;;  %v5620_v24 = vmul.f32 %v5612_v29, %v10298_v34 }
0x1ffa   : > { %v8122_v59 = vpop.eup %8121 }
0x1ffb   : > { %v5613_v48 = vmul.f32 0.5, %v5605_v28  ;;  %v5603_v31 = vadd.f32 1.0, %v8122_v59  ;;  %v5618_v23 = vmul.f32 %v5610_v38, %v10302_v27 }
0x1ffd   : > { %v5611_v2 = vmul.f32 0.5, %v5603_v31  ;;  %v8124_v62 = vpop.eup %8123  ;;  %v5621_v57 = vmul.f32 %v5613_v48, %v10307_v47 }
0x1ffe   : > { %v5608_v6 = vadd.f32 1.0, %v8124_v62 }
0x1fff   : > { %v8126_v8 = vpop.eup %8125  ;;  %v5619_v49 = vmul.f32 %v5611_v2, %v10312_v32  ;;  %v5627_v19 = vpack.c.bf16 %v5621_v57, %v5620_v24 }
0x2000   : > { %v5606_v35 = vadd.f32 1.0, %v8126_v8  ;;  %v5616_v47 = vmul.f32 0.5, %v5608_v6 }
0x2001   : > { %v8128_v3 = vpop.eup %8127  ;;  %v5626_v37 = vpack.c.bf16 %v5619_v49, %v5618_v23 }
0x2002   : > { %v5609_v21 = vadd.f32 1.0, %v8128_v3  ;;  %v5614_v50 = vmul.f32 0.5, %v5606_v35  ;;  %v5624_v34 = vmul.f32 %v5616_v47, %v10318_v1 }
0x2003   : > { %v8130_v30 = vpop.eup %8129  ;;  %7574 = vmatprep.mubr.bf16.mxu0 %v5626_v37 }
0x2004   : > { %7575 = vmatmul.mubr.bf16.vlgmr.msra.gmra.mxu0 %v5627_v19  ;;  %v5607_v46 = vadd.f32 1.0, %v8130_v30  ;;  %v5617_v18 = vmul.f32 0.5, %v5609_v21  ;;  %v5622_v27 = vmul.f32 %v5614_v50, %v10324_v10 }
0x2006   : > { %v5615_v63 = vmul.f32 0.5, %v5607_v46  ;;  %v5625_v58 = vmul.f32 %v5617_v18, %v5551_v14 }
0x2008   : > { %v5623_v32 = vmul.f32 %v5615_v63, %v5543_v16  ;;  %v5629_v45 = vpack.c.bf16 %v5625_v58, %v5624_v34 }
0x200a   : > { %v5628_v25 = vpack.c.bf16 %v5623_v32, %v5622_v27 }
0x200c   : > { %7578 = vmatprep.mubr.bf16.mxu0 %v5628_v25 }
0x200d   : > { %7579 = vmatmul.mubr.bf16.gmra.mxu0 %v5629_v45 }
0x20c4   : > { %v7576_v55 = vpop.f32.mrf.mxu0 }
0x20c5   : > { %v5746_v5 = vadd.f32 %v7576_v55, %v6635_v17 }
0x20c6   : > { %v5737_v36 = vpop.f32.mrf.mxu0 }
0x20c7   : > { %v5738_v7 = vadd.f32 %v6635_v17, %v5737_v36  ;;  %v5770_v10 = vadd.f32 %v5746_v5, %v10163_v20 }
0x20c8   : > { %v7577_v13 = vpop.f32.mrf.mxu0 }
0x20c9   : > { %v5768_v14 = vadd.f32 %v5738_v7, %v10160_v33  ;;  %v5749_v16 = vadd.f32 %v7577_v13, %v6635_v17  ;;  %v5784_v22 = vsel %vm640_vm0, %v5770_v10, 0.0 }
0x20ca   : > { %v5740_v44 = vpop.f32.mrf.mxu0 }
0x20cb   : > { %v5741_v1 = vadd.f32 %v6635_v17, %v5740_v44  ;;  %v5778_v4 = vsel %vm640_vm0, %v5768_v14, 0.0  ;;  %v5771_v52 = vadd.f32 %v5749_v16, %v10171_v56  ;;  %v5913_v16 = vld [vmem:[%s10575_s16 + $0x18] sm:$0xff] }
0x20cc   : > { %5779 = vadd.xlane.f32.xlu0 %v5778_v4  ;;  %7582 = vmatprep.subr.mxu1 %v5913_v16  ;;  %v5911_v4 = vld [vmem:[%s10575_s16 + $0x8] sm:$0xff] }
0x20cd   : > { %v5769_v41 = vadd.f32 %v5741_v1, %v10168_v51  ;;  %v7580_v9 = vpop.f32.mrf.mxu0  ;;  %v5787_v42 = vsel %vm640_vm0, %v5771_v52, 0.0  ;;  %7583 = vmatpush3.msra.mxu1 %v5913_v16  ;;  %v5912_v1 = vld [vmem:[%s10575_s16 + $0x10] sm:$0xff] }
0x20ce   : > { %v5762_v61 = vadd.f32 %v7580_v9, %v6635_v17  ;;  %7584 = vmatprep.subr.mxu1 %v5912_v1 }
0x20cf   : > { %v5753_v11 = vpop.f32.mrf.mxu0  ;;  %v5781_v12 = vsel %vm640_vm0, %v5769_v41, 0.0  ;;  %7585 = vmatpush3.msra.mxu1 %v5912_v1 }
0x20d0   : > { %v5754_v33 = vadd.f32 %v6635_v17, %v5753_v11  ;;  %5782 = vadd.xlane.f32.xlu1 %v5781_v12  ;;  %5785 = vadd.xlane.f32.xlu0 %v5784_v22  ;;  %v5774_v51 = vadd.f32 %v5762_v61, %v10186_v54 }
0x20d1   : > { %v7581_v20 = vpop.f32.mrf.mxu0  ;;  %7586 = vmatprep.subr.mxu1 %v5911_v4 }
0x20d2   : > { %v5772_v53 = vadd.f32 %v5754_v33, %v10178_v26  ;;  %v5765_v40 = vadd.f32 %v7581_v20, %v6635_v17  ;;  %v5796_v48 = vsel %vm640_vm0, %v5774_v51, 0.0  ;;  %7587 = vmatpush3.msra.mxu1 %v5911_v4 }
0x20d3   : > { %v5756_v39 = vpop.f32.mrf.mxu0 }
0x20d4   : > { %v5757_v15 = vadd.f32 %v6635_v17, %v5756_v39  ;;  %5788 = vadd.xlane.f32.xlu1 %v5787_v42  ;;  %v5790_v56 = vsel %vm640_vm0, %v5772_v53, 0.0  ;;  %v5775_v28 = vadd.f32 %v5765_v40, %v10189_v0 }
0x20d5   : > { %5791 = vadd.xlane.f32.xlu0 %v5790_v56 }
0x20d6   : > { %v5773_v43 = vadd.f32 %v5757_v15, %v10183_v60  ;;  %v5799_v26 = vsel %vm640_vm0, %v5775_v28, 0.0 }
0x20d8   : > { %v5793_v59 = vsel %vm640_vm0, %v5773_v43, 0.0 }
0x20d9   : > { %5794 = vadd.xlane.f32.xlu1 %v5793_v59  ;;  %5797 = vadd.xlane.f32.xlu0 %v5796_v48 }
0x20dd   : > { %5800 = vadd.xlane.f32.xlu1 %v5799_v26 }
0x2155   : > { %v5780_v54 = vpop.xlane.xlu0 %5779 }
0x2156   : > { %v5802_v31 = vmul.f32 0.03125, %v5780_v54 }
0x2158   : > { %v10359_v38 = vsub.f32 %v5768_v14, %v5802_v31 }
0x2159   : > { %v5783_v29 = vpop.xlane.xlu1 %5782  ;;  %v5786_v2 = vpop.xlane.xlu0 %5785 }
0x215a   : > { %v5803_v62 = vmul.f32 0.03125, %v5783_v29  ;;  %v5804_v57 = vmul.f32 0.03125, %v5786_v2  ;;  %v5818_v60 = vmul.f32 %v10359_v38, %v10359_v38  ;;  %v6644_v2 = vld [vmem:[%s10573_s14] ss:$0 sm:$0xff] }
0x215c   : > { %v10363_v0 = vsub.f32 %v5769_v41, %v5803_v62  ;;  %v10365_v8 = vsub.f32 %v5770_v10, %v5804_v57  ;;  %v5826_v23 = vsel %vm640_vm0, %v5818_v60, 0.0  ;;  %v5910_v41 = vld [vmem:[%s10575_s16] sm:$0xff] }
0x215d   : > { %v5789_v49 = vpop.xlane.xlu1 %5788  ;;  %5827 = vadd.xlane.f32.xlu0 %v5826_v23  ;;  %7588 = vmatprep.subr.mxu1 %v5910_v41  ;;  %v6645_v23 = vld [vmem:[%s10574_s15] ss:$0 sm:$0xff] }
0x215e   : > { %v5805_v24 = vmul.f32 0.03125, %v5789_v49  ;;  %v5792_v35 = vpop.xlane.xlu0 %5791  ;;  %v5819_v3 = vmul.f32 %v10363_v0, %v10363_v0  ;;  %v5820_v37 = vmul.f32 %v10365_v8, %v10365_v8  ;;  %7589 = vmatpush3.msra.mxu1 %v5910_v41 }
0x215f   : > { %v5806_v6 = vmul.f32 0.03125, %v5792_v35 }
0x2160   : > { %v10372_v19 = vsub.f32 %v5771_v52, %v5805_v24  ;;  %v5829_v21 = vsel %vm640_vm0, %v5819_v3, 0.0  ;;  %v5832_v30 = vsel %vm640_vm0, %v5820_v37, 0.0 }
0x2161   : > { %v10376_v46 = vsub.f32 %v5772_v53, %v5806_v6  ;;  %5830 = vadd.xlane.f32.xlu1 %v5829_v21  ;;  %5833 = vadd.xlane.f32.xlu0 %v5832_v30 }
0x2162   : > { %v5795_v50 = vpop.xlane.xlu1 %5794  ;;  %v5798_v18 = vpop.xlane.xlu0 %5797  ;;  %v5821_v47 = vmul.f32 %v10372_v19, %v10372_v19 }
0x2163   : > { %v5807_v63 = vmul.f32 0.03125, %v5795_v50  ;;  %v5808_v58 = vmul.f32 0.03125, %v5798_v18  ;;  %v5822_v27 = vmul.f32 %v10376_v46, %v10376_v46 }
0x2164   : > { %v5835_v32 = vsel %vm640_vm0, %v5821_v47, 0.0 }
0x2165   : > { %v10383_v34 = vsub.f32 %v5773_v43, %v5807_v63  ;;  %v10385_v25 = vsub.f32 %v5774_v51, %v5808_v58  ;;  %5836 = vadd.xlane.f32.xlu1 %v5835_v32  ;;  %v5838_v45 = vsel %vm640_vm0, %v5822_v27, 0.0 }
0x2166   : > { %v5801_v55 = vpop.xlane.xlu1 %5800  ;;  %5839 = vadd.xlane.f32.xlu0 %v5838_v45 }
0x2167   : > { %v5809_v17 = vmul.f32 0.03125, %v5801_v55  ;;  %v5823_v36 = vmul.f32 %v10383_v34, %v10383_v34  ;;  %v5824_v5 = vmul.f32 %v10385_v25, %v10385_v25 }
0x2169   : > { %v10392_v7 = vsub.f32 %v5775_v28, %v5809_v17  ;;  %v5841_v13 = vsel %vm640_vm0, %v5823_v36, 0.0  ;;  %v5844_v14 = vsel %vm640_vm0, %v5824_v5, 0.0 }
0x216a   : > { %5842 = vadd.xlane.f32.xlu1 %v5841_v13  ;;  %5845 = vadd.xlane.f32.xlu0 %v5844_v14 }
0x216b   : > { %v5825_v44 = vmul.f32 %v10392_v7, %v10392_v7 }
0x216d   : > { %v5847_v10 = vsel %vm640_vm0, %v5825_v44, 0.0 }
0x216e   : > { %5848 = vadd.xlane.f32.xlu1 %v5847_v10 }
0x21e6   : > { %v5828_v9 = vpop.xlane.xlu0 %5827 }
0x21e7   : > { %v5850_v52 = vmul.f32 0.03125, %v5828_v9 }
0x21e9   : > { %v5858_v11 = vadd.f32 1e-05, %v5850_v52 }
0x21ea   : > { %v5831_v12 = vpop.xlane.xlu1 %5830  ;;  %v5834_v22 = vpop.xlane.xlu0 %5833 }
0x21eb   : > { %8131 = vrsqrt.f32 %v5858_v11  ;;  %v5851_v61 = vmul.f32 0.03125, %v5831_v12  ;;  %v5852_v33 = vmul.f32 0.03125, %v5834_v22 }
0x21ed   : > { %v5859_v20 = vadd.f32 1e-05, %v5851_v61  ;;  %v5860_v53 = vadd.f32 1e-05, %v5852_v33 }
0x21ee   : > { %v5837_v39 = vpop.xlane.xlu1 %5836 }
0x21ef   : > { %8133 = vrsqrt.f32 %v5859_v20  ;;  %v5853_v42 = vmul.f32 0.03125, %v5837_v39  ;;  %v5840_v51 = vpop.xlane.xlu0 %5839 }
0x21f0   : > { %8135 = vrsqrt.f32 %v5860_v53  ;;  %v5854_v40 = vmul.f32 0.03125, %v5840_v51 }
0x21f1   : > { %v5861_v15 = vadd.f32 1e-05, %v5853_v42 }
0x21f2   : > { %v5862_v56 = vadd.f32 1e-05, %v5854_v40 }
0x21f3   : > { %8137 = vrsqrt.f32 %v5861_v15  ;;  %v5843_v43 = vpop.xlane.xlu1 %5842  ;;  %v5846_v28 = vpop.xlane.xlu0 %5845 }
0x21f4   : > { %8139 = vrsqrt.f32 %v5862_v56  ;;  %v5855_v59 = vmul.f32 0.03125, %v5843_v43  ;;  %v5856_v48 = vmul.f32 0.03125, %v5846_v28 }
0x21f6   : > { %v5863_v26 = vadd.f32 1e-05, %v5855_v59  ;;  %v5864_v54 = vadd.f32 1e-05, %v5856_v48 }
0x21f7   : > { %v5849_v31 = vpop.xlane.xlu1 %5848 }
0x21f8   : > { %v8132_v29 = vpop.eup %8131  ;;  %8141 = vrsqrt.f32 %v5863_v26  ;;  %v5857_v62 = vmul.f32 0.03125, %v5849_v31  ;;  %v6052_v31 = vld [vmem:[%s589_s20 + $0x10] sm:$0xff] }
0x21f9   : > { %8143 = vrsqrt.f32 %v5864_v54  ;;  %v5874_v57 = vmul.f32 %v8132_v29, %v10359_v38  ;;  %v6051_v54 = vld [vmem:[%s589_s20 + $0x8] sm:$0xff]  ;;  %v6050_v29 = vld [vmem:[%s589_s20] sm:$0xff] }
0x21fa   : > { %v5865_v60 = vadd.f32 1e-05, %v5857_v62  ;;  %v6054_v62 = vld [vmem:[%s589_s20 + $0x20] sm:$0xff] }
0x21fb   : > { %v5888_v49 = vmul.f32 %v6644_v2, %v5874_v57  ;;  %v6055_v57 = vld [vmem:[%s589_s20 + $0x28] sm:$0xff] }
0x21fc   : > { %v8134_v24 = vpop.eup %8133  ;;  %8145 = vrsqrt.f32 %v5865_v60  ;;  %v6056_v60 = vld [vmem:[%s589_s20 + $0x30] sm:$0xff] }
0x21fd   : > { %v8136_v35 = vpop.eup %8135  ;;  %v5875_v3 = vmul.f32 %v8134_v24, %v10363_v0  ;;  %v5902_v37 = vadd.f32 %v6645_v23, %v5888_v49 }
0x21fe   : > { %v5876_v6 = vmul.f32 %v8136_v35, %v10365_v8 }
0x21ff   : > { %v5889_v21 = vmul.f32 %v6644_v2, %v5875_v3  ;;  %7590 = vmatprep.mubr.msk.f32.mxu1 %vm640_vm0, %v5902_v37 }
0x2200   : > { %v8138_v30 = vpop.eup %8137  ;;  %v5890_v50 = vmul.f32 %v6644_v2, %v5876_v6 }
0x2201   : > { %v8140_v38 = vpop.eup %8139  ;;  %v5903_v18 = vadd.f32 %v6645_v23, %v5889_v21  ;;  %v5877_v47 = vmul.f32 %v8138_v30, %v10372_v19 }
0x2202   : > { %v5904_v63 = vadd.f32 %v6645_v23, %v5890_v50  ;;  %v5878_v58 = vmul.f32 %v8140_v38, %v10376_v46 }
0x2203   : > { %7591 = vmatmul.mubr.msk.f32.vlgmr.msra.gmra.mxu1 %vm640_vm0, %v5903_v18  ;;  %v5891_v27 = vmul.f32 %v6644_v2, %v5877_v47 }
0x2204   : > { %7593 = vmatprep.mubr.msk.f32.mxu1 %vm640_vm0, %v5904_v63  ;;  %v5892_v0 = vmul.f32 %v6644_v2, %v5878_v58 }
0x2205   : > { %v8142_v32 = vpop.eup %8141  ;;  %v5905_v8 = vadd.f32 %v6645_v23, %v5891_v27 }
0x2206   : > { %v8144_v45 = vpop.eup %8143  ;;  %v5906_v55 = vadd.f32 %v6645_v23, %v5892_v0  ;;  %v5879_v17 = vmul.f32 %v8142_v32, %v10383_v34  ;;  %v8202_v34 = vmov 0  }
0x2207   : > { %7594 = vmatmul.mubr.msk.f32.gmra.mxu1 %vm640_vm0, %v5905_v8  ;;  %v5880_v36 = vmul.f32 %v8144_v45, %v10385_v25  ;;  %7750 = vset.pattern.permute.xlu1 %v8202_v34  ;;  %v6646_v25 = vld [vmem:[%s10576_s17] ss:$0 sm:$0xff] }
0x2208   : > { %7596 = vmatprep.mubr.msk.f32.mxu1 %vm640_vm0, %v5906_v55  ;;  %v5893_v19 = vmul.f32 %v6644_v2, %v5879_v17  ;;  %7749 = vset.pattern.permute.xlu0 %v8202_v34 }
0x2209   : > { %v8146_v46 = vpop.eup %8145  ;;  %v5894_v5 = vmul.f32 %v6644_v2, %v5880_v36 }
0x220a   : > { %v5907_v13 = vadd.f32 %v6645_v23, %v5893_v19  ;;  %v5881_v14 = vmul.f32 %v8146_v46, %v10392_v7 }
0x220b   : > { %v5908_v44 = vadd.f32 %v6645_v23, %v5894_v5 }
0x220c   : > { %7597 = vmatmul.mubr.msk.f32.gmra.mxu1 %vm640_vm0, %v5907_v13  ;;  %v5895_v10 = vmul.f32 %v6644_v2, %v5881_v14  ;;  %v6053_v2 = vld [vmem:[%s589_s20 + $0x18] sm:$0xff] }
0x220d   : > { %7599 = vmatprep.mubr.msk.f32.mxu1 %vm640_vm0, %v5908_v44 }
0x220e   : > { %v5909_v16 = vadd.f32 %v6645_v23, %v5895_v10  ;;  %v6057_v23 = vld [vmem:[%s589_s20 + $0x38] sm:$0xff] }
0x2210   : > { %7600 = vmatmul.mubr.msk.f32.gmra.mxu1 %vm640_vm0, %v5909_v16 }
0x22c3   : > { %v7592_v1 = vpop.f32.mrf.mxu1 }
0x22c4   : > { %v10436_v4 = vadd.f32 %v7592_v1, %v6646_v25 }
0x22c5   : > { %v6011_v7 = vpop.f32.mrf.mxu1 }
0x22c6   : > { %v10438_v41 = vadd.f32 %v6646_v25, %v6011_v7  ;;  %v6110_v9 = vsel %vm6106_vm13, %v10436_v4, -inf }
0x22c7   : > { %6111 = vmax.xlane.f32.xlu1 %v6110_v9  ;;  %v7595_v52 = vpop.f32.mrf.mxu1 }
0x22c8   : > { %v10442_v11 = vadd.f32 %v7595_v52, %v6646_v25  ;;  %v6107_v12 = vsel %vm6106_vm13, %v10438_v41, -inf }
0x22c9   : > { %6108 = vmax.xlane.f32.xlu0 %v6107_v12  ;;  %v6021_v22 = vpop.f32.mrf.mxu1 }
0x22ca   : > { %v10446_v61 = vadd.f32 %v6646_v25, %v6021_v22  ;;  %v6116_v33 = vsel %vm6106_vm13, %v10442_v11, -inf  ;;  %v10653_v22 = vld [vmem:[#allocation6_spill] sm:$0xff] }
0x22cb   : > { %6117 = vmax.xlane.f32.xlu1 %v6116_v33 }
0x22cc   : > { %v7598_v20 = vpop.f32.mrf.mxu1  ;;  %v6113_v53 = vsel %vm6106_vm13, %v10446_v61, -inf }
0x22cd   : > { %v10452_v39 = vadd.f32 %v7598_v20, %v6646_v25  ;;  %6114 = vmax.xlane.f32.xlu0 %v6113_v53 }
0x22ce   : > { %v6031_v42 = vpop.f32.mrf.mxu1 }
0x22cf   : > { %v10454_v51 = vadd.f32 %v6646_v25, %v6031_v42  ;;  %v6122_v40 = vsel %vm6106_vm13, %v10452_v39, -inf  ;;  %v8203_v42 = vmov 0.0  }
0x22d0   : > { %6123 = vmax.xlane.f32.xlu1 %v6122_v40  ;;  %v7601_v15 = vpop.f32.mrf.mxu1 }
0x22d1   : > { %v10458_v56 = vadd.f32 %v7601_v15, %v6646_v25  ;;  %v6119_v43 = vsel %vm6106_vm13, %v10454_v51, -inf }
0x22d2   : > { %6120 = vmax.xlane.f32.xlu0 %v6119_v43  ;;  %v6041_v28 = vpop.f32.mrf.mxu1 }
0x22d3   : > { %v10462_v59 = vadd.f32 %v6646_v25, %v6041_v28  ;;  %v6128_v48 = vsel %vm6106_vm13, %v10458_v56, -inf }
0x22d4   : > { %6129 = vmax.xlane.f32.xlu1 %v6128_v48 }
0x22d5   : > { %v6125_v26 = vsel %vm6106_vm13, %v10462_v59, -inf }
0x22d6   : > { %6126 = vmax.xlane.f32.xlu0 %v6125_v26 }
0x22e5   : > { %6062 = vperm.xlu1 %7750, %v6051_v54  }
0x22e9   : > { %6065 = vperm.xlu1 %7750, %v6052_v31  }
0x22ec   : > { %6059 = vperm.xlu0 %7749, %v6050_v29  }
0x22ed   : > { %6068 = vperm.xlu1 %7750, %v6053_v2  }
0x22f1   : > { %6071 = vperm.xlu1 %7750, %v6054_v62  }
0x22f5   : > { %6074 = vperm.xlu1 %7750, %v6055_v57  }
0x22f9   : > { %6077 = vperm.xlu1 %7750, %v6056_v60  }
0x22fd   : > { %6080 = vperm.xlu1 %7750, %v6057_v23  }
0x2350   : > { %v10472_v49 = vpop.xlane.xlu1 %6111 }
0x2351   : > { %v6132_v24 = vsub.f32 %v10436_v4, %v10472_v49 }
0x2352   : > { %v10476_v35 = vpop.xlane.xlu0 %6108 }
0x2353   : > { %v6141_v3 = vmul.f32 1.442695, %v6132_v24  ;;  %v6131_v37 = vsub.f32 %v10438_v41, %v10476_v35 }
0x2354   : > { %v10480_v6 = vpop.xlane.xlu1 %6117 }
0x2355   : > { %8147 = vpow2.f32 %v6141_v3  ;;  %v6139_v21 = vmul.f32 1.442695, %v6131_v37  ;;  %v6134_v30 = vsub.f32 %v10442_v11, %v10480_v6 }
0x2356   : > { %v10484_v50 = vpop.xlane.xlu0 %6114 }
0x2357   : > { %8149 = vpow2.f32 %v6139_v21  ;;  %v6145_v38 = vmul.f32 1.442695, %v6134_v30  ;;  %v6133_v18 = vsub.f32 %v10446_v61, %v10484_v50 }
0x2359   : > { %8151 = vpow2.f32 %v6145_v38  ;;  %v6143_v47 = vmul.f32 1.442695, %v6133_v18  ;;  %v10488_v63 = vpop.xlane.xlu1 %6123 }
0x235a   : > { %v6136_v58 = vsub.f32 %v10452_v39, %v10488_v63 }
0x235b   : > { %8153 = vpow2.f32 %v6143_v47  ;;  %v10492_v27 = vpop.xlane.xlu0 %6120 }
0x235c   : > { %v6149_v0 = vmul.f32 1.442695, %v6136_v58  ;;  %v6135_v32 = vsub.f32 %v10454_v51, %v10492_v27 }
0x235d   : > { %v10496_v8 = vpop.xlane.xlu1 %6129 }
0x235e   : > { %8155 = vpow2.f32 %v6149_v0  ;;  %v6147_v45 = vmul.f32 1.442695, %v6135_v32  ;;  %v6138_v55 = vsub.f32 %v10458_v56, %v10496_v8 }
0x235f   : > { %v10500_v17 = vpop.xlane.xlu0 %6126 }
0x2360   : > { %8157 = vpow2.f32 %v6147_v45  ;;  %v6153_v36 = vmul.f32 1.442695, %v6138_v55  ;;  %v6137_v19 = vsub.f32 %v10462_v59, %v10500_v17 }
0x2361   : > { %v6063_v46 = vpop.permute.xlu1 %6062 }
0x2362   : > { %v8148_v5 = vpop.eup %8147  ;;  %8159 = vpow2.f32 %v6153_v36  ;;  %v6151_v13 = vmul.f32 1.442695, %v6137_v19  ;;  %vm6083_vm14 = vcmp.eq.s32.totalorder %v10653_v22, %v6063_v46 }
0x2363   : > { %v6158_v14 = vsel %vm6106_vm13, %v8148_v5, 0.0  ;;  %v6656_v40 = vsel %vm6083_vm14, 1.0, %v8203_v42 }
0x2364   : > { %v8150_v44 = vpop.eup %8149  ;;  %8161 = vpow2.f32 %v6151_v13  ;;  %6159 = vadd.xlane.f32.xlu0 %v6158_v14  ;;  %v6204_v26 = vmul.f32 %v6656_v40, %v10436_v4 }
0x2365   : > { %v6066_v10 = vpop.permute.xlu1 %6065  ;;  %v6155_v16 = vsel %vm6106_vm13, %v8150_v44, 0.0 }
0x2366   : > { %v8152_v34 = vpop.eup %8151  ;;  %6156 = vadd.xlane.f32.xlu1 %v6155_v16  ;;  %vm6084_vm1 = vcmp.eq.s32.totalorder %v10653_v22, %v6066_v10  ;;  %v6214_v4 = vsel %vm6106_vm13, %v6204_v26, 0.0 }
0x2367   : > { %v6060_v1 = vpop.permute.xlu0 %6059  ;;  %v6164_v9 = vsel %vm6106_vm13, %v8152_v34, 0.0  ;;  %v6657_v57 = vsel %vm6084_vm1, 1.0, %v8203_v42 }
0x2368   : > { %v8154_v25 = vpop.eup %8153  ;;  %vm6082_vm15 = vcmp.eq.s32.totalorder %v10653_v22, %v6060_v1  ;;  %v6205_v24 = vmul.f32 %v6657_v57, %v10446_v61 }
0x2369   : > { %v6069_v7 = vpop.permute.xlu1 %6068  ;;  %v6161_v52 = vsel %vm6106_vm13, %v8154_v25, 0.0  ;;  %v6655_v28 = vsel %vm6082_vm15, 1.0, %v8203_v42 }
0x236a   : > { %6165 = vadd.xlane.f32.xlu1 %v6164_v9  ;;  %6162 = vadd.xlane.f32.xlu0 %v6161_v52  ;;  %vm6085_vm0 = vcmp.eq.s32.totalorder %v10653_v22, %v6069_v7  ;;  %v6203_v29 = vmul.f32 %v6655_v28, %v10438_v41  ;;  %v6217_v61 = vsel %vm6106_vm13, %v6205_v24, 0.0 }
0x236b   : > { %v8156_v12 = vpop.eup %8155  ;;  %v6658_v2 = vsel %vm6085_vm0, 1.0, %v8203_v42 }
0x236c   : > { %v6170_v53 = vsel %vm6106_vm13, %v8156_v12, 0.0  ;;  %v6206_v60 = vmul.f32 %v6658_v2, %v10442_v11  ;;  %v6211_v41 = vsel %vm6106_vm13, %v6203_v29, 0.0 }
0x236d   : > { %v8158_v33 = vpop.eup %8157  ;;  %v6072_v20 = vpop.permute.xlu1 %6071 }
0x236e   : > { %6171 = vadd.xlane.f32.xlu1 %v6170_v53  ;;  %v6167_v15 = vsel %vm6106_vm13, %v8158_v33, 0.0  ;;  %vm6086_vm3 = vcmp.eq.s32.totalorder %v10653_v22, %v6072_v20  ;;  %v6220_v38 = vsel %vm6106_vm13, %v6206_v60, 0.0 }
0x236f   : > { %v8160_v43 = vpop.eup %8159  ;;  %6168 = vadd.xlane.f32.xlu0 %v6167_v15  ;;  %v6659_v37 = vsel %vm6086_vm3, 1.0, %v8203_v42 }
0x2370   : > { %v6176_v31 = vsel %vm6106_vm13, %v8160_v43, 0.0  ;;  %v6207_v11 = vmul.f32 %v6659_v37, %v10454_v51 }
0x2371   : > { %v8162_v48 = vpop.eup %8161  ;;  %v6075_v54 = vpop.permute.xlu1 %6074 }
0x2372   : > { %6177 = vadd.xlane.f32.xlu1 %v6176_v31  ;;  %v6173_v62 = vsel %vm6106_vm13, %v8162_v48, 0.0  ;;  %vm6087_vm2 = vcmp.eq.s32.totalorder %v10653_v22, %v6075_v54 }
0x2373   : > { %6174 = vadd.xlane.f32.xlu0 %v6173_v62  ;;  %v6660_v3 = vsel %vm6087_vm2, 1.0, %v8203_v42 }
0x2374   : > { %v6208_v21 = vmul.f32 %v6660_v3, %v10452_v39  ;;  %v6223_v39 = vsel %vm6106_vm13, %v6207_v11, 0.0 }
0x2375   : > { %v6078_v23 = vpop.permute.xlu1 %6077 }
0x2376   : > { %6215 = vadd.xlane.f32.xlu1 %v6214_v4  ;;  %vm6088_vm4 = vcmp.eq.s32.totalorder %v10653_v22, %v6078_v23  ;;  %v6226_v0 = vsel %vm6106_vm13, %v6208_v21, 0.0 }
0x2377   : > { %6212 = vadd.xlane.f32.xlu0 %v6211_v41  ;;  %v6661_v18 = vsel %vm6088_vm4, 1.0, %v8203_v42 }
0x2378   : > { %v6209_v32 = vmul.f32 %v6661_v18, %v10462_v59 }
0x2379   : > { %v6081_v30 = vpop.permute.xlu1 %6080 }
0x237a   : > { %vm6089_vm5 = vcmp.eq.s32.totalorder %v10653_v22, %v6081_v30  ;;  %6221 = vadd.xlane.f32.xlu1 %v6220_v38  ;;  %v6229_v45 = vsel %vm6106_vm13, %v6209_v32, 0.0 }
0x237b   : > { %v6662_v47 = vsel %vm6089_vm5, 1.0, %v8203_v42  ;;  %6218 = vadd.xlane.f32.xlu0 %v6217_v61 }
0x237c   : > { %v6210_v58 = vmul.f32 %v6662_v47, %v10458_v56 }
0x237e   : > { %6227 = vadd.xlane.f32.xlu1 %v6226_v0  ;;  %v6232_v51 = vsel %vm6106_vm13, %v6210_v58, 0.0 }
0x237f   : > { %6224 = vadd.xlane.f32.xlu0 %v6223_v39 }
0x2382   : > { %6233 = vadd.xlane.f32.xlu1 %v6232_v51 }
0x2383   : > { %6230 = vadd.xlane.f32.xlu0 %v6229_v45 }
0x23ed   : > { %v6160_v55 = vpop.xlane.xlu0 %6159 }
0x23ee   : > { %8163 = vlog2.f32 %v6160_v55 }
0x23ef   : > { %v6157_v36 = vpop.xlane.xlu1 %6156 }
0x23f0   : > { %8165 = vlog2.f32 %v6157_v36 }
0x23f3   : > { %v6166_v19 = vpop.xlane.xlu1 %6165  ;;  %v6163_v56 = vpop.xlane.xlu0 %6162 }
0x23f4   : > { %8167 = vlog2.f32 %v6166_v19 }
0x23f5   : > { %8169 = vlog2.f32 %v6163_v56 }
0x23f7   : > { %v6172_v46 = vpop.xlane.xlu1 %6171 }
0x23f8   : > { %8171 = vlog2.f32 %v6172_v46  ;;  %v6169_v59 = vpop.xlane.xlu0 %6168 }
0x23f9   : > { %8173 = vlog2.f32 %v6169_v59 }
0x23fb   : > { %v8164_v5 = vpop.eup %8163  ;;  %v6178_v13 = vpop.xlane.xlu1 %6177 }
0x23fc   : > { %v6182_v14 = vmul.f32 0.6931472, %v8164_v5  ;;  %8175 = vlog2.f32 %v6178_v13  ;;  %v6175_v44 = vpop.xlane.xlu0 %6174 }
0x23fd   : > { %v8166_v10 = vpop.eup %8165  ;;  %8177 = vlog2.f32 %v6175_v44 }
0x23fe   : > { %v6180_v16 = vmul.f32 0.6931472, %v8166_v10  ;;  %v6196_v25 = vadd.f32 %v6182_v14, %v10472_v49 }
0x23ff   : > { %v6216_v34 = vpop.xlane.xlu1 %6215 }
0x2400   : > { %v6195_v1 = vadd.f32 %v6180_v16, %v10476_v35  ;;  %v6213_v7 = vpop.xlane.xlu0 %6212  ;;  %v6236_v20 = vsub.f32 %v6196_v25, %v6216_v34 }
0x2401   : > { %v8168_v9 = vpop.eup %8167 }
0x2402   : > { %v8170_v52 = vpop.eup %8169  ;;  %v6186_v12 = vmul.f32 0.6931472, %v8168_v9  ;;  %v6235_v22 = vsub.f32 %v6195_v1, %v6213_v7  ;;  %v6245_v26 = vsel %vm6243_vm6, %v6236_v20, 0.0 }
0x2403   : > { %v6184_v33 = vmul.f32 0.6931472, %v8170_v52  ;;  %v6222_v53 = vpop.xlane.xlu1 %6221 }
0x2404   : > { %v6198_v42 = vadd.f32 %v6186_v12, %v10480_v6  ;;  %v6219_v40 = vpop.xlane.xlu0 %6218  ;;  %v6244_v43 = vsel %vm6243_vm6, %v6235_v22, 0.0 }
0x2405   : > { %v8172_v15 = vpop.eup %8171  ;;  %v6197_v28 = vadd.f32 %v6184_v33, %v10484_v50  ;;  %v6246_v29 = vadd.f32 %v6245_v26, %v6244_v43 }
0x2406   : > { %v8174_v49 = vpop.eup %8173  ;;  %v6190_v48 = vmul.f32 0.6931472, %v8172_v15  ;;  %v6238_v54 = vsub.f32 %v6198_v42, %v6222_v53 }
0x2407   : > { %v6188_v35 = vmul.f32 0.6931472, %v8174_v49  ;;  %v6237_v31 = vsub.f32 %v6197_v28, %v6219_v40  ;;  %v6228_v62 = vpop.xlane.xlu1 %6227 }
0x2408   : > { %v6200_v2 = vadd.f32 %v6190_v48, %v10488_v63  ;;  %v6225_v57 = vpop.xlane.xlu0 %6224  ;;  %v6249_v41 = vsel %vm6243_vm6, %v6238_v54, 0.0 }
0x2409   : > { %v8176_v60 = vpop.eup %8175  ;;  %v6247_v6 = vsel %vm6243_vm6, %v6237_v31, 0.0  ;;  %v6199_v23 = vadd.f32 %v6188_v35, %v10492_v27 }
0x240a   : > { %v8178_v4 = vpop.eup %8177  ;;  %v6194_v24 = vmul.f32 0.6931472, %v8176_v60  ;;  %v6248_v50 = vadd.f32 %v6247_v6, %v6246_v29  ;;  %v6240_v37 = vsub.f32 %v6200_v2, %v6228_v62 }
0x240b   : > { %v6192_v3 = vmul.f32 0.6931472, %v8178_v4  ;;  %v6239_v21 = vsub.f32 %v6199_v23, %v6225_v57  ;;  %v6234_v18 = vpop.xlane.xlu1 %6233 }
0x240c   : > { %v6250_v30 = vadd.f32 %v6249_v41, %v6248_v50  ;;  %v6202_v38 = vadd.f32 %v6194_v24, %v10496_v8  ;;  %v6231_v47 = vpop.xlane.xlu0 %6230  ;;  %v6253_v27 = vsel %vm6243_vm6, %v6240_v37, 0.0 }
0x240d   : > { %v6251_v63 = vsel %vm6243_vm6, %v6239_v21, 0.0  ;;  %v6201_v11 = vadd.f32 %v6192_v3, %v10500_v17 }
0x240e   : > { %v6252_v61 = vadd.f32 %v6251_v63, %v6250_v30  ;;  %v6242_v58 = vsub.f32 %v6202_v38, %v6234_v18 }
0x240f   : > { %v6241_v0 = vsub.f32 %v6201_v11, %v6231_v47 }
0x2410   : > { %v6254_v32 = vadd.f32 %v6253_v27, %v6252_v61  ;;  %v6257_v45 = vsel %vm6243_vm6, %v6242_v58, 0.0 }
0x2411   : > { %v6255_v39 = vsel %vm6243_vm6, %v6241_v0, 0.0 }
0x2412   : > { %v6256_v51 = vadd.f32 %v6255_v39, %v6254_v32 }
0x2414   : > { %v6258_v55 = vadd.f32 %v6257_v45, %v6256_v51 }
0x2416   : > { %6259 = vadd.xlane.f32.xlu0 %v6258_v55 }
0x249f   : > { %v6260_v8 = vpop.xlane.xlu0 %6259 }
0x24a0   : > { %v6261_v36 = vrot.slane %v6260_v8, 4 }
0x24a2   : > { %v6262_v19 = vadd.f32 %v6261_v36, %v6260_v8 }
0x24a4   : > { %v6263_v17 = vrot.slane %v6262_v19, 2 }
0x24a6   : > { %v6264_v56 = vadd.f32 %v6263_v17, %v6262_v19 }
0x24a8   : > { %v6265_v46 = vrot.slane %v6264_v56, 1 }
0x24aa   : > { %v6266_v59 = vadd.f32 %v6265_v46, %v6264_v56 }
0x24ac   : > { %7602 = vpush %v6266_v59 }
0x24dd   : > { %s7603_s22 = spop %7602 }
0x24de   : > { %s6270_s24 = smul.f32 0.015625, %s7603_s22 }
0x24e0   : > { %v6271_v5 = vstv %s6270_s24 }
0x24e1   : > { %6272 = vst [vmem:[%s593_s0] sm:$0xff] %v6271_v5 }
0x24e2 PF: > { %s28_s27 = sadd.s32 1, %s8185_s27  }
0x24e3   : > { %p25_p4 = scmp.ge.s32.totalorder %s28_s27, 4  }
0x24e5   :  { %27 = sbr.rel (!%p25_p4) target bundleno = 4 (0x4), region = 137 }

</bundles_post_ra>
